<compile_context>
chip_gen: v7x
topology: tpu7x:2x2x1
jax: 0.10.0
libtpu: 0.0.40
codegen_flags: <defaults>
</compile_context>

<pallas_src>
import math
import functools

import jax
import jax.numpy as jnp
from jax.experimental import pallas as pl
from jax.experimental.pallas import tpu as pltpu

EPS = 1e-5          # BatchNorm eps
LEAKY_SLOPE = 0.1   # nn.LeakyReLU(0.1)

MAX_TK = 1024       # whole contraction in one block at these sizes (~1 MiB bf16 weight block)
MAX_TN = 512        # >= 2 j-blocks for N=1024 -> both v7x TensorCores stay busy
MAX_TM = 256


def _round_up(x, m):
    return (x + m - 1) // m * m


def _epilogue(y_f32, shift_f32, act):
    y = y_f32 + shift_f32
    if act == "leaky":
        y = jnp.where(y > 0, y, LEAKY_SLOPE * y)
    elif act == "relu":
        y = jnp.maximum(y, 0.0)
    return y


# ---------------------------------------------------------------------------
# Pallas kernels: fused matmul (bf16 operands, f32 accumulation) + per-column
# shift + activation epilogue, emitting the output dtype directly (bf16 for
# intermediate layers, f32 for the last layer).
# ---------------------------------------------------------------------------
def _layer_kernel_single_k(a_ref, w_ref, c_ref, o_ref, *, act):
    # Whole K contraction lives in one block: no accumulator needed.
    y = jnp.dot(a_ref[...], w_ref[...], preferred_element_type=jnp.float32)
    o_ref[...] = _epilogue(y, c_ref[...], act).astype(o_ref.dtype)


def _layer_kernel_multi_k(a_ref, w_ref, c_ref, o_ref, acc_ref, *, act):
    k = pl.program_id(2)

    @pl.when(k == 0)
    def _():
        acc_ref[...] = jnp.zeros_like(acc_ref)

    acc_ref[...] += jnp.dot(a_ref[...], w_ref[...],
                            preferred_element_type=jnp.float32)

    @pl.when(k == pl.num_programs(2) - 1)
    def _():
        o_ref[...] = _epilogue(acc_ref[...], c_ref[...], act).astype(o_ref.dtype)


def _pallas_layer(a, w, c, *, tm, tn, tk, act, out_dtype):
    Mp, Kp = a.shape
    _, Np = w.shape
    nk = Kp // tk

    if nk == 1:
        grid = (Mp // tm, Np // tn)
        return pl.pallas_call(
            functools.partial(_layer_kernel_single_k, act=act),
            out_shape=jax.ShapeDtypeStruct((Mp, Np), out_dtype),
            grid_spec=pltpu.PrefetchScalarGridSpec(
                num_scalar_prefetch=0,
                grid=grid,
                in_specs=[
                    pl.BlockSpec((tm, Kp), lambda i, j: (i, 0)),   # activations (bf16)
                    pl.BlockSpec((Kp, tn), lambda i, j: (0, j)),   # scale-folded weights (bf16)
                    pl.BlockSpec((1, tn), lambda i, j: (0, j)),    # bn shift (f32)
                ],
                out_specs=pl.BlockSpec((tm, tn), lambda i, j: (i, j)),
            ),
            compiler_params=pltpu.CompilerParams(
                dimension_semantics=("parallel", "parallel")),
        )(a, w, c)

    # Fallback for K > MAX_TK: k reduction axis last, f32 scratch accumulator.
    grid = (Mp // tm, Np // tn, nk)
    return pl.pallas_call(
        functools.partial(_layer_kernel_multi_k, act=act),
        out_shape=jax.ShapeDtypeStruct((Mp, Np), out_dtype),
        grid_spec=pltpu.PrefetchScalarGridSpec(
            num_scalar_prefetch=0,
            grid=grid,
            in_specs=[
                pl.BlockSpec((tm, tk), lambda i, j, k: (i, k)),
                pl.BlockSpec((tk, tn), lambda i, j, k: (k, j)),
                pl.BlockSpec((1, tn), lambda i, j, k: (0, j)),
            ],
            out_specs=pl.BlockSpec((tm, tn), lambda i, j, k: (i, j)),
            scratch_shapes=[pltpu.VMEM((tm, tn), jnp.float32)],
        ),
        compiler_params=pltpu.CompilerParams(
            dimension_semantics=("parallel", "parallel", "arbitrary")),
    )(a, w, c)


# ---------------------------------------------------------------------------
# ReFineBlock builder: deterministic params (mirrors weights_init_kaiming) +
# jitted Pallas forward + pure-JAX reference for tolerance checking.
# ---------------------------------------------------------------------------
def make_refine_block(key, input_dim=1024, num_bottleneck=1024, layer=2,
                      dropout=True, relu=True):
    # TODO(synk): Dropout(p=0.5) and BatchNorm1d batch statistics are train-mode
    # behaviors; eval/inference semantics are implemented (Dropout = identity,
    # BN folded with running_mean=0, running_var=1).
    del dropout
    act = "leaky" if relu else "none"

    keys = jax.random.split(key, 2 * layer)
    params, cfg = [], []
    in_dim = input_dim
    for li in range(layer):
        K, N = in_dim, num_bottleneck
        tk = min(MAX_TK, _round_up(K, 128))
        tn = min(MAX_TN, _round_up(N, 128))
        Kp, Np = _round_up(K, tk), _round_up(N, tn)

        # nn.Linear weight (N, K): kaiming_normal(mode='fan_out') -> std = sqrt(2/N); bias = 0.
        w = jax.random.normal(keys[2 * li], (K, N), jnp.float32) * math.sqrt(2.0 / N)
        # BatchNorm1d: gamma ~ N(1.0, 0.02), beta = 0; eval fold with mean=0, var=1.
        gamma = 1.0 + 0.02 * jax.random.normal(keys[2 * li + 1], (N,), jnp.float32)
        scale = gamma / math.sqrt(1.0 + EPS)

        # Fold the BN scale (per-output-column multiplier) into the weight so the
        # kernel epilogue is just shift + activation (one fewer input stream).
        w_folded = w * scale[None, :]
        shift = jnp.zeros((N,), jnp.float32)   # linear bias = 0, beta = 0

        # Pre-pad + pre-cast ONCE at init (weights reused every forward call).
        w_p = jnp.zeros((Kp, Np), jnp.bfloat16).at[:K, :N].set(
            w_folded.astype(jnp.bfloat16))
        c_p = jnp.zeros((1, Np), jnp.float32).at[0, :N].set(shift)

        params.append({"w": w_p, "shift": c_p})
        cfg.append((K, N, Kp, Np, tn, tk))
        in_dim = N

    n_layers = len(cfg)
    N_out = cfg[-1][1]

    @jax.jit
    def forward(params, x):
        M = x.shape[0]
        tm = min(MAX_TM, _round_up(M, 16))      # bf16 packs 16 rows per vreg sublane group
        Mp = _round_up(M, tm)
        h = x
        for li, (p, (K, N, Kp, Np, tn, tk)) in enumerate(zip(params, cfg)):
            if h.shape == (Mp, Kp) and h.dtype == jnp.bfloat16:
                a = h                           # previous kernel already emitted padded bf16
            else:
                a = jnp.zeros((Mp, Kp), jnp.bfloat16)
                a = a.at[:h.shape[0], :min(h.shape[1], K)].set(
                    h[:, :K].astype(jnp.bfloat16))
            last = li == n_layers - 1
            h = _pallas_layer(a, p["w"], p["shift"], tm=tm, tn=tn, tk=tk, act=act,
                              out_dtype=jnp.float32 if last else jnp.bfloat16)
            # Dropout(p=0.5) -> identity in eval mode.
        return h[:M, :N_out]

    def ref_forward(params, x):
        """Pure-JAX reference mirroring the kernel's bf16 operand rounding."""
        h = x.astype(jnp.float32)
        for li, (p, (K, N, _, _, _, _)) in enumerate(zip(params, cfg)):
            a = h[:, :K].astype(jnp.bfloat16).astype(jnp.float32)
            w = p["w"][:K, :N].astype(jnp.float32)
            c = p["shift"][0, :N]
            y = a @ w + c
            if act == "leaky":
                y = jnp.where(y > 0, y, LEAKY_SLOPE * y)
            elif act == "relu":
                y = jnp.maximum(y, 0.0)
            if li != n_layers - 1:
                y = y.astype(jnp.bfloat16).astype(jnp.float32)   # kernel's bf16 intermediate
            h = y
        return h

    return params, forward, ref_forward


if __name__ == "__main__":
    key = jax.random.PRNGKey(0)
    kp, kx = jax.random.split(key)

    BATCH, INPUT_DIM, NUM_BOTTLENECK, LAYERS = 2, 1024, 1024, 2
    params, forward, ref_forward = make_refine_block(
        kp, input_dim=INPUT_DIM, num_bottleneck=NUM_BOTTLENECK, layer=LAYERS)

    x = jax.random.normal(kx, (BATCH, INPUT_DIM), jnp.float32)

    y = jax.block_until_ready(forward(params, x))

    assert y.shape == (BATCH, NUM_BOTTLENECK), y.shape
    assert bool(jnp.all(jnp.isfinite(y)))

    # Tolerance check vs. pure-JAX reference (same bf16-rounded operands, f32 math:
    # residual error is accumulation-order rounding only).
    y_ref = ref_forward(params, x)
    max_err = float(jnp.max(jnp.abs(y - y_ref)))
    assert max_err < 5e-2, f"max abs error vs reference too large: {max_err}"

    print("KERNEL_OK")
</pallas_src>

<mosaic_0001>
module attributes {stable_mosaic.version = 11 : i64} {
  func.func @_layer_kernel_single_k(%arg0: i32, %arg1: i32, %arg2: memref<16x1024xbf16, #tpu.memory_space<vmem>>, %arg3: memref<1024x512xbf16, #tpu.memory_space<vmem>>, %arg4: memref<1x512xf32, #tpu.memory_space<vmem>>, %arg5: memref<16x512xf32, #tpu.memory_space<vmem>>) attributes {dimension_semantics = [#tpu.dimension_semantics<parallel>, #tpu.dimension_semantics<parallel>], iteration_bounds = array<i64: 1, 2>, scalar_prefetch = 0 : i64, scratch_operands = 0 : i64, tpu.core_type = #tpu.core_type<tc>, window_params = [{transform_indices = @transform_0, window_bounds = array<i64: 16, 1024>}, {transform_indices = @transform_1, window_bounds = array<i64: 1024, 512>}, {transform_indices = @transform_2, window_bounds = array<i64: 1, 512>}, {transform_indices = @transform_3, window_bounds = array<i64: 16, 512>}]} {
    %c0 = arith.constant 0 : index
    %c0_0 = arith.constant 0 : index
    %0 = vector.load %arg2[%c0, %c0_0] : memref<16x1024xbf16, #tpu.memory_space<vmem>>, vector<16x1024xbf16>
    %c0_1 = arith.constant 0 : index
    %c0_2 = arith.constant 0 : index
    %1 = vector.load %arg3[%c0_1, %c0_2] : memref<1024x512xbf16, #tpu.memory_space<vmem>>, vector<1024x512xbf16>
    %cst = arith.constant dense<0.000000e+00> : vector<16x512xf32>
    %2 = tpu.matmul %0, %1, %cst {dimension_numbers = #tpu.dot_dimension_numbers<[1], [0], [0], [1], [0, 0, 1, 1], [], []>} : vector<16x1024xbf16>, vector<1024x512xbf16>, vector<16x512xf32> -> vector<16x512xf32>
    %c0_3 = arith.constant 0 : index
    %c0_4 = arith.constant 0 : index
    %3 = vector.load %arg4[%c0_3, %c0_4] : memref<1x512xf32, #tpu.memory_space<vmem>>, vector<1x512xf32>
    %4 = vector.broadcast %3 : vector<1x512xf32> to vector<16x512xf32>
    %5 = arith.addf %2, %4 : vector<16x512xf32>
    %cst_5 = arith.constant 0.000000e+00 : f32
    %6 = vector.broadcast %cst_5 : f32 to vector<16x512xf32>
    %7 = arith.cmpf ogt, %5, %6 : vector<16x512xf32>
    %cst_6 = arith.constant 1.000000e-01 : f32
    %8 = vector.broadcast %cst_6 : f32 to vector<16x512xf32>
    %9 = arith.mulf %8, %5 : vector<16x512xf32>
    %10 = arith.select %7, %5, %9 : vector<16x512xi1>, vector<16x512xf32>
    %c0_7 = arith.constant 0 : index
    %c0_8 = arith.constant 0 : index
    %11 = vector.load %arg5[%c0_7, %c0_8] : memref<16x512xf32, #tpu.memory_space<vmem>>, vector<16x512xf32>
    tpu.vector_store %arg5[%c0_7, %c0_8], %10 {strides = array<i32>} : memref<16x512xf32, #tpu.memory_space<vmem>>, vector<16x512xf32>,
    return
  }
  func.func @transform_0(%arg0: i32, %arg1: i32) -> (i32, i32) {
    %c0_i32 = arith.constant 0 : i32
    %c0_i32_0 = arith.constant 0 : i32
    return %arg0, %c0_i32 : i32, i32
  }
  func.func @transform_1(%arg0: i32, %arg1: i32) -> (i32, i32) {
    %c0_i32 = arith.constant 0 : i32
    %c0_i32_0 = arith.constant 0 : i32
    return %c0_i32, %arg1 : i32, i32
  }
  func.func @transform_2(%arg0: i32, %arg1: i32) -> (i32, i32) {
    %c0_i32 = arith.constant 0 : i32
    %c0_i32_0 = arith.constant 0 : i32
    return %c0_i32, %arg1 : i32, i32
  }
  func.func @transform_3(%arg0: i32, %arg1: i32) -> (i32, i32) {
    %c0_i32 = arith.constant 0 : i32
    return %arg0, %arg1 : i32, i32
  }
}

module attributes {stable_mosaic.version = 11 : i64} {
  func.func @_layer_kernel_single_k(%arg0: i32, %arg1: i32, %arg2: memref<16x1024xbf16, #tpu.memory_space<vmem>>, %arg3: memref<1024x512xbf16, #tpu.memory_space<vmem>>, %arg4: memref<1x512xf32, #tpu.memory_space<vmem>>, %arg5: memref<16x512xbf16, #tpu.memory_space<vmem>>) attributes {dimension_semantics = [#tpu.dimension_semantics<parallel>, #tpu.dimension_semantics<parallel>], iteration_bounds = array<i64: 1, 2>, scalar_prefetch = 0 : i64, scratch_operands = 0 : i64, tpu.core_type = #tpu.core_type<tc>, window_params = [{transform_indices = @transform_0, window_bounds = array<i64: 16, 1024>}, {transform_indices = @transform_1, window_bounds = array<i64: 1024, 512>}, {transform_indices = @transform_2, window_bounds = array<i64: 1, 512>}, {transform_indices = @transform_3, window_bounds = array<i64: 16, 512>}]} {
    %c0 = arith.constant 0 : index
    %c0_0 = arith.constant 0 : index
    %0 = vector.load %arg2[%c0, %c0_0] : memref<16x1024xbf16, #tpu.memory_space<vmem>>, vector<16x1024xbf16>
    %c0_1 = arith.constant 0 : index
    %c0_2 = arith.constant 0 : index
    %1 = vector.load %arg3[%c0_1, %c0_2] : memref<1024x512xbf16, #tpu.memory_space<vmem>>, vector<1024x512xbf16>
    %cst = arith.constant dense<0.000000e+00> : vector<16x512xf32>
    %2 = tpu.matmul %0, %1, %cst {dimension_numbers = #tpu.dot_dimension_numbers<[1], [0], [0], [1], [0, 0, 1, 1], [], []>} : vector<16x1024xbf16>, vector<1024x512xbf16>, vector<16x512xf32> -> vector<16x512xf32>
    %c0_3 = arith.constant 0 : index
    %c0_4 = arith.constant 0 : index
    %3 = vector.load %arg4[%c0_3, %c0_4] : memref<1x512xf32, #tpu.memory_space<vmem>>, vector<1x512xf32>
    %4 = vector.broadcast %3 : vector<1x512xf32> to vector<16x512xf32>
    %5 = arith.addf %2, %4 : vector<16x512xf32>
    %cst_5 = arith.constant 0.000000e+00 : f32
    %6 = vector.broadcast %cst_5 : f32 to vector<16x512xf32>
    %7 = arith.cmpf ogt, %5, %6 : vector<16x512xf32>
    %cst_6 = arith.constant 1.000000e-01 : f32
    %8 = vector.broadcast %cst_6 : f32 to vector<16x512xf32>
    %9 = arith.mulf %8, %5 : vector<16x512xf32>
    %10 = arith.select %7, %5, %9 : vector<16x512xi1>, vector<16x512xf32>
    %11 = arith.truncf %10 : vector<16x512xf32> to vector<16x512xbf16>
    %c0_7 = arith.constant 0 : index
    %c0_8 = arith.constant 0 : index
    %12 = vector.load %arg5[%c0_7, %c0_8] : memref<16x512xbf16, #tpu.memory_space<vmem>>, vector<16x512xbf16>
    tpu.vector_store %arg5[%c0_7, %c0_8], %11 {strides = array<i32>} : memref<16x512xbf16, #tpu.memory_space<vmem>>, vector<16x512xbf16>,
    return
  }
  func.func @transform_0(%arg0: i32, %arg1: i32) -> (i32, i32) {
    %c0_i32 = arith.constant 0 : i32
    %c0_i32_0 = arith.constant 0 : i32
    return %arg0, %c0_i32 : i32, i32
  }
  func.func @transform_1(%arg0: i32, %arg1: i32) -> (i32, i32) {
    %c0_i32 = arith.constant 0 : i32
    %c0_i32_0 = arith.constant 0 : i32
    return %c0_i32, %arg1 : i32, i32
  }
  func.func @transform_2(%arg0: i32, %arg1: i32) -> (i32, i32) {
    %c0_i32 = arith.constant 0 : i32
    %c0_i32_0 = arith.constant 0 : i32
    return %c0_i32, %arg1 : i32, i32
  }
  func.func @transform_3(%arg0: i32, %arg1: i32) -> (i32, i32) {
    %c0_i32 = arith.constant 0 : i32
    return %arg0, %arg1 : i32, i32
  }
}

</mosaic_0001>

<bundles_post_ra>
// kernel: forward.2
= control target key start
LH: loop header
LB: loop body
LE: loop exit
PB: predicated region body
PF: predicated region fallthrough
CT: control target
= control target key end

     0   :  { %8 = vsyncpa [#allocation3], 0  ;;  %s3819_s0 = inlined_call_operand.vmem [shape: bf16[16,1024], index: 0, kind: input, shape index: {}]   ;;  %s3820_s1 = inlined_call_operand.hbm [shape: bf16[1024,1024], index: 1, kind: input, shape index: {}]   ;;  %s3821_s2 = inlined_call_operand.hbm [shape: f32[1,1024], index: 2, kind: input, shape index: {}]   ;;  %s3822_s3 = inlined_call_operand.vmem [shape: bf16[16,1024], index: 3, kind: output, shape index: {}]  }
   0x1   :  { %10 = vsyncpa [#allocation3 + $0x1], 0 }
   0x2   :  { %11 = vsyncpa [#allocation5], 0 }
   0x3   :  { %13 = vsyncpa [#allocation5 + $0x1], 0  ;;  %s3330_s12 = smov 0   ;;  %s3332_s13 = smov 0  }
   0x4   :  { %s3334_s14 = smov 0   ;;  %s3336_s15 = smov 0  }
   0x5   :  { %s3338_s16 = smov 0   ;;  %s3340_s17 = smov 0  }
   0x6 LB: > { %s2415_s18 = sadd.s32 4294967295, %s3303_s17   ;;  %s28_s19 = sadd.s32 1, %s3299_s16  ;;  %s3303_s17 = sphi %s3340_s17, %s19_s17   ;;  %s3299_s16 = sphi %s3338_s16, %s3837_s16   ;;  %s3295_s15 = sphi %s3336_s15, %s3836_s15   ;;  %s3291_s14 = sphi %s3334_s14, %s3835_s14   ;;  %s3287_s13 = sphi %s3332_s13, %s3834_s13   ;;  %s3283_s12 = sphi %s3330_s12, %s3833_s12  }
   0x7   : > { %p29_p0 = scmp.ge.s32.totalorder %s28_s19, 2  ;;  %s64_s20 = sadd.s32 1, %s3291_s14 }
   0x8   : > { %p71_p1 = scmp.ne.s32.totalorder %s3291_s14, %s3287_s13  ;;  %p72_p2 = scmp.eq.s32.totalorder %s3303_s17, 0 }
   0x9   : > { %s3839_s19 = smov (%p29_p0, %s28_s19), 0  ;;  %p77_p4 = scmp.ne.s32.totalorder %s3287_s13, %s3283_s12 }
   0xa   : > { %p3366_p3 = por %p72_p2, %p71_p1  ;;  %s61_s22 = ssub.s32 %s3299_s16, %s3839_s19 }
   0xb   : > { %p78_p5 = scmp.eq.s32.totalorder %s2415_s18, 0  ;;  %p62_p6 = scmp.eq.s32.totalorder %s61_s22, 0 }
   0xc   : > { %p129_p7 = scmp.eq.s32.totalorder %s2415_s18, 1  ;;  %p2753_p10 = scmp.lt.s32.totalorder %s3303_s17, 2 }
   0xd   : > { %p3373_p8 = por %p78_p5, %p77_p4  ;;  %s3386_s26 = sand.u32 1, %s3291_s14  }
   0xe   : > { %s3378_s24 = scalar_select %p62_p6, %s3291_s14, %s64_s20  }
   0xf   : > { %s3825_s23 = scalar_select %p3373_p8, 1, 0 }
  0x10   : > { %p3380_p9 = por %p129_p7, %p71_p1  ;;  %s2703_s27 = sshll.u32 %s3299_s16, 8 }
  0x11   : > { %s2420_s28 = sshll.u32 %s3386_s26, 11  ;;  %s3393_s4 = scalar_lea.hbm %s3820_s1, %s2703_s27 }
  0x12   : > { %s3826_s25 = scalar_select %p3380_p9, 1, 0 }
  0x13   : > { %s169_s5 = scalar_lea.vmem [#allocation2], %s2420_s28  ;;  %p3397_p11 = pnand %p2753_p10, %p3366_p3 }
  0x14   : > { %s176_s6 = sshll.u32 %s169_s5, 4  ;;  %s166_s8 = scalar_lea.sflag [#allocation3], %s3386_s26  ;;  %s3401_s6 = int_to_ptr.vmem [resolvable:$true] %s176_s6 }
  0x15   : > { %s3189_s9 = scalar_lea.hbm %s3393_s4, 32768  ;;  %p3191_p0 = pneg %p3397_p11 }
  0x16   : > { %p3190_p13 = scmp.ne.s32.totalorder %s3393_s4, %s3189_s9  ;;  %s3194_s12 = scalar_lea.hbm %s3820_s1, 65536 }
  0x17   : > { %p3195_p3 = scmp.lt.u32.totalorder %s3393_s4, %s3820_s1  ;;  %p3196_p4 = scmp.lt.u32.totalorder %s3194_s12, %s3189_s9 }
  0x18   : > { %p3192_p1 = pnand %p3191_p0, %p3190_p13  ;;  %p3198_p6 = scmp.lt.u32.totalorder %s3189_s9, %s3393_s4 }
  0x19   : > { %p3197_p5 = por %p3196_p4, %p3195_p3 }
  0x1a   : > { %p3193_p2 = pneg %p3192_p1 }
  0x1b   : > { %p3199_p7 = por %p3198_p6, %p3197_p5 }
  0x1d   : > { %p3200_p10 = pnand %p3199_p7, %p3193_p2 }
  0x1f   : > { %3203 = shalt.err (!%p3200_p10)
}
  0x20   : > { %s3204_s21 = scalar_lea.vmem %s3401_s6, 32768  ;;  %s3305_s22 = smov [#allocation2]  }
  0x21   : > { %p3205_p13 = scmp.ne.s32.totalorder %s3401_s6, %s3204_s21  ;;  %s3209_s27 = sshll.u32 %s3305_s22, 4  ;;  %s3210_s27 = int_to_ptr.vmem [resolvable:$false] %s3209_s27 }
  0x22   : > { %s3211_s28 = scalar_lea.vmem %s3210_s27, 65536  ;;  %p3212_p9 = scmp.lt.s32.totalorder %s3401_s6, %s3210_s27 }
  0x23   : > { %p3207_p1 = pnand %p3205_p13, %p3191_p0  ;;  %p3213_p3 = scmp.lt.s32.totalorder %s3211_s28, %s3204_s21 }
  0x25   : > { %p3208_p12 = pneg %p3207_p1  ;;  %p3214_p4 = por %p3213_p3, %p3212_p9 }
  0x27   : > { %p3215_p5 = pnand %p3214_p4, %p3208_p12 }
  0x29   : > { %3218 = shalt.err (!%p3215_p5)
}
  0x2a   : > { %s3306_s29 = smov 512   ;;  %s3307_s30 = smov 256  }
  0x2b   : > { %s3308_s5 = smov 16   ;;  %p203_p2 = scmp.lt.s32.totalorder %s3303_s17, 3 }
  0x2c   : > { %2749 = dma.hbm_to_vmem [thread:$0]  (!%p3397_p11), %s3393_s4, 32768, %s3401_s6, %s166_s8, %s3306_s29, %s3307_s30, %s3308_s5  }
  0x2d   : > { %s2423_s9 = sshll.u32 %s3386_s26, 2  ;;  %s2704_s10 = sshll.u32 %s3299_s16, 6 }
  0x2e   : > { %p3828_p9 = scmp.ge.s32.totalorder %s3303_s17, 1  ;;  %s3444_s20 = scalar_lea.hbm %s3821_s2, %s2704_s10 }
  0x2f   : > { %s190_s21 = scalar_lea.vmem [#allocation4], %s2423_s9  ;;  %s187_s4 = scalar_lea.sflag [#allocation5], %s3386_s26 }
  0x30   : > { %p3437_p12 = pnand %p3828_p9, %p203_p2  ;;  %s198_s22 = sshll.u32 %s190_s21, 4  ;;  %s199_s22 = int_to_ptr.vmem [resolvable:$true] %s198_s22 }
  0x31   : > { %s3219_s6 = scalar_lea.hbm %s3444_s20, 64  ;;  %s3224_s28 = scalar_lea.hbm %s3821_s2, 128 }
  0x32   : > { %s3829_s11 = scalar_select %p3437_p12, 1, 0 }
  0x33   : > { %p3220_p6 = scmp.ne.s32.totalorder %s3444_s20, %s3219_s6  ;;  %p3225_p13 = scmp.lt.u32.totalorder %s3444_s20, %s3821_s2 }
  0x34   : > { %p3226_p1 = scmp.lt.u32.totalorder %s3224_s28, %s3219_s6  ;;  %p3228_p4 = scmp.lt.u32.totalorder %s3219_s6, %s3444_s20 }
  0x35   : > { %p3222_p7 = pnand %p3220_p6, %p3191_p0 }
  0x36   : > { %p3227_p3 = por %p3226_p1, %p3225_p13 }
  0x37   : > { %p3223_p10 = pneg %p3222_p7 }
  0x38   : > { %p3229_p5 = por %p3228_p4, %p3227_p3 }
  0x3a   : > { %p3230_p2 = pnand %p3229_p5, %p3223_p10 }
  0x3c   : > { %3233 = shalt.err (!%p3230_p2)
}
  0x3d   : > { %s3234_s26 = scalar_lea.vmem %s199_s22, 64  ;;  %s3309_s5 = smov [#allocation4]  }
  0x3e   : > { %p3235_p9 = scmp.ne.s32.totalorder %s199_s22, %s3234_s26  ;;  %s3239_s9 = sshll.u32 %s3309_s5, 4  ;;  %s3240_s9 = int_to_ptr.vmem [resolvable:$false] %s3239_s9 }
  0x3f   : > { %s3241_s10 = scalar_lea.vmem %s3240_s9, 128  ;;  %p3242_p8 = scmp.lt.s32.totalorder %s199_s22, %s3240_s9 }
  0x40   : > { %p3237_p6 = pnand %p3235_p9, %p3191_p0  ;;  %p3243_p12 = scmp.lt.s32.totalorder %s3241_s10, %s3234_s26 }
  0x42   : > { %p3238_p7 = pneg %p3237_p6  ;;  %p3244_p1 = por %p3243_p12, %p3242_p8 }
  0x44   : > { %p3245_p13 = pnand %p3244_p1, %p3238_p7 }
  0x46   : > { %3248 = shalt.err (!%p3245_p13)
}
  0x47   : > { %2752 = dma.hbm_to_vmem [thread:$0]  (!%p3397_p11), %s3444_s20, 64, %s199_s22, %s187_s4  }
  0x48   : > { %p3830_p10 = scmp.ne.s32.totalorder %s3829_s11, 0 }
  0x49   : > { %s3469_s12 = sand.u32 (!%p3830_p10), 1, %s3287_s13   ;;  %p3831_p8 = scmp.ne.s32.totalorder (!%p3830_p10), %s3825_s23, 0 }
  0x4a   : > { %207 = sbr.rel (%p3830_p10) target bundleno = 576 (0x240), region = 32  ;;  %s2427_s18 = sshll.u32 (!%p3830_p10), %s3469_s12, 11 }
  0x4b   : > { %s210_s21 = scalar_lea.sflag (!%p3830_p10), [#allocation3], %s3469_s12  ;;  %s3473_s6 = scalar_lea.vmem (!%p3830_p10), [#allocation2], %s2427_s18 }
  0x51   : > { %3274 = dma.done.wait (%p3831_p8), %s210_s21, 32768  }
  0x52   : > { %3276 = vsyncadd (%p3831_p8), %s210_s21, 4294934528  ;;  %s2428_s7 = sshll.u32 %s3469_s12, 2  ;;  %s219_s11 = scalar_lea.sflag [#allocation5], %s3469_s12 }
  0x53   : > { %s3481_s20 = scalar_lea.vmem [#allocation4], %s2428_s7 }
  0x54   : > { %3278 = dma.done.wait (%p3831_p8), %s219_s11, 64  }
  0x55   : > { %3280 = vsyncadd (%p3831_p8), %s219_s11, 4294967232  ;;  %v2805_v0 = vld [vmem:[%s3473_s6 + $0x4] ss:$16 sps:$4 sm:$0xff]   ;;  %v2807_v1 = vld [vmem:[%s3473_s6 + $0xc] ss:$16 sps:$4 sm:$0xff]   ;;  %p3832_p11 = scmp.ne.s32.totalorder %s3826_s25, 0 }
  0x56   : > { %1872 = vmatprep.subr.bf16.mxu0 %v2805_v0  ;;  %v2809_v2 = vld [vmem:[%s3473_s6] ss:$16 sps:$4 sm:$0xff]   ;;  %v2810_v3 = vld [vmem:[%s3473_s6 + $0x8] ss:$16 sps:$4 sm:$0xff]   ;;  %2044 = vmatprep.subr.bf16.mxu1 %v2807_v1  ;;  %v2811_v4 = vld [vmem:[%s3473_s6 + $0x24] ss:$16 sps:$4 sm:$0xff]  }
  0x57   : > { %1873 = vmatpush1.bf16.msra.mxu0 %v2809_v2  ;;  %2045 = vmatpush1.bf16.msra.mxu1 %v2810_v3  ;;  %v2813_v5 = vld [vmem:[%s3473_s6 + $0x2c] ss:$16 sps:$4 sm:$0xff]   ;;  %v2815_v6 = vld [vmem:[%s3473_s6 + $0x20] ss:$16 sps:$4 sm:$0xff]   ;;  %v2816_v7 = vld [vmem:[%s3473_s6 + $0x28] ss:$16 sps:$4 sm:$0xff]  }
  0x58   : > { %1874 = vmatprep.subr.bf16.mxu0 %v2811_v4  ;;  %2046 = vmatprep.subr.bf16.mxu1 %v2813_v5  ;;  %v2817_v8 = vld [vmem:[%s3473_s6 + $0x44] ss:$16 sps:$4 sm:$0xff]   ;;  %v2819_v9 = vld [vmem:[%s3473_s6 + $0x4c] ss:$16 sps:$4 sm:$0xff]   ;;  %v2821_v10 = vld [vmem:[%s3473_s6 + $0x40] ss:$16 sps:$4 sm:$0xff]  }
  0x59   : > { %v2822_v11 = vld [vmem:[%s3473_s6 + $0x48] ss:$16 sps:$4 sm:$0xff]   ;;  %v2823_v12 = vld [vmem:[%s3473_s6 + $0x64] ss:$16 sps:$4 sm:$0xff]   ;;  %v2825_v13 = vld [vmem:[%s3473_s6 + $0x6c] ss:$16 sps:$4 sm:$0xff]  }
  0x5a   : > { %v2827_v14 = vld [vmem:[%s3473_s6 + $0x60] ss:$16 sps:$4 sm:$0xff]   ;;  %v2828_v15 = vld [vmem:[%s3473_s6 + $0x68] ss:$16 sps:$4 sm:$0xff]   ;;  %v2829_v16 = vld [vmem:[%s3473_s6 + $0x84] ss:$16 sps:$4 sm:$0xff]  }
  0x5b   : > { %1875 = vmatpush1.bf16.msra.mxu0 %v2815_v6  ;;  %2047 = vmatpush1.bf16.msra.mxu1 %v2816_v7  ;;  %v2831_v17 = vld [vmem:[%s3473_s6 + $0x8c] ss:$16 sps:$4 sm:$0xff]   ;;  %v2833_v18 = vld [vmem:[%s3473_s6 + $0x80] ss:$16 sps:$4 sm:$0xff]   ;;  %v2834_v19 = vld [vmem:[%s3473_s6 + $0x88] ss:$16 sps:$4 sm:$0xff]  }
  0x5c   : > { %1876 = vmatprep.subr.bf16.mxu0 %v2817_v8  ;;  %2048 = vmatprep.subr.bf16.mxu1 %v2819_v9  ;;  %v2835_v20 = vld [vmem:[%s3473_s6 + $0xa4] ss:$16 sps:$4 sm:$0xff]   ;;  %v2837_v21 = vld [vmem:[%s3473_s6 + $0xac] ss:$16 sps:$4 sm:$0xff]   ;;  %v2839_v22 = vld [vmem:[%s3473_s6 + $0xa0] ss:$16 sps:$4 sm:$0xff]  }
  0x5d   : > { %v2840_v23 = vld [vmem:[%s3473_s6 + $0xa8] ss:$16 sps:$4 sm:$0xff]   ;;  %v2841_v24 = vld [vmem:[%s3473_s6 + $0xc4] ss:$16 sps:$4 sm:$0xff]   ;;  %v2843_v25 = vld [vmem:[%s3473_s6 + $0xcc] ss:$16 sps:$4 sm:$0xff]  }
  0x5e   : > { %v2845_v26 = vld [vmem:[%s3473_s6 + $0xc0] ss:$16 sps:$4 sm:$0xff]   ;;  %v2846_v27 = vld [vmem:[%s3473_s6 + $0xc8] ss:$16 sps:$4 sm:$0xff]   ;;  %v2847_v28 = vld [vmem:[%s3473_s6 + $0xe4] ss:$16 sps:$4 sm:$0xff]  }
  0x5f   : > { %1877 = vmatpush1.bf16.msra.mxu0 %v2821_v10  ;;  %2049 = vmatpush1.bf16.msra.mxu1 %v2822_v11  ;;  %v2849_v29 = vld [vmem:[%s3473_s6 + $0xec] ss:$16 sps:$4 sm:$0xff]   ;;  %v2851_v30 = vld [vmem:[%s3473_s6 + $0xe0] ss:$16 sps:$4 sm:$0xff]   ;;  %v2852_v31 = vld [vmem:[%s3473_s6 + $0xe8] ss:$16 sps:$4 sm:$0xff]  }
  0x60   : > { %1878 = vmatprep.subr.bf16.mxu0 %v2823_v12  ;;  %2050 = vmatprep.subr.bf16.mxu1 %v2825_v13  ;;  %v2853_v32 = vld [vmem:[%s3473_s6 + $0x104] ss:$16 sps:$4 sm:$0xff]   ;;  %v2855_v33 = vld [vmem:[%s3473_s6 + $0x10c] ss:$16 sps:$4 sm:$0xff]   ;;  %v2857_v34 = vld [vmem:[%s3473_s6 + $0x100] ss:$16 sps:$4 sm:$0xff]  }
  0x61   : > { %v2858_v35 = vld [vmem:[%s3473_s6 + $0x108] ss:$16 sps:$4 sm:$0xff]   ;;  %v2859_v36 = vld [vmem:[%s3473_s6 + $0x124] ss:$16 sps:$4 sm:$0xff]   ;;  %v2861_v37 = vld [vmem:[%s3473_s6 + $0x12c] ss:$16 sps:$4 sm:$0xff]  }
  0x62   : > { %v2863_v38 = vld [vmem:[%s3473_s6 + $0x120] ss:$16 sps:$4 sm:$0xff]   ;;  %v2864_v39 = vld [vmem:[%s3473_s6 + $0x128] ss:$16 sps:$4 sm:$0xff]   ;;  %v2865_v40 = vld [vmem:[%s3473_s6 + $0x144] ss:$16 sps:$4 sm:$0xff]  }
  0x63   : > { %1879 = vmatpush1.bf16.msra.mxu0 %v2827_v14  ;;  %2051 = vmatpush1.bf16.msra.mxu1 %v2828_v15  ;;  %v2867_v41 = vld [vmem:[%s3473_s6 + $0x14c] ss:$16 sps:$4 sm:$0xff]   ;;  %v2869_v42 = vld [vmem:[%s3473_s6 + $0x140] ss:$16 sps:$4 sm:$0xff]   ;;  %v2870_v43 = vld [vmem:[%s3473_s6 + $0x148] ss:$16 sps:$4 sm:$0xff]  }
  0x64   : > { %1880 = vmatprep.subr.bf16.mxu0 %v2829_v16  ;;  %2052 = vmatprep.subr.bf16.mxu1 %v2831_v17  ;;  %v2871_v44 = vld [vmem:[%s3473_s6 + $0x164] ss:$16 sps:$4 sm:$0xff]   ;;  %v2873_v45 = vld [vmem:[%s3473_s6 + $0x16c] ss:$16 sps:$4 sm:$0xff]   ;;  %v2875_v48 = vld [vmem:[%s3473_s6 + $0x160] ss:$16 sps:$4 sm:$0xff]  }
  0x65   : > { %v266_v46 = vld [vmem:[%s3819_s0] sm:$0xff]  ;;  %v2876_v49 = vld [vmem:[%s3473_s6 + $0x168] ss:$16 sps:$4 sm:$0xff]   ;;  %v2879_v52 = vld [vmem:[%s3473_s6 + $0x18c] ss:$16 sps:$4 sm:$0xff]   ;;  %s2709_s23 = sshll.u32 (%p3832_p11), %s3295_s15, 4 }
  0x66   : > { %v270_v47 = vld [vmem:[%s3819_s0 + $0x20] sm:$0xff]  ;;  %v2882_v54 = vld [vmem:[%s3473_s6 + $0x188] ss:$16 sps:$4 sm:$0xff]   ;;  %v2885_v56 = vld [vmem:[%s3473_s6 + $0x1ac] ss:$16 sps:$4 sm:$0xff]   ;;  %s2280_s4 = scalar_lea.vmem (%p3832_p11), %s3822_s3, %s2709_s23 }
  0x67   : > { %1881 = vmatpush1.bf16.msra.mxu0 %v2833_v18  ;;  %2053 = vmatpush1.bf16.msra.mxu1 %v2834_v19  ;;  %v2431_v50 = vcombine.high %v266_v46, %v270_v47  ;;  %v2877_v51 = vld [vmem:[%s3473_s6 + $0x184] ss:$16 sps:$4 sm:$0xff]   ;;  %v2881_v53 = vld [vmem:[%s3473_s6 + $0x180] ss:$16 sps:$4 sm:$0xff]   ;;  %v2888_v58 = vld [vmem:[%s3473_s6 + $0x1a8] ss:$16 sps:$4 sm:$0xff]   ;;  %v2430_v5 = vcombine.low %v266_v46, %v270_v47 }
  0x68   : > { %1882 = vmatprep.subr.bf16.mxu0 %v2835_v20  ;;  %2054 = vmatprep.subr.bf16.mxu1 %v2837_v21  ;;  %v2883_v55 = vld [vmem:[%s3473_s6 + $0x1a4] ss:$16 sps:$4 sm:$0xff]   ;;  %v2887_v57 = vld [vmem:[%s3473_s6 + $0x1a0] ss:$16 sps:$4 sm:$0xff]   ;;  %v2891_v60 = vld [vmem:[%s3473_s6 + $0x1cc] ss:$16 sps:$4 sm:$0xff]  }
  0x69   : > { %1904 = vmatprep.mubr.bf16.mxu0 %v2431_v50  ;;  %2076 = vmatprep.mubr.bf16.mxu1 %v2431_v50  ;;  %v2889_v59 = vld [vmem:[%s3473_s6 + $0x1c4] ss:$16 sps:$4 sm:$0xff]   ;;  %v2893_v61 = vld [vmem:[%s3473_s6 + $0x1c0] ss:$16 sps:$4 sm:$0xff]   ;;  %v2894_v62 = vld [vmem:[%s3473_s6 + $0x1c8] ss:$16 sps:$4 sm:$0xff]  }
  0x6a   : > { %v2895_v63 = vld [vmem:[%s3473_s6 + $0x1e4] ss:$16 sps:$4 sm:$0xff]   ;;  %v2897_v0 = vld [vmem:[%s3473_s6 + $0x1ec] ss:$16 sps:$4 sm:$0xff]   ;;  %v2899_v1 = vld [vmem:[%s3473_s6 + $0x1e0] ss:$16 sps:$4 sm:$0xff]  }
  0x6b   : > { %1883 = vmatpush1.bf16.msra.mxu0 %v2839_v22  ;;  %2055 = vmatpush1.bf16.msra.mxu1 %v2840_v23  ;;  %v2900_v2 = vld [vmem:[%s3473_s6 + $0x1e8] ss:$16 sps:$4 sm:$0xff]   ;;  %v2903_v3 = vld [vmem:[%s3473_s6 + $0x204] ss:$16 sps:$4 sm:$0xff]   ;;  %v2906_v4 = vld [vmem:[%s3473_s6 + $0x20c] ss:$16 sps:$4 sm:$0xff]  }
  0x6c   : > { %1884 = vmatprep.subr.bf16.mxu0 %v2841_v24  ;;  %2056 = vmatprep.subr.bf16.mxu1 %v2843_v25  ;;  %v2901_v6 = vld [vmem:[%s3473_s6 + $0x200] ss:$16 sps:$4 sm:$0xff]   ;;  %v2904_v7 = vld [vmem:[%s3473_s6 + $0x208] ss:$16 sps:$4 sm:$0xff]   ;;  %v2909_v8 = vld [vmem:[%s3473_s6 + $0x224] ss:$16 sps:$4 sm:$0xff]  }
  0x6d   : > { %v2912_v9 = vld [vmem:[%s3473_s6 + $0x22c] ss:$16 sps:$4 sm:$0xff]   ;;  %v2907_v10 = vld [vmem:[%s3473_s6 + $0x220] ss:$16 sps:$4 sm:$0xff]   ;;  %v2910_v11 = vld [vmem:[%s3473_s6 + $0x228] ss:$16 sps:$4 sm:$0xff]  }
  0x6e   : > { %v2915_v12 = vld [vmem:[%s3473_s6 + $0x244] ss:$16 sps:$4 sm:$0xff]   ;;  %v2918_v13 = vld [vmem:[%s3473_s6 + $0x24c] ss:$16 sps:$4 sm:$0xff]   ;;  %v2913_v14 = vld [vmem:[%s3473_s6 + $0x240] ss:$16 sps:$4 sm:$0xff]  }
  0x6f   : > { %1885 = vmatpush1.bf16.msra.mxu0 %v2845_v26  ;;  %2057 = vmatpush1.bf16.msra.mxu1 %v2846_v27  ;;  %v2916_v15 = vld [vmem:[%s3473_s6 + $0x248] ss:$16 sps:$4 sm:$0xff]   ;;  %v2921_v16 = vld [vmem:[%s3473_s6 + $0x264] ss:$16 sps:$4 sm:$0xff]   ;;  %v2924_v17 = vld [vmem:[%s3473_s6 + $0x26c] ss:$16 sps:$4 sm:$0xff]  }
  0x70   : > { %1886 = vmatprep.subr.bf16.mxu0 %v2847_v28  ;;  %2058 = vmatprep.subr.bf16.mxu1 %v2849_v29  ;;  %v2919_v18 = vld [vmem:[%s3473_s6 + $0x260] ss:$16 sps:$4 sm:$0xff]   ;;  %v2922_v19 = vld [vmem:[%s3473_s6 + $0x268] ss:$16 sps:$4 sm:$0xff]   ;;  %v2927_v20 = vld [vmem:[%s3473_s6 + $0x284] ss:$16 sps:$4 sm:$0xff]  }
  0x71   : > { %v2930_v21 = vld [vmem:[%s3473_s6 + $0x28c] ss:$16 sps:$4 sm:$0xff]   ;;  %v2925_v22 = vld [vmem:[%s3473_s6 + $0x280] ss:$16 sps:$4 sm:$0xff]   ;;  %v2928_v23 = vld [vmem:[%s3473_s6 + $0x288] ss:$16 sps:$4 sm:$0xff]  }
  0x72   : > { %v2933_v24 = vld [vmem:[%s3473_s6 + $0x2a4] ss:$16 sps:$4 sm:$0xff]   ;;  %v2936_v25 = vld [vmem:[%s3473_s6 + $0x2ac] ss:$16 sps:$4 sm:$0xff]   ;;  %v2931_v26 = vld [vmem:[%s3473_s6 + $0x2a0] ss:$16 sps:$4 sm:$0xff]  }
  0x73   : > { %1887 = vmatpush1.bf16.msra.mxu0 %v2851_v30  ;;  %2059 = vmatpush1.bf16.msra.mxu1 %v2852_v31  ;;  %v2934_v27 = vld [vmem:[%s3473_s6 + $0x2a8] ss:$16 sps:$4 sm:$0xff]   ;;  %v2939_v28 = vld [vmem:[%s3473_s6 + $0x2c4] ss:$16 sps:$4 sm:$0xff]   ;;  %v2942_v29 = vld [vmem:[%s3473_s6 + $0x2cc] ss:$16 sps:$4 sm:$0xff]  }
  0x74   : > { %1888 = vmatprep.subr.bf16.mxu0 %v2853_v32  ;;  %2060 = vmatprep.subr.bf16.mxu1 %v2855_v33  ;;  %v3586_v30 = vld [vmem:[%s3819_s0 + $0x8] sm:$0xff]  ;;  %v2937_v32 = vld [vmem:[%s3473_s6 + $0x2c0] ss:$16 sps:$4 sm:$0xff]   ;;  %v2963_v47 = vld [vmem:[%s3473_s6 + $0x344] ss:$16 sps:$4 sm:$0xff]  }
  0x75   : > { %v3591_v31 = vld [vmem:[%s3819_s0 + $0x28] sm:$0xff] }
  0x76   : > { %v2940_v33 = vld [vmem:[%s3473_s6 + $0x2c8] ss:$16 sps:$4 sm:$0xff]  }
  0x77   : > { %1889 = vmatpush1.bf16.msra.mxu0 %v2857_v34  ;;  %2061 = vmatpush1.bf16.msra.mxu1 %v2858_v35  ;;  %v2433_v34 = vcombine.high %v3586_v30, %v3591_v31  ;;  %v2945_v35 = vld [vmem:[%s3473_s6 + $0x2e4] ss:$16 sps:$4 sm:$0xff]   ;;  %v2958_v46 = vld [vmem:[%s3473_s6 + $0x328] ss:$16 sps:$4 sm:$0xff]  }
  0x78   : > { %1890 = vmatprep.subr.bf16.mxu0 %v2859_v36  ;;  %2062 = vmatprep.subr.bf16.mxu1 %v2861_v37  ;;  %v2948_v36 = vld [vmem:[%s3473_s6 + $0x2ec] ss:$16 sps:$4 sm:$0xff]   ;;  %v2943_v37 = vld [vmem:[%s3473_s6 + $0x2e0] ss:$16 sps:$4 sm:$0xff]   ;;  %v2964_v50 = vld [vmem:[%s3473_s6 + $0x348] ss:$16 sps:$4 sm:$0xff]  }
  0x7b   : > { %1891 = vmatpush1.bf16.msra.mxu0 %v2863_v38  ;;  %2063 = vmatpush1.bf16.msra.mxu1 %v2864_v39  ;;  %v2946_v38 = vld [vmem:[%s3473_s6 + $0x2e8] ss:$16 sps:$4 sm:$0xff]   ;;  %v2951_v39 = vld [vmem:[%s3473_s6 + $0x304] ss:$16 sps:$4 sm:$0xff]  }
  0x7c   : > { %1892 = vmatprep.subr.bf16.mxu0 %v2865_v40  ;;  %2064 = vmatprep.subr.bf16.mxu1 %v2867_v41  ;;  %v2954_v40 = vld [vmem:[%s3473_s6 + $0x30c] ss:$16 sps:$4 sm:$0xff]   ;;  %v2949_v41 = vld [vmem:[%s3473_s6 + $0x300] ss:$16 sps:$4 sm:$0xff]  }
  0x7f   : > { %1893 = vmatpush1.bf16.msra.mxu0 %v2869_v42  ;;  %2065 = vmatpush1.bf16.msra.mxu1 %v2870_v43  ;;  %v2952_v42 = vld [vmem:[%s3473_s6 + $0x308] ss:$16 sps:$4 sm:$0xff]   ;;  %v2957_v43 = vld [vmem:[%s3473_s6 + $0x324] ss:$16 sps:$4 sm:$0xff]  }
  0x80   : > { %1894 = vmatprep.subr.bf16.mxu0 %v2871_v44  ;;  %2066 = vmatprep.subr.bf16.mxu1 %v2873_v45  ;;  %v2960_v44 = vld [vmem:[%s3473_s6 + $0x32c] ss:$16 sps:$4 sm:$0xff]   ;;  %v2955_v45 = vld [vmem:[%s3473_s6 + $0x320] ss:$16 sps:$4 sm:$0xff]  }
  0x83   : > { %1895 = vmatpush1.bf16.msra.mxu0 %v2875_v48  ;;  %2067 = vmatpush1.bf16.msra.mxu1 %v2876_v49  ;;  %v2966_v48 = vld [vmem:[%s3473_s6 + $0x34c] ss:$16 sps:$4 sm:$0xff]   ;;  %v2961_v49 = vld [vmem:[%s3473_s6 + $0x340] ss:$16 sps:$4 sm:$0xff]  }
  0x84   : > { %1896 = vmatprep.subr.bf16.mxu0 %v2877_v51  ;;  %2068 = vmatprep.subr.bf16.mxu1 %v2879_v52  ;;  %v2969_v51 = vld [vmem:[%s3473_s6 + $0x364] ss:$16 sps:$4 sm:$0xff]   ;;  %v2972_v52 = vld [vmem:[%s3473_s6 + $0x36c] ss:$16 sps:$4 sm:$0xff]  }
  0x87   : > { %1897 = vmatpush1.bf16.msra.mxu0 %v2881_v53  ;;  %2069 = vmatpush1.bf16.msra.mxu1 %v2882_v54  ;;  %v2967_v53 = vld [vmem:[%s3473_s6 + $0x360] ss:$16 sps:$4 sm:$0xff]   ;;  %v2970_v54 = vld [vmem:[%s3473_s6 + $0x368] ss:$16 sps:$4 sm:$0xff]  }
  0x88   : > { %1898 = vmatprep.subr.bf16.mxu0 %v2883_v55  ;;  %2070 = vmatprep.subr.bf16.mxu1 %v2885_v56  ;;  %v2975_v55 = vld [vmem:[%s3473_s6 + $0x384] ss:$16 sps:$4 sm:$0xff]   ;;  %v2978_v56 = vld [vmem:[%s3473_s6 + $0x38c] ss:$16 sps:$4 sm:$0xff]  }
  0x8b   : > { %1899 = vmatpush1.bf16.msra.mxu0 %v2887_v57  ;;  %2071 = vmatpush1.bf16.msra.mxu1 %v2888_v58  ;;  %v2973_v57 = vld [vmem:[%s3473_s6 + $0x380] ss:$16 sps:$4 sm:$0xff]   ;;  %v2976_v58 = vld [vmem:[%s3473_s6 + $0x388] ss:$16 sps:$4 sm:$0xff]  }
  0x8c   : > { %1900 = vmatprep.subr.bf16.mxu0 %v2889_v59  ;;  %2072 = vmatprep.subr.bf16.mxu1 %v2891_v60  ;;  %v2981_v59 = vld [vmem:[%s3473_s6 + $0x3a4] ss:$16 sps:$4 sm:$0xff]   ;;  %v2984_v60 = vld [vmem:[%s3473_s6 + $0x3ac] ss:$16 sps:$4 sm:$0xff]  }
  0x8f   : > { %1901 = vmatpush1.bf16.msra.mxu0 %v2893_v61  ;;  %2073 = vmatpush1.bf16.msra.mxu1 %v2894_v62  ;;  %v2979_v61 = vld [vmem:[%s3473_s6 + $0x3a0] ss:$16 sps:$4 sm:$0xff]   ;;  %v2982_v62 = vld [vmem:[%s3473_s6 + $0x3a8] ss:$16 sps:$4 sm:$0xff]  }
  0x90   : > { %1902 = vmatprep.subr.bf16.mxu0 %v2895_v63  ;;  %2074 = vmatprep.subr.bf16.mxu1 %v2897_v0  ;;  %v2987_v63 = vld [vmem:[%s3473_s6 + $0x3c4] ss:$16 sps:$4 sm:$0xff]   ;;  %v2990_v0 = vld [vmem:[%s3473_s6 + $0x3cc] ss:$16 sps:$4 sm:$0xff]  }
  0x93   : > { %1903 = vmatpush1.bf16.msra.mxu0 %v2899_v1  ;;  %2075 = vmatpush1.bf16.msra.mxu1 %v2900_v2  ;;  %v2985_v1 = vld [vmem:[%s3473_s6 + $0x3c0] ss:$16 sps:$4 sm:$0xff]   ;;  %v2988_v2 = vld [vmem:[%s3473_s6 + $0x3c8] ss:$16 sps:$4 sm:$0xff]  }
  0x94   : > { %1915 = vmatprep.subr.bf16.mxu0 %v2903_v3  ;;  %2087 = vmatprep.subr.bf16.mxu1 %v2906_v4  ;;  %v2993_v3 = vld [vmem:[%s3473_s6 + $0x3e4] ss:$16 sps:$4 sm:$0xff]   ;;  %v2996_v4 = vld [vmem:[%s3473_s6 + $0x3ec] ss:$16 sps:$4 sm:$0xff]  }
  0x96   : > { %1905 = vmatmul.mubr.bf16.vlgmr.msra.gmra.mrb[0].mxu0 %v2430_v5  ;;  %2077 = vmatmul.mubr.bf16.vlgmr.msra.gmra.mrb[0].mxu1 %v2430_v5  ;;  %v2991_v5 = vld [vmem:[%s3473_s6 + $0x3e0] ss:$16 sps:$4 sm:$0xff]  }
  0x97   : > { %1916 = vmatpush1.bf16.msra.mxu0 %v2901_v6  ;;  %2088 = vmatpush1.bf16.msra.mxu1 %v2904_v7  ;;  %v2994_v6 = vld [vmem:[%s3473_s6 + $0x3e8] ss:$16 sps:$4 sm:$0xff]   ;;  %v2999_v7 = vld [vmem:[%s3473_s6 + $0x404] ss:$16 sps:$4 sm:$0xff]  }
  0x98   : > { %1917 = vmatprep.subr.bf16.mxu0 %v2909_v8  ;;  %2089 = vmatprep.subr.bf16.mxu1 %v2912_v9  ;;  %v3002_v8 = vld [vmem:[%s3473_s6 + $0x40c] ss:$16 sps:$4 sm:$0xff]   ;;  %v2432_v9 = vcombine.low %v3586_v30, %v3591_v31  ;;  %v3024_v30 = vld [vmem:[%s3473_s6 + $0x488] ss:$16 sps:$4 sm:$0xff]   ;;  %v3029_v31 = vld [vmem:[%s3473_s6 + $0x4a4] ss:$16 sps:$4 sm:$0xff]  }
  0x99   : > { %1947 = vmatprep.mubr.bf16.mxu0 %v2433_v34  ;;  %2119 = vmatprep.mubr.bf16.mxu1 %v2433_v34  ;;  %v3030_v34 = vld [vmem:[%s3473_s6 + $0x4a8] ss:$16 sps:$4 sm:$0xff]  }
  0x9b   : > { %1918 = vmatpush1.bf16.msra.mxu0 %v2907_v10  ;;  %2090 = vmatpush1.bf16.msra.mxu1 %v2910_v11  ;;  %v2997_v10 = vld [vmem:[%s3473_s6 + $0x400] ss:$16 sps:$4 sm:$0xff]   ;;  %v3000_v11 = vld [vmem:[%s3473_s6 + $0x408] ss:$16 sps:$4 sm:$0xff]  }
  0x9c   : > { %1919 = vmatprep.subr.bf16.mxu0 %v2915_v12  ;;  %2091 = vmatprep.subr.bf16.mxu1 %v2918_v13  ;;  %v3005_v12 = vld [vmem:[%s3473_s6 + $0x424] ss:$16 sps:$4 sm:$0xff]   ;;  %v3008_v13 = vld [vmem:[%s3473_s6 + $0x42c] ss:$16 sps:$4 sm:$0xff]  }
  0x9f   : > { %1920 = vmatpush1.bf16.msra.mxu0 %v2913_v14  ;;  %2092 = vmatpush1.bf16.msra.mxu1 %v2916_v15  ;;  %v3644_v14 = vld [vmem:[%s3819_s0 + $0x10] sm:$0xff] }
  0xa0   : > { %1921 = vmatprep.subr.bf16.mxu0 %v2921_v16  ;;  %2093 = vmatprep.subr.bf16.mxu1 %v2924_v17  ;;  %v3649_v15 = vld [vmem:[%s3819_s0 + $0x30] sm:$0xff] }
  0xa1   : > { %v2435_v16 = vcombine.high %v3644_v14, %v3649_v15  ;;  %v3003_v17 = vld [vmem:[%s3473_s6 + $0x420] ss:$16 sps:$4 sm:$0xff]  }
  0xa3   : > { %1922 = vmatpush1.bf16.msra.mxu0 %v2919_v18  ;;  %2094 = vmatpush1.bf16.msra.mxu1 %v2922_v19  ;;  %v3006_v18 = vld [vmem:[%s3473_s6 + $0x428] ss:$16 sps:$4 sm:$0xff]   ;;  %v3011_v19 = vld [vmem:[%s3473_s6 + $0x444] ss:$16 sps:$4 sm:$0xff]  }
  0xa4   : > { %1923 = vmatprep.subr.bf16.mxu0 %v2927_v20  ;;  %2095 = vmatprep.subr.bf16.mxu1 %v2930_v21  ;;  %v3014_v20 = vld [vmem:[%s3473_s6 + $0x44c] ss:$16 sps:$4 sm:$0xff]   ;;  %v3009_v21 = vld [vmem:[%s3473_s6 + $0x440] ss:$16 sps:$4 sm:$0xff]  }
  0xa7   : > { %1924 = vmatpush1.bf16.msra.mxu0 %v2925_v22  ;;  %2096 = vmatpush1.bf16.msra.mxu1 %v2928_v23  ;;  %v3012_v22 = vld [vmem:[%s3473_s6 + $0x448] ss:$16 sps:$4 sm:$0xff]   ;;  %v3017_v23 = vld [vmem:[%s3473_s6 + $0x464] ss:$16 sps:$4 sm:$0xff]  }
  0xa8   : > { %1925 = vmatprep.subr.bf16.mxu0 %v2933_v24  ;;  %2097 = vmatprep.subr.bf16.mxu1 %v2936_v25  ;;  %v3020_v24 = vld [vmem:[%s3473_s6 + $0x46c] ss:$16 sps:$4 sm:$0xff]   ;;  %v3015_v25 = vld [vmem:[%s3473_s6 + $0x460] ss:$16 sps:$4 sm:$0xff]  }
  0xab   : > { %1926 = vmatpush1.bf16.msra.mxu0 %v2931_v26  ;;  %2098 = vmatpush1.bf16.msra.mxu1 %v2934_v27  ;;  %v3018_v26 = vld [vmem:[%s3473_s6 + $0x468] ss:$16 sps:$4 sm:$0xff]   ;;  %v3023_v27 = vld [vmem:[%s3473_s6 + $0x484] ss:$16 sps:$4 sm:$0xff]  }
  0xac   : > { %1927 = vmatprep.subr.bf16.mxu0 %v2939_v28  ;;  %2099 = vmatprep.subr.bf16.mxu1 %v2942_v29  ;;  %v3026_v28 = vld [vmem:[%s3473_s6 + $0x48c] ss:$16 sps:$4 sm:$0xff]   ;;  %v3021_v29 = vld [vmem:[%s3473_s6 + $0x480] ss:$16 sps:$4 sm:$0xff]  }
  0xaf   : > { %1928 = vmatpush1.bf16.msra.mxu0 %v2937_v32  ;;  %2100 = vmatpush1.bf16.msra.mxu1 %v2940_v33  ;;  %v3032_v32 = vld [vmem:[%s3473_s6 + $0x4ac] ss:$16 sps:$4 sm:$0xff]   ;;  %v3027_v33 = vld [vmem:[%s3473_s6 + $0x4a0] ss:$16 sps:$4 sm:$0xff]  }
  0xb0   : > { %1929 = vmatprep.subr.bf16.mxu0 %v2945_v35  ;;  %2101 = vmatprep.subr.bf16.mxu1 %v2948_v36  ;;  %v3035_v35 = vld [vmem:[%s3473_s6 + $0x4c4] ss:$16 sps:$4 sm:$0xff]   ;;  %v3038_v36 = vld [vmem:[%s3473_s6 + $0x4cc] ss:$16 sps:$4 sm:$0xff]  }
  0xb3   : > { %1930 = vmatpush1.bf16.msra.mxu0 %v2943_v37  ;;  %2102 = vmatpush1.bf16.msra.mxu1 %v2946_v38  ;;  %v3033_v37 = vld [vmem:[%s3473_s6 + $0x4c0] ss:$16 sps:$4 sm:$0xff]   ;;  %v3036_v38 = vld [vmem:[%s3473_s6 + $0x4c8] ss:$16 sps:$4 sm:$0xff]  }
  0xb4   : > { %1931 = vmatprep.subr.bf16.mxu0 %v2951_v39  ;;  %2103 = vmatprep.subr.bf16.mxu1 %v2954_v40  ;;  %v3041_v39 = vld [vmem:[%s3473_s6 + $0x4e4] ss:$16 sps:$4 sm:$0xff]   ;;  %v3044_v40 = vld [vmem:[%s3473_s6 + $0x4ec] ss:$16 sps:$4 sm:$0xff]  }
  0xb7   : > { %1932 = vmatpush1.bf16.msra.mxu0 %v2949_v41  ;;  %2104 = vmatpush1.bf16.msra.mxu1 %v2952_v42  ;;  %v3039_v41 = vld [vmem:[%s3473_s6 + $0x4e0] ss:$16 sps:$4 sm:$0xff]   ;;  %v3042_v42 = vld [vmem:[%s3473_s6 + $0x4e8] ss:$16 sps:$4 sm:$0xff]  }
  0xb8   : > { %1933 = vmatprep.subr.bf16.mxu0 %v2957_v43  ;;  %2105 = vmatprep.subr.bf16.mxu1 %v2960_v44  ;;  %v3047_v43 = vld [vmem:[%s3473_s6 + $0x504] ss:$16 sps:$4 sm:$0xff]   ;;  %v3050_v44 = vld [vmem:[%s3473_s6 + $0x50c] ss:$16 sps:$4 sm:$0xff]  }
  0xbb   : > { %1934 = vmatpush1.bf16.msra.mxu0 %v2955_v45  ;;  %2106 = vmatpush1.bf16.msra.mxu1 %v2958_v46  ;;  %v3045_v45 = vld [vmem:[%s3473_s6 + $0x500] ss:$16 sps:$4 sm:$0xff]   ;;  %v3048_v46 = vld [vmem:[%s3473_s6 + $0x508] ss:$16 sps:$4 sm:$0xff]  }
  0xbc   : > { %1935 = vmatprep.subr.bf16.mxu0 %v2963_v47  ;;  %2107 = vmatprep.subr.bf16.mxu1 %v2966_v48  ;;  %v3053_v47 = vld [vmem:[%s3473_s6 + $0x524] ss:$16 sps:$4 sm:$0xff]   ;;  %v3056_v48 = vld [vmem:[%s3473_s6 + $0x52c] ss:$16 sps:$4 sm:$0xff]  }
  0xbf   : > { %1936 = vmatpush1.bf16.msra.mxu0 %v2961_v49  ;;  %2108 = vmatpush1.bf16.msra.mxu1 %v2964_v50  ;;  %v3051_v49 = vld [vmem:[%s3473_s6 + $0x520] ss:$16 sps:$4 sm:$0xff]   ;;  %v3054_v50 = vld [vmem:[%s3473_s6 + $0x528] ss:$16 sps:$4 sm:$0xff]  }
  0xc0   : > { %1937 = vmatprep.subr.bf16.mxu0 %v2969_v51  ;;  %2109 = vmatprep.subr.bf16.mxu1 %v2972_v52  ;;  %v3059_v51 = vld [vmem:[%s3473_s6 + $0x544] ss:$16 sps:$4 sm:$0xff]   ;;  %v3062_v52 = vld [vmem:[%s3473_s6 + $0x54c] ss:$16 sps:$4 sm:$0xff]  }
  0xc3   : > { %1938 = vmatpush1.bf16.msra.mxu0 %v2967_v53  ;;  %2110 = vmatpush1.bf16.msra.mxu1 %v2970_v54  ;;  %v3057_v53 = vld [vmem:[%s3473_s6 + $0x540] ss:$16 sps:$4 sm:$0xff]   ;;  %v3060_v54 = vld [vmem:[%s3473_s6 + $0x548] ss:$16 sps:$4 sm:$0xff]  }
  0xc4   : > { %1939 = vmatprep.subr.bf16.mxu0 %v2975_v55  ;;  %2111 = vmatprep.subr.bf16.mxu1 %v2978_v56  ;;  %v3065_v55 = vld [vmem:[%s3473_s6 + $0x564] ss:$16 sps:$4 sm:$0xff]   ;;  %v3068_v56 = vld [vmem:[%s3473_s6 + $0x56c] ss:$16 sps:$4 sm:$0xff]  }
  0xc7   : > { %1940 = vmatpush1.bf16.msra.mxu0 %v2973_v57  ;;  %2112 = vmatpush1.bf16.msra.mxu1 %v2976_v58  ;;  %v3063_v57 = vld [vmem:[%s3473_s6 + $0x560] ss:$16 sps:$4 sm:$0xff]   ;;  %v3066_v58 = vld [vmem:[%s3473_s6 + $0x568] ss:$16 sps:$4 sm:$0xff]  }
  0xc8   : > { %1941 = vmatprep.subr.bf16.mxu0 %v2981_v59  ;;  %2113 = vmatprep.subr.bf16.mxu1 %v2984_v60  ;;  %v3071_v59 = vld [vmem:[%s3473_s6 + $0x584] ss:$16 sps:$4 sm:$0xff]   ;;  %v3074_v60 = vld [vmem:[%s3473_s6 + $0x58c] ss:$16 sps:$4 sm:$0xff]  }
  0xcb   : > { %1942 = vmatpush1.bf16.msra.mxu0 %v2979_v61  ;;  %2114 = vmatpush1.bf16.msra.mxu1 %v2982_v62  ;;  %v3069_v61 = vld [vmem:[%s3473_s6 + $0x580] ss:$16 sps:$4 sm:$0xff]   ;;  %v3072_v62 = vld [vmem:[%s3473_s6 + $0x588] ss:$16 sps:$4 sm:$0xff]  }
  0xcc   : > { %1943 = vmatprep.subr.bf16.mxu0 %v2987_v63  ;;  %2115 = vmatprep.subr.bf16.mxu1 %v2990_v0  ;;  %v3077_v63 = vld [vmem:[%s3473_s6 + $0x5a4] ss:$16 sps:$4 sm:$0xff]   ;;  %v3080_v0 = vld [vmem:[%s3473_s6 + $0x5ac] ss:$16 sps:$4 sm:$0xff]  }
  0xcf   : > { %1944 = vmatpush1.bf16.msra.mxu0 %v2985_v1  ;;  %2116 = vmatpush1.bf16.msra.mxu1 %v2988_v2  ;;  %v3075_v1 = vld [vmem:[%s3473_s6 + $0x5a0] ss:$16 sps:$4 sm:$0xff]   ;;  %v3078_v2 = vld [vmem:[%s3473_s6 + $0x5a8] ss:$16 sps:$4 sm:$0xff]  }
  0xd0   : > { %1945 = vmatprep.subr.bf16.mxu0 %v2993_v3  ;;  %2117 = vmatprep.subr.bf16.mxu1 %v2996_v4  ;;  %v3083_v3 = vld [vmem:[%s3473_s6 + $0x5c4] ss:$16 sps:$4 sm:$0xff]   ;;  %v3086_v4 = vld [vmem:[%s3473_s6 + $0x5cc] ss:$16 sps:$4 sm:$0xff]  }
  0xd3   : > { %1946 = vmatpush1.bf16.msra.mxu0 %v2991_v5  ;;  %2118 = vmatpush1.bf16.msra.mxu1 %v2994_v6  ;;  %v3081_v5 = vld [vmem:[%s3473_s6 + $0x5c0] ss:$16 sps:$4 sm:$0xff]   ;;  %v3084_v6 = vld [vmem:[%s3473_s6 + $0x5c8] ss:$16 sps:$4 sm:$0xff]  }
  0xd4   : > { %1958 = vmatprep.subr.bf16.mxu0 %v2999_v7  ;;  %2130 = vmatprep.subr.bf16.mxu1 %v3002_v8  ;;  %v3089_v7 = vld [vmem:[%s3473_s6 + $0x5e4] ss:$16 sps:$4 sm:$0xff]   ;;  %v3092_v8 = vld [vmem:[%s3473_s6 + $0x5ec] ss:$16 sps:$4 sm:$0xff]  }
  0xd6   : > { %1948 = vmatmul.mubr.bf16.vlgmr.msra.gmra.mrb[0].mxu0 %v2432_v9  ;;  %2120 = vmatmul.mubr.bf16.vlgmr.msra.gmra.mrb[0].mxu1 %v2432_v9  ;;  %v3087_v9 = vld [vmem:[%s3473_s6 + $0x5e0] ss:$16 sps:$4 sm:$0xff]  }
  0xd7   : > { %1959 = vmatpush1.bf16.msra.mxu0 %v2997_v10  ;;  %2131 = vmatpush1.bf16.msra.mxu1 %v3000_v11  ;;  %v3090_v10 = vld [vmem:[%s3473_s6 + $0x5e8] ss:$16 sps:$4 sm:$0xff]   ;;  %v3095_v11 = vld [vmem:[%s3473_s6 + $0x604] ss:$16 sps:$4 sm:$0xff]  }
  0xd8   : > { %1960 = vmatprep.subr.bf16.mxu0 %v3005_v12  ;;  %2132 = vmatprep.subr.bf16.mxu1 %v3008_v13  ;;  %v3098_v12 = vld [vmem:[%s3473_s6 + $0x60c] ss:$16 sps:$4 sm:$0xff]   ;;  %v2434_v13 = vcombine.low %v3644_v14, %v3649_v15  ;;  %v3101_v14 = vld [vmem:[%s3473_s6 + $0x624] ss:$16 sps:$4 sm:$0xff]  }
  0xd9   : > { %1990 = vmatprep.mubr.bf16.mxu0 %v2435_v16  ;;  %2162 = vmatprep.mubr.bf16.mxu1 %v2435_v16  ;;  %v3718_v16 = vld [vmem:[%s3819_s0 + $0x18] sm:$0xff] }
  0xda   : > { %v3104_v15 = vld [vmem:[%s3473_s6 + $0x62c] ss:$16 sps:$4 sm:$0xff]  }
  0xdb   : > { %1961 = vmatpush1.bf16.msra.mxu0 %v3003_v17  ;;  %2133 = vmatpush1.bf16.msra.mxu1 %v3006_v18  ;;  %v3723_v17 = vld [vmem:[%s3819_s0 + $0x38] sm:$0xff]  ;;  %v3093_v18 = vld [vmem:[%s3473_s6 + $0x600] ss:$16 sps:$4 sm:$0xff]  }
  0xdc   : > { %1962 = vmatprep.subr.bf16.mxu0 %v3011_v19  ;;  %2134 = vmatprep.subr.bf16.mxu1 %v3014_v20  ;;  %v3096_v19 = vld [vmem:[%s3473_s6 + $0x608] ss:$16 sps:$4 sm:$0xff]   ;;  %v2437_v20 = vcombine.high %v3718_v16, %v3723_v17 }
  0xdf   : > { %1963 = vmatpush1.bf16.msra.mxu0 %v3009_v21  ;;  %2135 = vmatpush1.bf16.msra.mxu1 %v3012_v22  ;;  %v3099_v21 = vld [vmem:[%s3473_s6 + $0x620] ss:$16 sps:$4 sm:$0xff]   ;;  %v3102_v22 = vld [vmem:[%s3473_s6 + $0x628] ss:$16 sps:$4 sm:$0xff]  }
  0xe0   : > { %1964 = vmatprep.subr.bf16.mxu0 %v3017_v23  ;;  %2136 = vmatprep.subr.bf16.mxu1 %v3020_v24  ;;  %v3107_v23 = vld [vmem:[%s3473_s6 + $0x644] ss:$16 sps:$4 sm:$0xff]   ;;  %v3110_v24 = vld [vmem:[%s3473_s6 + $0x64c] ss:$16 sps:$4 sm:$0xff]  }
  0xe3   : > { %1965 = vmatpush1.bf16.msra.mxu0 %v3015_v25  ;;  %2137 = vmatpush1.bf16.msra.mxu1 %v3018_v26  ;;  %v3105_v25 = vld [vmem:[%s3473_s6 + $0x640] ss:$16 sps:$4 sm:$0xff]   ;;  %v3108_v26 = vld [vmem:[%s3473_s6 + $0x648] ss:$16 sps:$4 sm:$0xff]  }
  0xe4   : > { %1966 = vmatprep.subr.bf16.mxu0 %v3023_v27  ;;  %2138 = vmatprep.subr.bf16.mxu1 %v3026_v28  ;;  %v3113_v27 = vld [vmem:[%s3473_s6 + $0x664] ss:$16 sps:$4 sm:$0xff]   ;;  %v3116_v28 = vld [vmem:[%s3473_s6 + $0x66c] ss:$16 sps:$4 sm:$0xff]  }
  0xe7   : > { %1967 = vmatpush1.bf16.msra.mxu0 %v3021_v29  ;;  %2139 = vmatpush1.bf16.msra.mxu1 %v3024_v30  ;;  %v3111_v29 = vld [vmem:[%s3473_s6 + $0x660] ss:$16 sps:$4 sm:$0xff]   ;;  %v3114_v30 = vld [vmem:[%s3473_s6 + $0x668] ss:$16 sps:$4 sm:$0xff]  }
  0xe8   : > { %1968 = vmatprep.subr.bf16.mxu0 %v3029_v31  ;;  %2140 = vmatprep.subr.bf16.mxu1 %v3032_v32  ;;  %v3119_v31 = vld [vmem:[%s3473_s6 + $0x684] ss:$16 sps:$4 sm:$0xff]   ;;  %v3122_v32 = vld [vmem:[%s3473_s6 + $0x68c] ss:$16 sps:$4 sm:$0xff]  }
  0xeb   : > { %1969 = vmatpush1.bf16.msra.mxu0 %v3027_v33  ;;  %2141 = vmatpush1.bf16.msra.mxu1 %v3030_v34  ;;  %v3117_v33 = vld [vmem:[%s3473_s6 + $0x680] ss:$16 sps:$4 sm:$0xff]   ;;  %v3120_v34 = vld [vmem:[%s3473_s6 + $0x688] ss:$16 sps:$4 sm:$0xff]  }
  0xec   : > { %1970 = vmatprep.subr.bf16.mxu0 %v3035_v35  ;;  %2142 = vmatprep.subr.bf16.mxu1 %v3038_v36  ;;  %v3125_v35 = vld [vmem:[%s3473_s6 + $0x6a4] ss:$16 sps:$4 sm:$0xff]   ;;  %v3128_v36 = vld [vmem:[%s3473_s6 + $0x6ac] ss:$16 sps:$4 sm:$0xff]  }
  0xef   : > { %1971 = vmatpush1.bf16.msra.mxu0 %v3033_v37  ;;  %2143 = vmatpush1.bf16.msra.mxu1 %v3036_v38  ;;  %v3123_v37 = vld [vmem:[%s3473_s6 + $0x6a0] ss:$16 sps:$4 sm:$0xff]   ;;  %v3126_v38 = vld [vmem:[%s3473_s6 + $0x6a8] ss:$16 sps:$4 sm:$0xff]  }
  0xf0   : > { %1972 = vmatprep.subr.bf16.mxu0 %v3041_v39  ;;  %2144 = vmatprep.subr.bf16.mxu1 %v3044_v40  ;;  %v3131_v39 = vld [vmem:[%s3473_s6 + $0x6c4] ss:$16 sps:$4 sm:$0xff]   ;;  %v3134_v40 = vld [vmem:[%s3473_s6 + $0x6cc] ss:$16 sps:$4 sm:$0xff]  }
  0xf3   : > { %1973 = vmatpush1.bf16.msra.mxu0 %v3039_v41  ;;  %2145 = vmatpush1.bf16.msra.mxu1 %v3042_v42  ;;  %v3129_v41 = vld [vmem:[%s3473_s6 + $0x6c0] ss:$16 sps:$4 sm:$0xff]   ;;  %v3132_v42 = vld [vmem:[%s3473_s6 + $0x6c8] ss:$16 sps:$4 sm:$0xff]  }
  0xf4   : > { %1974 = vmatprep.subr.bf16.mxu0 %v3047_v43  ;;  %2146 = vmatprep.subr.bf16.mxu1 %v3050_v44  ;;  %v3137_v43 = vld [vmem:[%s3473_s6 + $0x6e4] ss:$16 sps:$4 sm:$0xff]   ;;  %v3140_v44 = vld [vmem:[%s3473_s6 + $0x6ec] ss:$16 sps:$4 sm:$0xff]  }
  0xf7   : > { %1975 = vmatpush1.bf16.msra.mxu0 %v3045_v45  ;;  %2147 = vmatpush1.bf16.msra.mxu1 %v3048_v46  ;;  %v3135_v45 = vld [vmem:[%s3473_s6 + $0x6e0] ss:$16 sps:$4 sm:$0xff]   ;;  %v3138_v46 = vld [vmem:[%s3473_s6 + $0x6e8] ss:$16 sps:$4 sm:$0xff]  }
  0xf8   : > { %1976 = vmatprep.subr.bf16.mxu0 %v3053_v47  ;;  %2148 = vmatprep.subr.bf16.mxu1 %v3056_v48  ;;  %v3143_v47 = vld [vmem:[%s3473_s6 + $0x704] ss:$16 sps:$4 sm:$0xff]   ;;  %v3146_v48 = vld [vmem:[%s3473_s6 + $0x70c] ss:$16 sps:$4 sm:$0xff]  }
  0xfb   : > { %1977 = vmatpush1.bf16.msra.mxu0 %v3051_v49  ;;  %2149 = vmatpush1.bf16.msra.mxu1 %v3054_v50  ;;  %v3141_v49 = vld [vmem:[%s3473_s6 + $0x700] ss:$16 sps:$4 sm:$0xff]   ;;  %v3144_v50 = vld [vmem:[%s3473_s6 + $0x708] ss:$16 sps:$4 sm:$0xff]  }
  0xfc   : > { %1978 = vmatprep.subr.bf16.mxu0 %v3059_v51  ;;  %2150 = vmatprep.subr.bf16.mxu1 %v3062_v52  ;;  %v3149_v51 = vld [vmem:[%s3473_s6 + $0x724] ss:$16 sps:$4 sm:$0xff]   ;;  %v3152_v52 = vld [vmem:[%s3473_s6 + $0x72c] ss:$16 sps:$4 sm:$0xff]  }
  0xff   : > { %1979 = vmatpush1.bf16.msra.mxu0 %v3057_v53  ;;  %2151 = vmatpush1.bf16.msra.mxu1 %v3060_v54  ;;  %v3147_v53 = vld [vmem:[%s3473_s6 + $0x720] ss:$16 sps:$4 sm:$0xff]   ;;  %v3150_v54 = vld [vmem:[%s3473_s6 + $0x728] ss:$16 sps:$4 sm:$0xff]  }
 0x100   : > { %1980 = vmatprep.subr.bf16.mxu0 %v3065_v55  ;;  %2152 = vmatprep.subr.bf16.mxu1 %v3068_v56  ;;  %v3155_v55 = vld [vmem:[%s3473_s6 + $0x744] ss:$16 sps:$4 sm:$0xff]   ;;  %v3158_v56 = vld [vmem:[%s3473_s6 + $0x74c] ss:$16 sps:$4 sm:$0xff]  }
 0x103   : > { %1981 = vmatpush1.bf16.msra.mxu0 %v3063_v57  ;;  %2153 = vmatpush1.bf16.msra.mxu1 %v3066_v58  ;;  %v3153_v57 = vld [vmem:[%s3473_s6 + $0x740] ss:$16 sps:$4 sm:$0xff]   ;;  %v3156_v58 = vld [vmem:[%s3473_s6 + $0x748] ss:$16 sps:$4 sm:$0xff]  }
 0x104   : > { %1982 = vmatprep.subr.bf16.mxu0 %v3071_v59  ;;  %2154 = vmatprep.subr.bf16.mxu1 %v3074_v60  ;;  %v3161_v59 = vld [vmem:[%s3473_s6 + $0x764] ss:$16 sps:$4 sm:$0xff]   ;;  %v3164_v60 = vld [vmem:[%s3473_s6 + $0x76c] ss:$16 sps:$4 sm:$0xff]  }
 0x107   : > { %1983 = vmatpush1.bf16.msra.mxu0 %v3069_v61  ;;  %2155 = vmatpush1.bf16.msra.mxu1 %v3072_v62  ;;  %v3159_v61 = vld [vmem:[%s3473_s6 + $0x760] ss:$16 sps:$4 sm:$0xff]   ;;  %v3162_v62 = vld [vmem:[%s3473_s6 + $0x768] ss:$16 sps:$4 sm:$0xff]  }
 0x108   : > { %1984 = vmatprep.subr.bf16.mxu0 %v3077_v63  ;;  %2156 = vmatprep.subr.bf16.mxu1 %v3080_v0  ;;  %v3167_v63 = vld [vmem:[%s3473_s6 + $0x784] ss:$16 sps:$4 sm:$0xff]   ;;  %v3170_v0 = vld [vmem:[%s3473_s6 + $0x78c] ss:$16 sps:$4 sm:$0xff]  }
 0x10b   : > { %1985 = vmatpush1.bf16.msra.mxu0 %v3075_v1  ;;  %2157 = vmatpush1.bf16.msra.mxu1 %v3078_v2  ;;  %v3165_v1 = vld [vmem:[%s3473_s6 + $0x780] ss:$16 sps:$4 sm:$0xff]   ;;  %v3168_v2 = vld [vmem:[%s3473_s6 + $0x788] ss:$16 sps:$4 sm:$0xff]  }
 0x10c   : > { %1986 = vmatprep.subr.bf16.mxu0 %v3083_v3  ;;  %2158 = vmatprep.subr.bf16.mxu1 %v3086_v4  ;;  %v3173_v3 = vld [vmem:[%s3473_s6 + $0x7a4] ss:$16 sps:$4 sm:$0xff]   ;;  %v3176_v4 = vld [vmem:[%s3473_s6 + $0x7ac] ss:$16 sps:$4 sm:$0xff]  }
 0x10f   : > { %1987 = vmatpush1.bf16.msra.mxu0 %v3081_v5  ;;  %2159 = vmatpush1.bf16.msra.mxu1 %v3084_v6  ;;  %v3171_v5 = vld [vmem:[%s3473_s6 + $0x7a0] ss:$16 sps:$4 sm:$0xff]   ;;  %v3174_v6 = vld [vmem:[%s3473_s6 + $0x7a8] ss:$16 sps:$4 sm:$0xff]  }
 0x110   : > { %1988 = vmatprep.subr.bf16.mxu0 %v3089_v7  ;;  %2160 = vmatprep.subr.bf16.mxu1 %v3092_v8  ;;  %v3179_v7 = vld [vmem:[%s3473_s6 + $0x7c4] ss:$16 sps:$4 sm:$0xff]   ;;  %v3182_v8 = vld [vmem:[%s3473_s6 + $0x7cc] ss:$16 sps:$4 sm:$0xff]  }
 0x113   : > { %1989 = vmatpush1.bf16.msra.mxu0 %v3087_v9  ;;  %2161 = vmatpush1.bf16.msra.mxu1 %v3090_v10  ;;  %v3177_v9 = vld [vmem:[%s3473_s6 + $0x7c0] ss:$16 sps:$4 sm:$0xff]   ;;  %v3180_v10 = vld [vmem:[%s3473_s6 + $0x7c8] ss:$16 sps:$4 sm:$0xff]  }
 0x114   : > { %2001 = vmatprep.subr.bf16.mxu0 %v3095_v11  ;;  %2173 = vmatprep.subr.bf16.mxu1 %v3098_v12  ;;  %v3185_v11 = vld [vmem:[%s3473_s6 + $0x7e4] ss:$16 sps:$4 sm:$0xff]   ;;  %v3188_v12 = vld [vmem:[%s3473_s6 + $0x7ec] ss:$16 sps:$4 sm:$0xff]  }
 0x116   : > { %1991 = vmatmul.mubr.bf16.vlgmr.msra.gmra.mrb[0].mxu0 %v2434_v13  ;;  %2163 = vmatmul.mubr.bf16.vlgmr.msra.gmra.mrb[0].mxu1 %v2434_v13  ;;  %v3183_v13 = vld [vmem:[%s3473_s6 + $0x7e0] ss:$16 sps:$4 sm:$0xff]  }
 0x117   : > { %2002 = vmatpush1.bf16.msra.mxu0 %v3093_v18  ;;  %2174 = vmatpush1.bf16.msra.mxu1 %v3096_v19  ;;  %v3186_v18 = vld [vmem:[%s3473_s6 + $0x7e8] ss:$16 sps:$4 sm:$0xff]   ;;  %v2436_v19 = vcombine.low %v3718_v16, %v3723_v17  ;;  %s2429_s6 = sshll.u32 %s3469_s12, 5 }
 0x118   : > { %2003 = vmatprep.subr.bf16.mxu0 %v3101_v14  ;;  %2175 = vmatprep.subr.bf16.mxu1 %v3104_v15  ;;  %v532_v14 = vlaneseq }
 0x119   : > { %2033 = vmatprep.mubr.bf16.mxu0 %v2437_v20  ;;  %2205 = vmatprep.mubr.bf16.mxu1 %v2437_v20 }
 0x11a   : > { %v533_v15 = vshrl.u32 %v532_v14, 7 }
 0x11b   : > { %2004 = vmatpush1.bf16.msra.mxu0 %v3099_v21  ;;  %2176 = vmatpush1.bf16.msra.mxu1 %v3102_v22  ;;  %v530_v22 = vld [vmem:[%s3481_s20] sm:$0xf]  ;;  %s254_s20 = scalar_lea.vmem [#allocation6], %s2429_s6 }
 0x11c   : > { %2005 = vmatprep.subr.bf16.mxu0 %v3107_v23  ;;  %2177 = vmatprep.subr.bf16.mxu1 %v3110_v24  ;;  %v534_v20 = vsub.s32 0, %v533_v15  ;;  %v542_v21 = vsub.s32 2, %v533_v15  ;;  %v538_v23 = vsub.s32 1, %v533_v15  ;;  %v546_v24 = vsub.s32 3, %v533_v15 }
 0x11f   : > { %2006 = vmatpush1.bf16.msra.mxu0 %v3105_v25  ;;  %2178 = vmatpush1.bf16.msra.mxu1 %v3108_v26  ;;  %v535_v25 = vrot.slane %v530_v22, %v534_v20  ;;  %v543_v26 = vrot.slane %v530_v22, %v542_v21 }
 0x120   : > { %2007 = vmatprep.subr.bf16.mxu0 %v3113_v27  ;;  %2179 = vmatprep.subr.bf16.mxu1 %v3116_v28  ;;  %v539_v27 = vrot.slane %v530_v22, %v538_v23  ;;  %v547_v28 = vrot.slane %v530_v22, %v546_v24 }
 0x123   : > { %2008 = vmatpush1.bf16.msra.mxu0 %v3111_v29  ;;  %2180 = vmatpush1.bf16.msra.mxu1 %v3114_v30 }
 0x124   : > { %2009 = vmatprep.subr.bf16.mxu0 %v3119_v31  ;;  %2181 = vmatprep.subr.bf16.mxu1 %v3122_v32 }
 0x127   : > { %2010 = vmatpush1.bf16.msra.mxu0 %v3117_v33  ;;  %2182 = vmatpush1.bf16.msra.mxu1 %v3120_v34 }
 0x128   : > { %2011 = vmatprep.subr.bf16.mxu0 %v3125_v35  ;;  %2183 = vmatprep.subr.bf16.mxu1 %v3128_v36 }
 0x12b   : > { %2012 = vmatpush1.bf16.msra.mxu0 %v3123_v37  ;;  %2184 = vmatpush1.bf16.msra.mxu1 %v3126_v38 }
 0x12c   : > { %2013 = vmatprep.subr.bf16.mxu0 %v3131_v39  ;;  %2185 = vmatprep.subr.bf16.mxu1 %v3134_v40 }
 0x12f   : > { %2014 = vmatpush1.bf16.msra.mxu0 %v3129_v41  ;;  %2186 = vmatpush1.bf16.msra.mxu1 %v3132_v42 }
 0x130   : > { %2015 = vmatprep.subr.bf16.mxu0 %v3137_v43  ;;  %2187 = vmatprep.subr.bf16.mxu1 %v3140_v44 }
 0x133   : > { %2016 = vmatpush1.bf16.msra.mxu0 %v3135_v45  ;;  %2188 = vmatpush1.bf16.msra.mxu1 %v3138_v46 }
 0x134   : > { %2017 = vmatprep.subr.bf16.mxu0 %v3143_v47  ;;  %2189 = vmatprep.subr.bf16.mxu1 %v3146_v48 }
 0x137   : > { %2018 = vmatpush1.bf16.msra.mxu0 %v3141_v49  ;;  %2190 = vmatpush1.bf16.msra.mxu1 %v3144_v50 }
 0x138   : > { %2019 = vmatprep.subr.bf16.mxu0 %v3149_v51  ;;  %2191 = vmatprep.subr.bf16.mxu1 %v3152_v52 }
 0x13b   : > { %2020 = vmatpush1.bf16.msra.mxu0 %v3147_v53  ;;  %2192 = vmatpush1.bf16.msra.mxu1 %v3150_v54 }
 0x13c   : > { %2021 = vmatprep.subr.bf16.mxu0 %v3155_v55  ;;  %2193 = vmatprep.subr.bf16.mxu1 %v3158_v56 }
 0x13f   : > { %2022 = vmatpush1.bf16.msra.mxu0 %v3153_v57  ;;  %2194 = vmatpush1.bf16.msra.mxu1 %v3156_v58 }
 0x140   : > { %2023 = vmatprep.subr.bf16.mxu0 %v3161_v59  ;;  %2195 = vmatprep.subr.bf16.mxu1 %v3164_v60 }
 0x143   : > { %2024 = vmatpush1.bf16.msra.mxu0 %v3159_v61  ;;  %2196 = vmatpush1.bf16.msra.mxu1 %v3162_v62 }
 0x144   : > { %2025 = vmatprep.subr.bf16.mxu0 %v3167_v63  ;;  %2197 = vmatprep.subr.bf16.mxu1 %v3170_v0 }
 0x147   : > { %2026 = vmatpush1.bf16.msra.mxu0 %v3165_v1  ;;  %2198 = vmatpush1.bf16.msra.mxu1 %v3168_v2 }
 0x148   : > { %2027 = vmatprep.subr.bf16.mxu0 %v3173_v3  ;;  %2199 = vmatprep.subr.bf16.mxu1 %v3176_v4 }
 0x14b   : > { %2028 = vmatpush1.bf16.msra.mxu0 %v3171_v5  ;;  %2200 = vmatpush1.bf16.msra.mxu1 %v3174_v6 }
 0x14c   : > { %2029 = vmatprep.subr.bf16.mxu0 %v3179_v7  ;;  %2201 = vmatprep.subr.bf16.mxu1 %v3182_v8 }
 0x14f   : > { %2030 = vmatpush1.bf16.msra.mxu0 %v3177_v9  ;;  %2202 = vmatpush1.bf16.msra.mxu1 %v3180_v10 }
 0x150   : > { %2031 = vmatprep.subr.bf16.mxu0 %v3185_v11  ;;  %2203 = vmatprep.subr.bf16.mxu1 %v3188_v12 }
 0x153   : > { %2032 = vmatpush1.bf16.msra.mxu0 %v3183_v13  ;;  %2204 = vmatpush1.bf16.msra.mxu1 %v3186_v18 }
 0x156   : > { %2034 = vmatmul.mubr.bf16.vlgmr.msra.gmra.mrb[0].mxu0 %v2436_v19  ;;  %2206 = vmatmul.mubr.bf16.vlgmr.msra.gmra.mrb[0].mxu1 %v2436_v19 }
 0x229   : > { %v2035_v29 = vpop.f32.mrb[0].mxu0  ;;  %v2207_v30 = vpop.f32.mrb[0].mxu1 }
 0x22a   : > { %v2710_v31 = vadd.f32 %v2035_v29, %v535_v25  ;;  %v2714_v16 = vadd.f32 %v2207_v30, %v543_v26  ;;  %v2037_v17 = vpop.f32.mrb[1].mxu0  ;;  %v2209_v32 = vpop.f32.mrb[1].mxu1 }
 0x22b   : > { %v2711_v33 = vadd.f32 %v2037_v17, %v539_v27  ;;  %v2715_v34 = vadd.f32 %v2209_v32, %v547_v28  ;;  %v2039_v35 = vpop.f32.mrb[2].mxu0  ;;  %v2211_v36 = vpop.f32.mrb[2].mxu1 }
 0x22c   : > { %vm2216_vm0 = vcmp.gt.f32.partialorder %v2710_v31, 0.0  ;;  %v2224_v37 = vmul.f32 0.1, %v2710_v31  ;;  %vm2218_vm1 = vcmp.gt.f32.partialorder %v2714_v16, 0.0  ;;  %v2226_v38 = vmul.f32 0.1, %v2714_v16 }
 0x22d   : > { %vm2217_vm2 = vcmp.gt.f32.partialorder %v2711_v33, 0.0  ;;  %v2225_v39 = vmul.f32 0.1, %v2711_v33  ;;  %vm2219_vm3 = vcmp.gt.f32.partialorder %v2715_v34, 0.0  ;;  %v2227_v40 = vmul.f32 0.1, %v2715_v34 }
 0x22e   : > { %v2232_v41 = vsel %vm2216_vm0, %v2710_v31, %v2224_v37  ;;  %v2234_v42 = vsel %vm2218_vm1, %v2714_v16, %v2226_v38  ;;  %v2712_v43 = vadd.f32 %v2039_v35, %v535_v25  ;;  %v2716_v44 = vadd.f32 %v2211_v36, %v543_v26  ;;  %v2041_v45 = vpop.f32.mrb[3].mxu0  ;;  %v2213_v46 = vpop.f32.mrb[3].mxu1 }
 0x22f   : > { %v2233_v47 = vsel %vm2217_vm2, %v2711_v33, %v2225_v39  ;;  %v2235_v48 = vsel %vm2219_vm3, %v2715_v34, %v2227_v40  ;;  %v2713_v49 = vadd.f32 %v2041_v45, %v539_v27  ;;  %v2717_v50 = vadd.f32 %v2213_v46, %v547_v28 }
 0x230   : > { %v2705_v51 = vpack.c.bf16 %v2233_v47, %v2232_v41  ;;  %v2706_v52 = vpack.c.bf16 %v2235_v48, %v2234_v42  ;;  %vm2220_vm4 = vcmp.gt.f32.partialorder %v2712_v43, 0.0  ;;  %v2228_v53 = vmul.f32 0.1, %v2712_v43 }
 0x231   : > { %vm2222_vm5 = vcmp.gt.f32.partialorder %v2716_v44, 0.0  ;;  %v2230_v54 = vmul.f32 0.1, %v2716_v44  ;;  %vm2221_vm6 = vcmp.gt.f32.partialorder %v2713_v49, 0.0  ;;  %v2229_v55 = vmul.f32 0.1, %v2713_v49 }
 0x232   : > { %2264 = vst [vmem:[%s254_s20] sm:$0xff] %v2705_v51  ;;  %2265 = vst [vmem:[%s254_s20 + $0x8] sm:$0xff] %v2706_v52  ;;  %v2236_v56 = vsel %vm2220_vm4, %v2712_v43, %v2228_v53  ;;  %vm2223_vm7 = vcmp.gt.f32.partialorder %v2717_v50, 0.0  ;;  %v2231_v57 = vmul.f32 0.1, %v2717_v50  ;;  %2274 = sbr.rel (!%p3832_p11) target bundleno = 576 (0x240), region = 44 }
 0x233   : > { %v2238_v58 = vsel %vm2222_vm5, %v2716_v44, %v2230_v54  ;;  %v2237_v59 = vsel %vm2221_vm6, %v2713_v49, %v2229_v55 }
 0x234   : > { %v2707_v60 = vpack.c.bf16 %v2237_v59, %v2236_v56  ;;  %v2239_v61 = vsel %vm2223_vm7, %v2717_v50, %v2231_v57 }
 0x235   : > { %v2708_v62 = vpack.c.bf16 %v2239_v61, %v2238_v58 }
 0x236   : > { %2266 = vst [vmem:[%s254_s20 + $0x10] sm:$0xff] %v2707_v60 }
 0x237   : > { %2267 = vst [vmem:[%s254_s20 + $0x18] sm:$0xff] %v2708_v62 }
 0x239   : > { %v2293_v63 = vld [vmem:[%s254_s20] sm:$0xff]  ;;  %v2295_v0 = vld [vmem:[%s254_s20 + $0x8] sm:$0xff] }
 0x23a   : > { %2294 = vst [vmem:[%s2280_s4] sm:$0xff] %v2293_v63  ;;  %2296 = vst [vmem:[%s2280_s4 + $0x8] sm:$0xff] %v2295_v0 }
 0x23d   : > { %v2297_v1 = vld [vmem:[%s254_s20 + $0x10] sm:$0xff] }
 0x23e   : > { %v2299_v2 = vld [vmem:[%s254_s20 + $0x18] sm:$0xff]  ;;  %2298 = vst [vmem:[%s2280_s4 + $0x20] sm:$0xff] %v2297_v1 }
 0x23f   : > { %2300 = vst [vmem:[%s2280_s4 + $0x28] sm:$0xff] %v2299_v2 }
 0x240 PF: > { %s19_s17 = sadd.s32 1, %s3303_s17   ;;  %s3833_s12 = smov %s3287_s13 }
 0x241   : > { %p16_p0 = scmp.ge.s32.totalorder %s19_s17, 4   ;;  %s3834_s13 = smov %s3291_s14 }
 0x242   : > { %s3835_s14 = smov %s3378_s24  ;;  %s3836_s15 = smov %s3299_s16 }
 0x243   : > { %s3837_s16 = smov %s3839_s19  ;;  %18 = sbr.rel (!%p16_p0) target bundleno = 6 (0x6), region = 111 }
 0x24a   :  { %2316 = vsyncpa [#allocation3], 1 }
 0x24b   :  { %2318 = vsyncpa [#allocation3 + $0x1], 1 }
 0x24c   :  { %2319 = vsyncpa [#allocation5], 1 }
 0x24d   :  { %2321 = vsyncpa [#allocation5 + $0x1], 1 }

// kernel: forward.3
= control target key start
LH: loop header
LB: loop body
LE: loop exit
PB: predicated region body
PF: predicated region fallthrough
CT: control target
= control target key end

     0   :  { %s3673_s12 = smov 0   ;;  %s3675_s13 = smov 0   ;;  %s4597_s0 = inlined_call_operand.vmem [shape: bf16[16,1024], index: 0, kind: input, shape index: {}]   ;;  %s4598_s1 = inlined_call_operand.vmem [shape: bf16[1024,1024], index: 1, kind: input, shape index: {}]   ;;  %s4599_s2 = inlined_call_operand.vmem [shape: f32[1,1024], index: 2, kind: input, shape index: {}]   ;;  %s4600_s3 = inlined_call_operand.vmem [shape: f32[16,1024], index: 3, kind: output, shape index: {}]  }
   0x1   :  { %s3677_s14 = smov 0   ;;  %s3679_s15 = smov 0  }
   0x2   :  { %s3681_s16 = smov 0  }
   0x3 LB: > { %s22_s17 = sadd.s32 1, %s3647_s15  ;;  %s2874_s18 = sadd.s32 4294967295, %s3651_s16   ;;  %s3651_s16 = sphi %s3681_s16, %s13_s16   ;;  %s3647_s15 = sphi %s3679_s15, %s4605_s15   ;;  %s3643_s14 = sphi %s3677_s14, %s4604_s14   ;;  %s3639_s13 = sphi %s3675_s13, %s4603_s13   ;;  %s3635_s12 = sphi %s3673_s12, %s4602_s12  }
   0x4   : > { %p23_p0 = scmp.ge.s32.totalorder %s22_s17, 2  ;;  %p65_p1 = scmp.ne.s32.totalorder %s3639_s13, %s3635_s12 }
   0x5   : > { %p66_p2 = scmp.eq.s32.totalorder %s3651_s16, 0  ;;  %p123_p4 = scmp.eq.s32.totalorder %s2874_s18, 1 }
   0x6   : > { %s4607_s17 = smov (%p23_p0, %s22_s17), 0  ;;  %s58_s20 = sadd.s32 1, %s3639_s13 }
   0x7   : > { %p67_p3 = por %p66_p2, %p65_p1  ;;  %s55_s19 = ssub.s32 %s3647_s15, %s4607_s17 }
   0x8   : > { %p56_p5 = scmp.eq.s32.totalorder %s55_s19, 0  ;;  %p3708_p6 = por %p123_p4, %p65_p1 }
   0x9   : > { %p2878_p7 = scmp.ge.s32.totalorder %s3651_s16, 2 }
   0xa   : > { %s3713_s22 = scalar_select %p56_p5, %s3639_s13, %s58_s20  }
   0xb   : > { %155 = sbr.rel (%p2878_p7) target bundleno = 150 (0x96), region = 20 }
  0x12   : > { %158 = sbr.rel (!%p67_p3) target bundleno = 150 (0x96), region = 24  ;;  %s160_s23 = sand.u32 (%p67_p3), 1, %s3639_s13  }
  0x13   : > { %s3155_s24 = sshll.u32 (%p67_p3), %s3647_s15, 4  ;;  %s2879_s25 = sshll.u32 (%p67_p3), %s160_s23, 11 }
  0x14   : > { %s3721_s28 = scalar_lea.vmem (%p67_p3), %s4598_s1, %s3155_s24  ;;  %s3726_s29 = scalar_lea.vmem (%p67_p3), [#allocation2], %s2879_s25 }
  0x15   : > { %v178_v0 = vld [vmem:[%s3721_s28] sm:$0xff] (%p67_p3)  ;;  %v180_v1 = vld [vmem:[%s3721_s28 + $0x8] sm:$0xff] (%p67_p3) }
  0x16   : > { %v182_v2 = vld [vmem:[%s3721_s28 + $0x20] sm:$0xff] (%p67_p3)  ;;  %179 = vst [vmem:[%s3726_s29] sm:$0xff] (%p67_p3), %v178_v0  ;;  %181 = vst [vmem:[%s3726_s29 + $0x8] sm:$0xff] (%p67_p3), %v180_v1  ;;  %v184_v3 = vld [vmem:[%s3721_s28 + $0x28] sm:$0xff] (%p67_p3) }
  0x17   : > { %183 = vst [vmem:[%s3726_s29 + $0x10] sm:$0xff] (%p67_p3), %v182_v2  ;;  %v186_v4 = vld [vmem:[%s3721_s28 + $0x40] sm:$0xff] (%p67_p3)  ;;  %v188_v5 = vld [vmem:[%s3721_s28 + $0x48] sm:$0xff] (%p67_p3)  ;;  %185 = vst [vmem:[%s3726_s29 + $0x18] sm:$0xff] (%p67_p3), %v184_v3 }
  0x18   : > { %187 = vst [vmem:[%s3726_s29 + $0x20] sm:$0xff] (%p67_p3), %v186_v4  ;;  %189 = vst [vmem:[%s3726_s29 + $0x28] sm:$0xff] (%p67_p3), %v188_v5  ;;  %v190_v6 = vld [vmem:[%s3721_s28 + $0x60] sm:$0xff] (%p67_p3)  ;;  %v192_v7 = vld [vmem:[%s3721_s28 + $0x68] sm:$0xff] (%p67_p3) }
  0x19   : > { %v194_v8 = vld [vmem:[%s3721_s28 + $0x80] sm:$0xff]  ;;  %191 = vst [vmem:[%s3726_s29 + $0x30] sm:$0xff] %v190_v6  ;;  %193 = vst [vmem:[%s3726_s29 + $0x38] sm:$0xff] %v192_v7  ;;  %v196_v9 = vld [vmem:[%s3721_s28 + $0x88] sm:$0xff] }
  0x1a   : > { %195 = vst [vmem:[%s3726_s29 + $0x40] sm:$0xff] %v194_v8  ;;  %v198_v10 = vld [vmem:[%s3721_s28 + $0xa0] sm:$0xff]  ;;  %v200_v11 = vld [vmem:[%s3721_s28 + $0xa8] sm:$0xff]  ;;  %197 = vst [vmem:[%s3726_s29 + $0x48] sm:$0xff] %v196_v9 }
  0x1b   : > { %199 = vst [vmem:[%s3726_s29 + $0x50] sm:$0xff] %v198_v10  ;;  %201 = vst [vmem:[%s3726_s29 + $0x58] sm:$0xff] %v200_v11  ;;  %v202_v12 = vld [vmem:[%s3721_s28 + $0xc0] sm:$0xff]  ;;  %v204_v13 = vld [vmem:[%s3721_s28 + $0xc8] sm:$0xff] }
  0x1c   : > { %v206_v14 = vld [vmem:[%s3721_s28 + $0xe0] sm:$0xff]  ;;  %203 = vst [vmem:[%s3726_s29 + $0x60] sm:$0xff] %v202_v12  ;;  %205 = vst [vmem:[%s3726_s29 + $0x68] sm:$0xff] %v204_v13  ;;  %v208_v15 = vld [vmem:[%s3721_s28 + $0xe8] sm:$0xff] }
  0x1d   : > { %207 = vst [vmem:[%s3726_s29 + $0x70] sm:$0xff] %v206_v14  ;;  %v210_v16 = vld [vmem:[%s3721_s28 + $0x100] sm:$0xff]  ;;  %v212_v17 = vld [vmem:[%s3721_s28 + $0x108] sm:$0xff]  ;;  %209 = vst [vmem:[%s3726_s29 + $0x78] sm:$0xff] %v208_v15 }
  0x1e   : > { %211 = vst [vmem:[%s3726_s29 + $0x80] sm:$0xff] %v210_v16  ;;  %213 = vst [vmem:[%s3726_s29 + $0x88] sm:$0xff] %v212_v17  ;;  %v214_v18 = vld [vmem:[%s3721_s28 + $0x120] sm:$0xff]  ;;  %v216_v19 = vld [vmem:[%s3721_s28 + $0x128] sm:$0xff] }
  0x1f   : > { %v218_v20 = vld [vmem:[%s3721_s28 + $0x140] sm:$0xff]  ;;  %215 = vst [vmem:[%s3726_s29 + $0x90] sm:$0xff] %v214_v18  ;;  %217 = vst [vmem:[%s3726_s29 + $0x98] sm:$0xff] %v216_v19  ;;  %v220_v21 = vld [vmem:[%s3721_s28 + $0x148] sm:$0xff] }
  0x20   : > { %219 = vst [vmem:[%s3726_s29 + $0xa0] sm:$0xff] %v218_v20  ;;  %v222_v22 = vld [vmem:[%s3721_s28 + $0x160] sm:$0xff]  ;;  %v224_v23 = vld [vmem:[%s3721_s28 + $0x168] sm:$0xff]  ;;  %221 = vst [vmem:[%s3726_s29 + $0xa8] sm:$0xff] %v220_v21 }
  0x21   : > { %223 = vst [vmem:[%s3726_s29 + $0xb0] sm:$0xff] %v222_v22  ;;  %225 = vst [vmem:[%s3726_s29 + $0xb8] sm:$0xff] %v224_v23  ;;  %v226_v24 = vld [vmem:[%s3721_s28 + $0x180] sm:$0xff]  ;;  %v228_v25 = vld [vmem:[%s3721_s28 + $0x188] sm:$0xff] }
  0x22   : > { %v230_v26 = vld [vmem:[%s3721_s28 + $0x1a0] sm:$0xff]  ;;  %227 = vst [vmem:[%s3726_s29 + $0xc0] sm:$0xff] %v226_v24  ;;  %229 = vst [vmem:[%s3726_s29 + $0xc8] sm:$0xff] %v228_v25  ;;  %v232_v27 = vld [vmem:[%s3721_s28 + $0x1a8] sm:$0xff] }
  0x23   : > { %231 = vst [vmem:[%s3726_s29 + $0xd0] sm:$0xff] %v230_v26  ;;  %v234_v28 = vld [vmem:[%s3721_s28 + $0x1c0] sm:$0xff]  ;;  %v236_v29 = vld [vmem:[%s3721_s28 + $0x1c8] sm:$0xff]  ;;  %233 = vst [vmem:[%s3726_s29 + $0xd8] sm:$0xff] %v232_v27 }
  0x24   : > { %235 = vst [vmem:[%s3726_s29 + $0xe0] sm:$0xff] %v234_v28  ;;  %237 = vst [vmem:[%s3726_s29 + $0xe8] sm:$0xff] %v236_v29  ;;  %v238_v30 = vld [vmem:[%s3721_s28 + $0x1e0] sm:$0xff]  ;;  %v240_v31 = vld [vmem:[%s3721_s28 + $0x1e8] sm:$0xff] }
  0x25   : > { %v242_v32 = vld [vmem:[%s3721_s28 + $0x200] sm:$0xff]  ;;  %239 = vst [vmem:[%s3726_s29 + $0xf0] sm:$0xff] %v238_v30  ;;  %241 = vst [vmem:[%s3726_s29 + $0xf8] sm:$0xff] %v240_v31  ;;  %v244_v33 = vld [vmem:[%s3721_s28 + $0x208] sm:$0xff] }
  0x26   : > { %243 = vst [vmem:[%s3726_s29 + $0x100] sm:$0xff] %v242_v32  ;;  %v246_v34 = vld [vmem:[%s3721_s28 + $0x220] sm:$0xff]  ;;  %v248_v35 = vld [vmem:[%s3721_s28 + $0x228] sm:$0xff]  ;;  %245 = vst [vmem:[%s3726_s29 + $0x108] sm:$0xff] %v244_v33 }
  0x27   : > { %247 = vst [vmem:[%s3726_s29 + $0x110] sm:$0xff] %v246_v34  ;;  %249 = vst [vmem:[%s3726_s29 + $0x118] sm:$0xff] %v248_v35  ;;  %v250_v36 = vld [vmem:[%s3721_s28 + $0x240] sm:$0xff]  ;;  %v252_v37 = vld [vmem:[%s3721_s28 + $0x248] sm:$0xff] }
  0x28   : > { %v254_v38 = vld [vmem:[%s3721_s28 + $0x260] sm:$0xff]  ;;  %251 = vst [vmem:[%s3726_s29 + $0x120] sm:$0xff] %v250_v36  ;;  %253 = vst [vmem:[%s3726_s29 + $0x128] sm:$0xff] %v252_v37  ;;  %v256_v39 = vld [vmem:[%s3721_s28 + $0x268] sm:$0xff] }
  0x29   : > { %255 = vst [vmem:[%s3726_s29 + $0x130] sm:$0xff] %v254_v38  ;;  %v258_v40 = vld [vmem:[%s3721_s28 + $0x280] sm:$0xff]  ;;  %v260_v41 = vld [vmem:[%s3721_s28 + $0x288] sm:$0xff]  ;;  %257 = vst [vmem:[%s3726_s29 + $0x138] sm:$0xff] %v256_v39 }
  0x2a   : > { %259 = vst [vmem:[%s3726_s29 + $0x140] sm:$0xff] %v258_v40  ;;  %261 = vst [vmem:[%s3726_s29 + $0x148] sm:$0xff] %v260_v41  ;;  %v262_v42 = vld [vmem:[%s3721_s28 + $0x2a0] sm:$0xff]  ;;  %v264_v43 = vld [vmem:[%s3721_s28 + $0x2a8] sm:$0xff] }
  0x2b   : > { %v266_v44 = vld [vmem:[%s3721_s28 + $0x2c0] sm:$0xff]  ;;  %263 = vst [vmem:[%s3726_s29 + $0x150] sm:$0xff] %v262_v42  ;;  %265 = vst [vmem:[%s3726_s29 + $0x158] sm:$0xff] %v264_v43  ;;  %v268_v45 = vld [vmem:[%s3721_s28 + $0x2c8] sm:$0xff] }
  0x2c   : > { %267 = vst [vmem:[%s3726_s29 + $0x160] sm:$0xff] %v266_v44  ;;  %v270_v46 = vld [vmem:[%s3721_s28 + $0x2e0] sm:$0xff]  ;;  %v272_v47 = vld [vmem:[%s3721_s28 + $0x2e8] sm:$0xff]  ;;  %269 = vst [vmem:[%s3726_s29 + $0x168] sm:$0xff] %v268_v45 }
  0x2d   : > { %271 = vst [vmem:[%s3726_s29 + $0x170] sm:$0xff] %v270_v46  ;;  %273 = vst [vmem:[%s3726_s29 + $0x178] sm:$0xff] %v272_v47  ;;  %v274_v48 = vld [vmem:[%s3721_s28 + $0x300] sm:$0xff]  ;;  %v276_v49 = vld [vmem:[%s3721_s28 + $0x308] sm:$0xff] }
  0x2e   : > { %v278_v50 = vld [vmem:[%s3721_s28 + $0x320] sm:$0xff]  ;;  %275 = vst [vmem:[%s3726_s29 + $0x180] sm:$0xff] %v274_v48  ;;  %277 = vst [vmem:[%s3726_s29 + $0x188] sm:$0xff] %v276_v49  ;;  %v280_v51 = vld [vmem:[%s3721_s28 + $0x328] sm:$0xff] }
  0x2f   : > { %279 = vst [vmem:[%s3726_s29 + $0x190] sm:$0xff] %v278_v50  ;;  %v282_v52 = vld [vmem:[%s3721_s28 + $0x340] sm:$0xff]  ;;  %v284_v53 = vld [vmem:[%s3721_s28 + $0x348] sm:$0xff]  ;;  %281 = vst [vmem:[%s3726_s29 + $0x198] sm:$0xff] %v280_v51 }
  0x30   : > { %283 = vst [vmem:[%s3726_s29 + $0x1a0] sm:$0xff] %v282_v52  ;;  %285 = vst [vmem:[%s3726_s29 + $0x1a8] sm:$0xff] %v284_v53  ;;  %v286_v54 = vld [vmem:[%s3721_s28 + $0x360] sm:$0xff]  ;;  %v288_v55 = vld [vmem:[%s3721_s28 + $0x368] sm:$0xff] }
  0x31   : > { %v290_v56 = vld [vmem:[%s3721_s28 + $0x380] sm:$0xff]  ;;  %287 = vst [vmem:[%s3726_s29 + $0x1b0] sm:$0xff] %v286_v54  ;;  %289 = vst [vmem:[%s3726_s29 + $0x1b8] sm:$0xff] %v288_v55  ;;  %v292_v57 = vld [vmem:[%s3721_s28 + $0x388] sm:$0xff] }
  0x32   : > { %291 = vst [vmem:[%s3726_s29 + $0x1c0] sm:$0xff] %v290_v56  ;;  %v294_v58 = vld [vmem:[%s3721_s28 + $0x3a0] sm:$0xff]  ;;  %v296_v59 = vld [vmem:[%s3721_s28 + $0x3a8] sm:$0xff]  ;;  %293 = vst [vmem:[%s3726_s29 + $0x1c8] sm:$0xff] %v292_v57 }
  0x33   : > { %295 = vst [vmem:[%s3726_s29 + $0x1d0] sm:$0xff] %v294_v58  ;;  %297 = vst [vmem:[%s3726_s29 + $0x1d8] sm:$0xff] %v296_v59  ;;  %v298_v60 = vld [vmem:[%s3721_s28 + $0x3c0] sm:$0xff]  ;;  %v300_v61 = vld [vmem:[%s3721_s28 + $0x3c8] sm:$0xff] }
  0x34   : > { %v302_v62 = vld [vmem:[%s3721_s28 + $0x3e0] sm:$0xff]  ;;  %299 = vst [vmem:[%s3726_s29 + $0x1e0] sm:$0xff] %v298_v60  ;;  %301 = vst [vmem:[%s3726_s29 + $0x1e8] sm:$0xff] %v300_v61  ;;  %v304_v63 = vld [vmem:[%s3721_s28 + $0x3e8] sm:$0xff] }
  0x35   : > { %303 = vst [vmem:[%s3726_s29 + $0x1f0] sm:$0xff] %v302_v62  ;;  %v306_v0 = vld [vmem:[%s3721_s28 + $0x400] sm:$0xff]  ;;  %v308_v1 = vld [vmem:[%s3721_s28 + $0x408] sm:$0xff]  ;;  %305 = vst [vmem:[%s3726_s29 + $0x1f8] sm:$0xff] %v304_v63 }
  0x36   : > { %307 = vst [vmem:[%s3726_s29 + $0x200] sm:$0xff] %v306_v0  ;;  %309 = vst [vmem:[%s3726_s29 + $0x208] sm:$0xff] %v308_v1  ;;  %v310_v2 = vld [vmem:[%s3721_s28 + $0x420] sm:$0xff]  ;;  %v312_v3 = vld [vmem:[%s3721_s28 + $0x428] sm:$0xff] }
  0x37   : > { %v314_v4 = vld [vmem:[%s3721_s28 + $0x440] sm:$0xff]  ;;  %311 = vst [vmem:[%s3726_s29 + $0x210] sm:$0xff] %v310_v2  ;;  %313 = vst [vmem:[%s3726_s29 + $0x218] sm:$0xff] %v312_v3  ;;  %v316_v5 = vld [vmem:[%s3721_s28 + $0x448] sm:$0xff] }
  0x38   : > { %315 = vst [vmem:[%s3726_s29 + $0x220] sm:$0xff] %v314_v4  ;;  %v318_v6 = vld [vmem:[%s3721_s28 + $0x460] sm:$0xff]  ;;  %v320_v7 = vld [vmem:[%s3721_s28 + $0x468] sm:$0xff]  ;;  %317 = vst [vmem:[%s3726_s29 + $0x228] sm:$0xff] %v316_v5 }
  0x39   : > { %319 = vst [vmem:[%s3726_s29 + $0x230] sm:$0xff] %v318_v6  ;;  %321 = vst [vmem:[%s3726_s29 + $0x238] sm:$0xff] %v320_v7  ;;  %v322_v8 = vld [vmem:[%s3721_s28 + $0x480] sm:$0xff]  ;;  %v324_v9 = vld [vmem:[%s3721_s28 + $0x488] sm:$0xff] }
  0x3a   : > { %v326_v10 = vld [vmem:[%s3721_s28 + $0x4a0] sm:$0xff]  ;;  %323 = vst [vmem:[%s3726_s29 + $0x240] sm:$0xff] %v322_v8  ;;  %325 = vst [vmem:[%s3726_s29 + $0x248] sm:$0xff] %v324_v9  ;;  %v328_v11 = vld [vmem:[%s3721_s28 + $0x4a8] sm:$0xff] }
  0x3b   : > { %327 = vst [vmem:[%s3726_s29 + $0x250] sm:$0xff] %v326_v10  ;;  %v330_v12 = vld [vmem:[%s3721_s28 + $0x4c0] sm:$0xff]  ;;  %v332_v13 = vld [vmem:[%s3721_s28 + $0x4c8] sm:$0xff]  ;;  %329 = vst [vmem:[%s3726_s29 + $0x258] sm:$0xff] %v328_v11 }
  0x3c   : > { %331 = vst [vmem:[%s3726_s29 + $0x260] sm:$0xff] %v330_v12  ;;  %333 = vst [vmem:[%s3726_s29 + $0x268] sm:$0xff] %v332_v13  ;;  %v334_v14 = vld [vmem:[%s3721_s28 + $0x4e0] sm:$0xff]  ;;  %v336_v15 = vld [vmem:[%s3721_s28 + $0x4e8] sm:$0xff] }
  0x3d   : > { %v338_v16 = vld [vmem:[%s3721_s28 + $0x500] sm:$0xff]  ;;  %335 = vst [vmem:[%s3726_s29 + $0x270] sm:$0xff] %v334_v14  ;;  %337 = vst [vmem:[%s3726_s29 + $0x278] sm:$0xff] %v336_v15  ;;  %v340_v17 = vld [vmem:[%s3721_s28 + $0x508] sm:$0xff] }
  0x3e   : > { %339 = vst [vmem:[%s3726_s29 + $0x280] sm:$0xff] %v338_v16  ;;  %v342_v18 = vld [vmem:[%s3721_s28 + $0x520] sm:$0xff]  ;;  %v344_v19 = vld [vmem:[%s3721_s28 + $0x528] sm:$0xff]  ;;  %341 = vst [vmem:[%s3726_s29 + $0x288] sm:$0xff] %v340_v17 }
  0x3f   : > { %343 = vst [vmem:[%s3726_s29 + $0x290] sm:$0xff] %v342_v18  ;;  %345 = vst [vmem:[%s3726_s29 + $0x298] sm:$0xff] %v344_v19  ;;  %v346_v20 = vld [vmem:[%s3721_s28 + $0x540] sm:$0xff]  ;;  %v348_v21 = vld [vmem:[%s3721_s28 + $0x548] sm:$0xff] }
  0x40   : > { %v350_v22 = vld [vmem:[%s3721_s28 + $0x560] sm:$0xff]  ;;  %347 = vst [vmem:[%s3726_s29 + $0x2a0] sm:$0xff] %v346_v20  ;;  %349 = vst [vmem:[%s3726_s29 + $0x2a8] sm:$0xff] %v348_v21  ;;  %v352_v23 = vld [vmem:[%s3721_s28 + $0x568] sm:$0xff] }
  0x41   : > { %351 = vst [vmem:[%s3726_s29 + $0x2b0] sm:$0xff] %v350_v22  ;;  %v354_v24 = vld [vmem:[%s3721_s28 + $0x580] sm:$0xff]  ;;  %v356_v25 = vld [vmem:[%s3721_s28 + $0x588] sm:$0xff]  ;;  %353 = vst [vmem:[%s3726_s29 + $0x2b8] sm:$0xff] %v352_v23 }
  0x42   : > { %355 = vst [vmem:[%s3726_s29 + $0x2c0] sm:$0xff] %v354_v24  ;;  %357 = vst [vmem:[%s3726_s29 + $0x2c8] sm:$0xff] %v356_v25  ;;  %v358_v26 = vld [vmem:[%s3721_s28 + $0x5a0] sm:$0xff]  ;;  %v360_v27 = vld [vmem:[%s3721_s28 + $0x5a8] sm:$0xff] }
  0x43   : > { %v362_v28 = vld [vmem:[%s3721_s28 + $0x5c0] sm:$0xff]  ;;  %359 = vst [vmem:[%s3726_s29 + $0x2d0] sm:$0xff] %v358_v26  ;;  %361 = vst [vmem:[%s3726_s29 + $0x2d8] sm:$0xff] %v360_v27  ;;  %v364_v29 = vld [vmem:[%s3721_s28 + $0x5c8] sm:$0xff] }
  0x44   : > { %363 = vst [vmem:[%s3726_s29 + $0x2e0] sm:$0xff] %v362_v28  ;;  %v366_v30 = vld [vmem:[%s3721_s28 + $0x5e0] sm:$0xff]  ;;  %v368_v31 = vld [vmem:[%s3721_s28 + $0x5e8] sm:$0xff]  ;;  %365 = vst [vmem:[%s3726_s29 + $0x2e8] sm:$0xff] %v364_v29 }
  0x45   : > { %367 = vst [vmem:[%s3726_s29 + $0x2f0] sm:$0xff] %v366_v30  ;;  %369 = vst [vmem:[%s3726_s29 + $0x2f8] sm:$0xff] %v368_v31  ;;  %v370_v32 = vld [vmem:[%s3721_s28 + $0x600] sm:$0xff]  ;;  %v372_v33 = vld [vmem:[%s3721_s28 + $0x608] sm:$0xff] }
  0x46   : > { %v374_v34 = vld [vmem:[%s3721_s28 + $0x620] sm:$0xff]  ;;  %371 = vst [vmem:[%s3726_s29 + $0x300] sm:$0xff] %v370_v32  ;;  %373 = vst [vmem:[%s3726_s29 + $0x308] sm:$0xff] %v372_v33  ;;  %v376_v35 = vld [vmem:[%s3721_s28 + $0x628] sm:$0xff] }
  0x47   : > { %375 = vst [vmem:[%s3726_s29 + $0x310] sm:$0xff] %v374_v34  ;;  %v378_v36 = vld [vmem:[%s3721_s28 + $0x640] sm:$0xff]  ;;  %v380_v37 = vld [vmem:[%s3721_s28 + $0x648] sm:$0xff]  ;;  %377 = vst [vmem:[%s3726_s29 + $0x318] sm:$0xff] %v376_v35 }
  0x48   : > { %379 = vst [vmem:[%s3726_s29 + $0x320] sm:$0xff] %v378_v36  ;;  %381 = vst [vmem:[%s3726_s29 + $0x328] sm:$0xff] %v380_v37  ;;  %v382_v38 = vld [vmem:[%s3721_s28 + $0x660] sm:$0xff]  ;;  %v384_v39 = vld [vmem:[%s3721_s28 + $0x668] sm:$0xff] }
  0x49   : > { %v386_v40 = vld [vmem:[%s3721_s28 + $0x680] sm:$0xff]  ;;  %383 = vst [vmem:[%s3726_s29 + $0x330] sm:$0xff] %v382_v38  ;;  %385 = vst [vmem:[%s3726_s29 + $0x338] sm:$0xff] %v384_v39  ;;  %v388_v41 = vld [vmem:[%s3721_s28 + $0x688] sm:$0xff] }
  0x4a   : > { %387 = vst [vmem:[%s3726_s29 + $0x340] sm:$0xff] %v386_v40  ;;  %v390_v42 = vld [vmem:[%s3721_s28 + $0x6a0] sm:$0xff]  ;;  %v392_v43 = vld [vmem:[%s3721_s28 + $0x6a8] sm:$0xff]  ;;  %389 = vst [vmem:[%s3726_s29 + $0x348] sm:$0xff] %v388_v41 }
  0x4b   : > { %391 = vst [vmem:[%s3726_s29 + $0x350] sm:$0xff] %v390_v42  ;;  %393 = vst [vmem:[%s3726_s29 + $0x358] sm:$0xff] %v392_v43  ;;  %v394_v44 = vld [vmem:[%s3721_s28 + $0x6c0] sm:$0xff]  ;;  %v396_v45 = vld [vmem:[%s3721_s28 + $0x6c8] sm:$0xff] }
  0x4c   : > { %v398_v46 = vld [vmem:[%s3721_s28 + $0x6e0] sm:$0xff]  ;;  %395 = vst [vmem:[%s3726_s29 + $0x360] sm:$0xff] %v394_v44  ;;  %397 = vst [vmem:[%s3726_s29 + $0x368] sm:$0xff] %v396_v45  ;;  %v400_v47 = vld [vmem:[%s3721_s28 + $0x6e8] sm:$0xff] }
  0x4d   : > { %399 = vst [vmem:[%s3726_s29 + $0x370] sm:$0xff] %v398_v46  ;;  %v402_v48 = vld [vmem:[%s3721_s28 + $0x700] sm:$0xff]  ;;  %v404_v49 = vld [vmem:[%s3721_s28 + $0x708] sm:$0xff]  ;;  %401 = vst [vmem:[%s3726_s29 + $0x378] sm:$0xff] %v400_v47 }
  0x4e   : > { %403 = vst [vmem:[%s3726_s29 + $0x380] sm:$0xff] %v402_v48  ;;  %405 = vst [vmem:[%s3726_s29 + $0x388] sm:$0xff] %v404_v49  ;;  %v406_v50 = vld [vmem:[%s3721_s28 + $0x720] sm:$0xff]  ;;  %v408_v51 = vld [vmem:[%s3721_s28 + $0x728] sm:$0xff] }
  0x4f   : > { %v410_v52 = vld [vmem:[%s3721_s28 + $0x740] sm:$0xff]  ;;  %407 = vst [vmem:[%s3726_s29 + $0x390] sm:$0xff] %v406_v50  ;;  %409 = vst [vmem:[%s3726_s29 + $0x398] sm:$0xff] %v408_v51  ;;  %v412_v53 = vld [vmem:[%s3721_s28 + $0x748] sm:$0xff] }
  0x50   : > { %411 = vst [vmem:[%s3726_s29 + $0x3a0] sm:$0xff] %v410_v52  ;;  %v414_v54 = vld [vmem:[%s3721_s28 + $0x760] sm:$0xff]  ;;  %v416_v55 = vld [vmem:[%s3721_s28 + $0x768] sm:$0xff]  ;;  %413 = vst [vmem:[%s3726_s29 + $0x3a8] sm:$0xff] %v412_v53 }
  0x51   : > { %415 = vst [vmem:[%s3726_s29 + $0x3b0] sm:$0xff] %v414_v54  ;;  %417 = vst [vmem:[%s3726_s29 + $0x3b8] sm:$0xff] %v416_v55  ;;  %v418_v56 = vld [vmem:[%s3721_s28 + $0x780] sm:$0xff]  ;;  %v420_v57 = vld [vmem:[%s3721_s28 + $0x788] sm:$0xff] }
  0x52   : > { %v422_v58 = vld [vmem:[%s3721_s28 + $0x7a0] sm:$0xff]  ;;  %419 = vst [vmem:[%s3726_s29 + $0x3c0] sm:$0xff] %v418_v56  ;;  %421 = vst [vmem:[%s3726_s29 + $0x3c8] sm:$0xff] %v420_v57  ;;  %v424_v59 = vld [vmem:[%s3721_s28 + $0x7a8] sm:$0xff] }
  0x53   : > { %423 = vst [vmem:[%s3726_s29 + $0x3d0] sm:$0xff] %v422_v58  ;;  %v426_v60 = vld [vmem:[%s3721_s28 + $0x7c0] sm:$0xff]  ;;  %v428_v61 = vld [vmem:[%s3721_s28 + $0x7c8] sm:$0xff]  ;;  %425 = vst [vmem:[%s3726_s29 + $0x3d8] sm:$0xff] %v424_v59 }
  0x54   : > { %427 = vst [vmem:[%s3726_s29 + $0x3e0] sm:$0xff] %v426_v60  ;;  %429 = vst [vmem:[%s3726_s29 + $0x3e8] sm:$0xff] %v428_v61  ;;  %v430_v62 = vld [vmem:[%s3721_s28 + $0x7e0] sm:$0xff]  ;;  %v432_v63 = vld [vmem:[%s3721_s28 + $0x7e8] sm:$0xff] }
  0x55   : > { %v434_v0 = vld [vmem:[%s3721_s28 + $0x800] sm:$0xff]  ;;  %431 = vst [vmem:[%s3726_s29 + $0x3f0] sm:$0xff] %v430_v62  ;;  %433 = vst [vmem:[%s3726_s29 + $0x3f8] sm:$0xff] %v432_v63  ;;  %v436_v1 = vld [vmem:[%s3721_s28 + $0x808] sm:$0xff] }
  0x56   : > { %435 = vst [vmem:[%s3726_s29 + $0x400] sm:$0xff] %v434_v0  ;;  %v438_v2 = vld [vmem:[%s3721_s28 + $0x820] sm:$0xff]  ;;  %v440_v3 = vld [vmem:[%s3721_s28 + $0x828] sm:$0xff]  ;;  %437 = vst [vmem:[%s3726_s29 + $0x408] sm:$0xff] %v436_v1 }
  0x57   : > { %439 = vst [vmem:[%s3726_s29 + $0x410] sm:$0xff] %v438_v2  ;;  %441 = vst [vmem:[%s3726_s29 + $0x418] sm:$0xff] %v440_v3  ;;  %v442_v4 = vld [vmem:[%s3721_s28 + $0x840] sm:$0xff]  ;;  %v444_v5 = vld [vmem:[%s3721_s28 + $0x848] sm:$0xff] }
  0x58   : > { %v446_v6 = vld [vmem:[%s3721_s28 + $0x860] sm:$0xff]  ;;  %443 = vst [vmem:[%s3726_s29 + $0x420] sm:$0xff] %v442_v4  ;;  %445 = vst [vmem:[%s3726_s29 + $0x428] sm:$0xff] %v444_v5  ;;  %v448_v7 = vld [vmem:[%s3721_s28 + $0x868] sm:$0xff] }
  0x59   : > { %447 = vst [vmem:[%s3726_s29 + $0x430] sm:$0xff] %v446_v6  ;;  %v450_v8 = vld [vmem:[%s3721_s28 + $0x880] sm:$0xff]  ;;  %v452_v9 = vld [vmem:[%s3721_s28 + $0x888] sm:$0xff]  ;;  %449 = vst [vmem:[%s3726_s29 + $0x438] sm:$0xff] %v448_v7 }
  0x5a   : > { %451 = vst [vmem:[%s3726_s29 + $0x440] sm:$0xff] %v450_v8  ;;  %453 = vst [vmem:[%s3726_s29 + $0x448] sm:$0xff] %v452_v9  ;;  %v454_v10 = vld [vmem:[%s3721_s28 + $0x8a0] sm:$0xff]  ;;  %v456_v11 = vld [vmem:[%s3721_s28 + $0x8a8] sm:$0xff] }
  0x5b   : > { %v458_v12 = vld [vmem:[%s3721_s28 + $0x8c0] sm:$0xff]  ;;  %455 = vst [vmem:[%s3726_s29 + $0x450] sm:$0xff] %v454_v10  ;;  %457 = vst [vmem:[%s3726_s29 + $0x458] sm:$0xff] %v456_v11  ;;  %v460_v13 = vld [vmem:[%s3721_s28 + $0x8c8] sm:$0xff] }
  0x5c   : > { %459 = vst [vmem:[%s3726_s29 + $0x460] sm:$0xff] %v458_v12  ;;  %v462_v14 = vld [vmem:[%s3721_s28 + $0x8e0] sm:$0xff]  ;;  %v464_v15 = vld [vmem:[%s3721_s28 + $0x8e8] sm:$0xff]  ;;  %461 = vst [vmem:[%s3726_s29 + $0x468] sm:$0xff] %v460_v13 }
  0x5d   : > { %463 = vst [vmem:[%s3726_s29 + $0x470] sm:$0xff] %v462_v14  ;;  %465 = vst [vmem:[%s3726_s29 + $0x478] sm:$0xff] %v464_v15  ;;  %v466_v16 = vld [vmem:[%s3721_s28 + $0x900] sm:$0xff]  ;;  %v468_v17 = vld [vmem:[%s3721_s28 + $0x908] sm:$0xff] }
  0x5e   : > { %v470_v18 = vld [vmem:[%s3721_s28 + $0x920] sm:$0xff]  ;;  %467 = vst [vmem:[%s3726_s29 + $0x480] sm:$0xff] %v466_v16  ;;  %469 = vst [vmem:[%s3726_s29 + $0x488] sm:$0xff] %v468_v17  ;;  %v472_v19 = vld [vmem:[%s3721_s28 + $0x928] sm:$0xff] }
  0x5f   : > { %471 = vst [vmem:[%s3726_s29 + $0x490] sm:$0xff] %v470_v18  ;;  %v474_v20 = vld [vmem:[%s3721_s28 + $0x940] sm:$0xff]  ;;  %v476_v21 = vld [vmem:[%s3721_s28 + $0x948] sm:$0xff]  ;;  %473 = vst [vmem:[%s3726_s29 + $0x498] sm:$0xff] %v472_v19 }
  0x60   : > { %475 = vst [vmem:[%s3726_s29 + $0x4a0] sm:$0xff] %v474_v20  ;;  %477 = vst [vmem:[%s3726_s29 + $0x4a8] sm:$0xff] %v476_v21  ;;  %v478_v22 = vld [vmem:[%s3721_s28 + $0x960] sm:$0xff]  ;;  %v480_v23 = vld [vmem:[%s3721_s28 + $0x968] sm:$0xff] }
  0x61   : > { %v482_v24 = vld [vmem:[%s3721_s28 + $0x980] sm:$0xff]  ;;  %479 = vst [vmem:[%s3726_s29 + $0x4b0] sm:$0xff] %v478_v22  ;;  %481 = vst [vmem:[%s3726_s29 + $0x4b8] sm:$0xff] %v480_v23  ;;  %v484_v25 = vld [vmem:[%s3721_s28 + $0x988] sm:$0xff] }
  0x62   : > { %483 = vst [vmem:[%s3726_s29 + $0x4c0] sm:$0xff] %v482_v24  ;;  %v486_v26 = vld [vmem:[%s3721_s28 + $0x9a0] sm:$0xff]  ;;  %v488_v27 = vld [vmem:[%s3721_s28 + $0x9a8] sm:$0xff]  ;;  %485 = vst [vmem:[%s3726_s29 + $0x4c8] sm:$0xff] %v484_v25 }
  0x63   : > { %487 = vst [vmem:[%s3726_s29 + $0x4d0] sm:$0xff] %v486_v26  ;;  %489 = vst [vmem:[%s3726_s29 + $0x4d8] sm:$0xff] %v488_v27  ;;  %v490_v28 = vld [vmem:[%s3721_s28 + $0x9c0] sm:$0xff]  ;;  %v492_v29 = vld [vmem:[%s3721_s28 + $0x9c8] sm:$0xff] }
  0x64   : > { %v494_v30 = vld [vmem:[%s3721_s28 + $0x9e0] sm:$0xff]  ;;  %491 = vst [vmem:[%s3726_s29 + $0x4e0] sm:$0xff] %v490_v28  ;;  %493 = vst [vmem:[%s3726_s29 + $0x4e8] sm:$0xff] %v492_v29  ;;  %v496_v31 = vld [vmem:[%s3721_s28 + $0x9e8] sm:$0xff] }
  0x65   : > { %495 = vst [vmem:[%s3726_s29 + $0x4f0] sm:$0xff] %v494_v30  ;;  %v498_v32 = vld [vmem:[%s3721_s28 + $0xa00] sm:$0xff]  ;;  %v500_v33 = vld [vmem:[%s3721_s28 + $0xa08] sm:$0xff]  ;;  %497 = vst [vmem:[%s3726_s29 + $0x4f8] sm:$0xff] %v496_v31 }
  0x66   : > { %499 = vst [vmem:[%s3726_s29 + $0x500] sm:$0xff] %v498_v32  ;;  %501 = vst [vmem:[%s3726_s29 + $0x508] sm:$0xff] %v500_v33  ;;  %v502_v34 = vld [vmem:[%s3721_s28 + $0xa20] sm:$0xff]  ;;  %v504_v35 = vld [vmem:[%s3721_s28 + $0xa28] sm:$0xff] }
  0x67   : > { %v506_v36 = vld [vmem:[%s3721_s28 + $0xa40] sm:$0xff]  ;;  %503 = vst [vmem:[%s3726_s29 + $0x510] sm:$0xff] %v502_v34  ;;  %505 = vst [vmem:[%s3726_s29 + $0x518] sm:$0xff] %v504_v35  ;;  %v508_v37 = vld [vmem:[%s3721_s28 + $0xa48] sm:$0xff] }
  0x68   : > { %507 = vst [vmem:[%s3726_s29 + $0x520] sm:$0xff] %v506_v36  ;;  %v510_v38 = vld [vmem:[%s3721_s28 + $0xa60] sm:$0xff]  ;;  %v512_v39 = vld [vmem:[%s3721_s28 + $0xa68] sm:$0xff]  ;;  %509 = vst [vmem:[%s3726_s29 + $0x528] sm:$0xff] %v508_v37 }
  0x69   : > { %511 = vst [vmem:[%s3726_s29 + $0x530] sm:$0xff] %v510_v38  ;;  %513 = vst [vmem:[%s3726_s29 + $0x538] sm:$0xff] %v512_v39  ;;  %v514_v40 = vld [vmem:[%s3721_s28 + $0xa80] sm:$0xff]  ;;  %v516_v41 = vld [vmem:[%s3721_s28 + $0xa88] sm:$0xff] }
  0x6a   : > { %v518_v42 = vld [vmem:[%s3721_s28 + $0xaa0] sm:$0xff]  ;;  %515 = vst [vmem:[%s3726_s29 + $0x540] sm:$0xff] %v514_v40  ;;  %517 = vst [vmem:[%s3726_s29 + $0x548] sm:$0xff] %v516_v41  ;;  %v520_v43 = vld [vmem:[%s3721_s28 + $0xaa8] sm:$0xff] }
  0x6b   : > { %519 = vst [vmem:[%s3726_s29 + $0x550] sm:$0xff] %v518_v42  ;;  %v522_v44 = vld [vmem:[%s3721_s28 + $0xac0] sm:$0xff]  ;;  %v524_v45 = vld [vmem:[%s3721_s28 + $0xac8] sm:$0xff]  ;;  %521 = vst [vmem:[%s3726_s29 + $0x558] sm:$0xff] %v520_v43 }
  0x6c   : > { %523 = vst [vmem:[%s3726_s29 + $0x560] sm:$0xff] %v522_v44  ;;  %525 = vst [vmem:[%s3726_s29 + $0x568] sm:$0xff] %v524_v45  ;;  %v526_v46 = vld [vmem:[%s3721_s28 + $0xae0] sm:$0xff]  ;;  %v528_v47 = vld [vmem:[%s3721_s28 + $0xae8] sm:$0xff] }
  0x6d   : > { %v530_v48 = vld [vmem:[%s3721_s28 + $0xb00] sm:$0xff]  ;;  %527 = vst [vmem:[%s3726_s29 + $0x570] sm:$0xff] %v526_v46  ;;  %529 = vst [vmem:[%s3726_s29 + $0x578] sm:$0xff] %v528_v47  ;;  %v532_v49 = vld [vmem:[%s3721_s28 + $0xb08] sm:$0xff] }
  0x6e   : > { %531 = vst [vmem:[%s3726_s29 + $0x580] sm:$0xff] %v530_v48  ;;  %v534_v50 = vld [vmem:[%s3721_s28 + $0xb20] sm:$0xff]  ;;  %v536_v51 = vld [vmem:[%s3721_s28 + $0xb28] sm:$0xff]  ;;  %533 = vst [vmem:[%s3726_s29 + $0x588] sm:$0xff] %v532_v49 }
  0x6f   : > { %535 = vst [vmem:[%s3726_s29 + $0x590] sm:$0xff] %v534_v50  ;;  %537 = vst [vmem:[%s3726_s29 + $0x598] sm:$0xff] %v536_v51  ;;  %v538_v52 = vld [vmem:[%s3721_s28 + $0xb40] sm:$0xff]  ;;  %v540_v53 = vld [vmem:[%s3721_s28 + $0xb48] sm:$0xff] }
  0x70   : > { %v542_v54 = vld [vmem:[%s3721_s28 + $0xb60] sm:$0xff]  ;;  %539 = vst [vmem:[%s3726_s29 + $0x5a0] sm:$0xff] %v538_v52  ;;  %541 = vst [vmem:[%s3726_s29 + $0x5a8] sm:$0xff] %v540_v53  ;;  %v544_v55 = vld [vmem:[%s3721_s28 + $0xb68] sm:$0xff] }
  0x71   : > { %543 = vst [vmem:[%s3726_s29 + $0x5b0] sm:$0xff] %v542_v54  ;;  %v546_v56 = vld [vmem:[%s3721_s28 + $0xb80] sm:$0xff]  ;;  %v548_v57 = vld [vmem:[%s3721_s28 + $0xb88] sm:$0xff]  ;;  %545 = vst [vmem:[%s3726_s29 + $0x5b8] sm:$0xff] %v544_v55 }
  0x72   : > { %547 = vst [vmem:[%s3726_s29 + $0x5c0] sm:$0xff] %v546_v56  ;;  %549 = vst [vmem:[%s3726_s29 + $0x5c8] sm:$0xff] %v548_v57  ;;  %v550_v58 = vld [vmem:[%s3721_s28 + $0xba0] sm:$0xff]  ;;  %v552_v59 = vld [vmem:[%s3721_s28 + $0xba8] sm:$0xff] }
  0x73   : > { %v554_v60 = vld [vmem:[%s3721_s28 + $0xbc0] sm:$0xff]  ;;  %551 = vst [vmem:[%s3726_s29 + $0x5d0] sm:$0xff] %v550_v58  ;;  %553 = vst [vmem:[%s3726_s29 + $0x5d8] sm:$0xff] %v552_v59  ;;  %v556_v61 = vld [vmem:[%s3721_s28 + $0xbc8] sm:$0xff] }
  0x74   : > { %555 = vst [vmem:[%s3726_s29 + $0x5e0] sm:$0xff] %v554_v60  ;;  %v558_v62 = vld [vmem:[%s3721_s28 + $0xbe0] sm:$0xff]  ;;  %v560_v63 = vld [vmem:[%s3721_s28 + $0xbe8] sm:$0xff]  ;;  %557 = vst [vmem:[%s3726_s29 + $0x5e8] sm:$0xff] %v556_v61 }
  0x75   : > { %559 = vst [vmem:[%s3726_s29 + $0x5f0] sm:$0xff] %v558_v62  ;;  %561 = vst [vmem:[%s3726_s29 + $0x5f8] sm:$0xff] %v560_v63  ;;  %v562_v0 = vld [vmem:[%s3721_s28 + $0xc00] sm:$0xff]  ;;  %v564_v1 = vld [vmem:[%s3721_s28 + $0xc08] sm:$0xff] }
  0x76   : > { %v566_v2 = vld [vmem:[%s3721_s28 + $0xc20] sm:$0xff]  ;;  %563 = vst [vmem:[%s3726_s29 + $0x600] sm:$0xff] %v562_v0  ;;  %565 = vst [vmem:[%s3726_s29 + $0x608] sm:$0xff] %v564_v1  ;;  %v568_v3 = vld [vmem:[%s3721_s28 + $0xc28] sm:$0xff] }
  0x77   : > { %567 = vst [vmem:[%s3726_s29 + $0x610] sm:$0xff] %v566_v2  ;;  %v570_v4 = vld [vmem:[%s3721_s28 + $0xc40] sm:$0xff]  ;;  %v572_v5 = vld [vmem:[%s3721_s28 + $0xc48] sm:$0xff]  ;;  %569 = vst [vmem:[%s3726_s29 + $0x618] sm:$0xff] %v568_v3 }
  0x78   : > { %571 = vst [vmem:[%s3726_s29 + $0x620] sm:$0xff] %v570_v4  ;;  %573 = vst [vmem:[%s3726_s29 + $0x628] sm:$0xff] %v572_v5  ;;  %v574_v6 = vld [vmem:[%s3721_s28 + $0xc60] sm:$0xff]  ;;  %v576_v7 = vld [vmem:[%s3721_s28 + $0xc68] sm:$0xff] }
  0x79   : > { %v578_v8 = vld [vmem:[%s3721_s28 + $0xc80] sm:$0xff]  ;;  %575 = vst [vmem:[%s3726_s29 + $0x630] sm:$0xff] %v574_v6  ;;  %577 = vst [vmem:[%s3726_s29 + $0x638] sm:$0xff] %v576_v7  ;;  %v580_v9 = vld [vmem:[%s3721_s28 + $0xc88] sm:$0xff] }
  0x7a   : > { %579 = vst [vmem:[%s3726_s29 + $0x640] sm:$0xff] %v578_v8  ;;  %v582_v10 = vld [vmem:[%s3721_s28 + $0xca0] sm:$0xff]  ;;  %v584_v11 = vld [vmem:[%s3721_s28 + $0xca8] sm:$0xff]  ;;  %581 = vst [vmem:[%s3726_s29 + $0x648] sm:$0xff] %v580_v9 }
  0x7b   : > { %583 = vst [vmem:[%s3726_s29 + $0x650] sm:$0xff] %v582_v10  ;;  %585 = vst [vmem:[%s3726_s29 + $0x658] sm:$0xff] %v584_v11  ;;  %v586_v12 = vld [vmem:[%s3721_s28 + $0xcc0] sm:$0xff]  ;;  %v588_v13 = vld [vmem:[%s3721_s28 + $0xcc8] sm:$0xff] }
  0x7c   : > { %v590_v14 = vld [vmem:[%s3721_s28 + $0xce0] sm:$0xff]  ;;  %587 = vst [vmem:[%s3726_s29 + $0x660] sm:$0xff] %v586_v12  ;;  %589 = vst [vmem:[%s3726_s29 + $0x668] sm:$0xff] %v588_v13  ;;  %v592_v15 = vld [vmem:[%s3721_s28 + $0xce8] sm:$0xff] }
  0x7d   : > { %591 = vst [vmem:[%s3726_s29 + $0x670] sm:$0xff] %v590_v14  ;;  %v594_v16 = vld [vmem:[%s3721_s28 + $0xd00] sm:$0xff]  ;;  %v596_v17 = vld [vmem:[%s3721_s28 + $0xd08] sm:$0xff]  ;;  %593 = vst [vmem:[%s3726_s29 + $0x678] sm:$0xff] %v592_v15 }
  0x7e   : > { %595 = vst [vmem:[%s3726_s29 + $0x680] sm:$0xff] %v594_v16  ;;  %597 = vst [vmem:[%s3726_s29 + $0x688] sm:$0xff] %v596_v17  ;;  %v598_v18 = vld [vmem:[%s3721_s28 + $0xd20] sm:$0xff]  ;;  %v600_v19 = vld [vmem:[%s3721_s28 + $0xd28] sm:$0xff] }
  0x7f   : > { %v602_v20 = vld [vmem:[%s3721_s28 + $0xd40] sm:$0xff]  ;;  %599 = vst [vmem:[%s3726_s29 + $0x690] sm:$0xff] %v598_v18  ;;  %601 = vst [vmem:[%s3726_s29 + $0x698] sm:$0xff] %v600_v19  ;;  %v604_v21 = vld [vmem:[%s3721_s28 + $0xd48] sm:$0xff] }
  0x80   : > { %603 = vst [vmem:[%s3726_s29 + $0x6a0] sm:$0xff] %v602_v20  ;;  %v606_v22 = vld [vmem:[%s3721_s28 + $0xd60] sm:$0xff]  ;;  %v608_v23 = vld [vmem:[%s3721_s28 + $0xd68] sm:$0xff]  ;;  %605 = vst [vmem:[%s3726_s29 + $0x6a8] sm:$0xff] %v604_v21 }
  0x81   : > { %607 = vst [vmem:[%s3726_s29 + $0x6b0] sm:$0xff] %v606_v22  ;;  %609 = vst [vmem:[%s3726_s29 + $0x6b8] sm:$0xff] %v608_v23  ;;  %v610_v24 = vld [vmem:[%s3721_s28 + $0xd80] sm:$0xff]  ;;  %v612_v25 = vld [vmem:[%s3721_s28 + $0xd88] sm:$0xff] }
  0x82   : > { %v614_v26 = vld [vmem:[%s3721_s28 + $0xda0] sm:$0xff]  ;;  %611 = vst [vmem:[%s3726_s29 + $0x6c0] sm:$0xff] %v610_v24  ;;  %613 = vst [vmem:[%s3726_s29 + $0x6c8] sm:$0xff] %v612_v25  ;;  %v616_v27 = vld [vmem:[%s3721_s28 + $0xda8] sm:$0xff] }
  0x83   : > { %615 = vst [vmem:[%s3726_s29 + $0x6d0] sm:$0xff] %v614_v26  ;;  %v618_v28 = vld [vmem:[%s3721_s28 + $0xdc0] sm:$0xff]  ;;  %v620_v29 = vld [vmem:[%s3721_s28 + $0xdc8] sm:$0xff]  ;;  %617 = vst [vmem:[%s3726_s29 + $0x6d8] sm:$0xff] %v616_v27 }
  0x84   : > { %619 = vst [vmem:[%s3726_s29 + $0x6e0] sm:$0xff] %v618_v28  ;;  %621 = vst [vmem:[%s3726_s29 + $0x6e8] sm:$0xff] %v620_v29  ;;  %v622_v30 = vld [vmem:[%s3721_s28 + $0xde0] sm:$0xff]  ;;  %v624_v31 = vld [vmem:[%s3721_s28 + $0xde8] sm:$0xff] }
  0x85   : > { %v626_v32 = vld [vmem:[%s3721_s28 + $0xe00] sm:$0xff]  ;;  %623 = vst [vmem:[%s3726_s29 + $0x6f0] sm:$0xff] %v622_v30  ;;  %625 = vst [vmem:[%s3726_s29 + $0x6f8] sm:$0xff] %v624_v31  ;;  %v628_v33 = vld [vmem:[%s3721_s28 + $0xe08] sm:$0xff] }
  0x86   : > { %627 = vst [vmem:[%s3726_s29 + $0x700] sm:$0xff] %v626_v32  ;;  %v630_v34 = vld [vmem:[%s3721_s28 + $0xe20] sm:$0xff]  ;;  %v632_v35 = vld [vmem:[%s3721_s28 + $0xe28] sm:$0xff]  ;;  %629 = vst [vmem:[%s3726_s29 + $0x708] sm:$0xff] %v628_v33 }
  0x87   : > { %631 = vst [vmem:[%s3726_s29 + $0x710] sm:$0xff] %v630_v34  ;;  %633 = vst [vmem:[%s3726_s29 + $0x718] sm:$0xff] %v632_v35  ;;  %v634_v36 = vld [vmem:[%s3721_s28 + $0xe40] sm:$0xff]  ;;  %v636_v37 = vld [vmem:[%s3721_s28 + $0xe48] sm:$0xff] }
  0x88   : > { %v638_v38 = vld [vmem:[%s3721_s28 + $0xe60] sm:$0xff]  ;;  %635 = vst [vmem:[%s3726_s29 + $0x720] sm:$0xff] %v634_v36  ;;  %637 = vst [vmem:[%s3726_s29 + $0x728] sm:$0xff] %v636_v37  ;;  %v640_v39 = vld [vmem:[%s3721_s28 + $0xe68] sm:$0xff] }
  0x89   : > { %639 = vst [vmem:[%s3726_s29 + $0x730] sm:$0xff] %v638_v38  ;;  %v642_v40 = vld [vmem:[%s3721_s28 + $0xe80] sm:$0xff]  ;;  %v644_v41 = vld [vmem:[%s3721_s28 + $0xe88] sm:$0xff]  ;;  %641 = vst [vmem:[%s3726_s29 + $0x738] sm:$0xff] %v640_v39 }
  0x8a   : > { %643 = vst [vmem:[%s3726_s29 + $0x740] sm:$0xff] %v642_v40  ;;  %645 = vst [vmem:[%s3726_s29 + $0x748] sm:$0xff] %v644_v41  ;;  %v646_v42 = vld [vmem:[%s3721_s28 + $0xea0] sm:$0xff]  ;;  %v648_v43 = vld [vmem:[%s3721_s28 + $0xea8] sm:$0xff] }
  0x8b   : > { %v650_v44 = vld [vmem:[%s3721_s28 + $0xec0] sm:$0xff]  ;;  %647 = vst [vmem:[%s3726_s29 + $0x750] sm:$0xff] %v646_v42  ;;  %649 = vst [vmem:[%s3726_s29 + $0x758] sm:$0xff] %v648_v43  ;;  %v652_v45 = vld [vmem:[%s3721_s28 + $0xec8] sm:$0xff] }
  0x8c   : > { %651 = vst [vmem:[%s3726_s29 + $0x760] sm:$0xff] %v650_v44  ;;  %v654_v46 = vld [vmem:[%s3721_s28 + $0xee0] sm:$0xff]  ;;  %v656_v47 = vld [vmem:[%s3721_s28 + $0xee8] sm:$0xff]  ;;  %653 = vst [vmem:[%s3726_s29 + $0x768] sm:$0xff] %v652_v45 }
  0x8d   : > { %655 = vst [vmem:[%s3726_s29 + $0x770] sm:$0xff] %v654_v46  ;;  %657 = vst [vmem:[%s3726_s29 + $0x778] sm:$0xff] %v656_v47  ;;  %v658_v48 = vld [vmem:[%s3721_s28 + $0xf00] sm:$0xff]  ;;  %v660_v49 = vld [vmem:[%s3721_s28 + $0xf08] sm:$0xff] }
  0x8e   : > { %v662_v50 = vld [vmem:[%s3721_s28 + $0xf20] sm:$0xff]  ;;  %659 = vst [vmem:[%s3726_s29 + $0x780] sm:$0xff] %v658_v48  ;;  %661 = vst [vmem:[%s3726_s29 + $0x788] sm:$0xff] %v660_v49  ;;  %v664_v51 = vld [vmem:[%s3721_s28 + $0xf28] sm:$0xff] }
  0x8f   : > { %663 = vst [vmem:[%s3726_s29 + $0x790] sm:$0xff] %v662_v50  ;;  %v666_v52 = vld [vmem:[%s3721_s28 + $0xf40] sm:$0xff]  ;;  %v668_v53 = vld [vmem:[%s3721_s28 + $0xf48] sm:$0xff]  ;;  %665 = vst [vmem:[%s3726_s29 + $0x798] sm:$0xff] %v664_v51 }
  0x90   : > { %667 = vst [vmem:[%s3726_s29 + $0x7a0] sm:$0xff] %v666_v52  ;;  %669 = vst [vmem:[%s3726_s29 + $0x7a8] sm:$0xff] %v668_v53  ;;  %v670_v54 = vld [vmem:[%s3721_s28 + $0xf60] sm:$0xff]  ;;  %v672_v55 = vld [vmem:[%s3721_s28 + $0xf68] sm:$0xff] }
  0x91   : > { %v674_v56 = vld [vmem:[%s3721_s28 + $0xf80] sm:$0xff]  ;;  %671 = vst [vmem:[%s3726_s29 + $0x7b0] sm:$0xff] %v670_v54  ;;  %673 = vst [vmem:[%s3726_s29 + $0x7b8] sm:$0xff] %v672_v55  ;;  %v676_v57 = vld [vmem:[%s3721_s28 + $0xf88] sm:$0xff] }
  0x92   : > { %675 = vst [vmem:[%s3726_s29 + $0x7c0] sm:$0xff] %v674_v56  ;;  %v678_v58 = vld [vmem:[%s3721_s28 + $0xfa0] sm:$0xff]  ;;  %v680_v59 = vld [vmem:[%s3721_s28 + $0xfa8] sm:$0xff]  ;;  %677 = vst [vmem:[%s3726_s29 + $0x7c8] sm:$0xff] %v676_v57 }
  0x93   : > { %679 = vst [vmem:[%s3726_s29 + $0x7d0] sm:$0xff] %v678_v58  ;;  %681 = vst [vmem:[%s3726_s29 + $0x7d8] sm:$0xff] %v680_v59  ;;  %v682_v60 = vld [vmem:[%s3721_s28 + $0xfc0] sm:$0xff]  ;;  %v684_v61 = vld [vmem:[%s3721_s28 + $0xfc8] sm:$0xff] }
  0x94   : > { %v686_v62 = vld [vmem:[%s3721_s28 + $0xfe0] sm:$0xff]  ;;  %683 = vst [vmem:[%s3726_s29 + $0x7e0] sm:$0xff] %v682_v60  ;;  %685 = vst [vmem:[%s3726_s29 + $0x7e8] sm:$0xff] %v684_v61  ;;  %v688_v63 = vld [vmem:[%s3721_s28 + $0xfe8] sm:$0xff] }
  0x95   : > { %687 = vst [vmem:[%s3726_s29 + $0x7f0] sm:$0xff] %v686_v62  ;;  %689 = vst [vmem:[%s3726_s29 + $0x7f8] sm:$0xff] %v688_v63 }
  0x96 PF: > { %p2882_p8 = scmp.ge.s32.totalorder %s3651_s16, 1  ;;  %p702_p9 = scmp.lt.s32.totalorder %s3651_s16, 3 }
  0x98   : > { %p703_p10 = pnand %p2882_p8, %p702_p9 }
  0x99   : > { %s709_s30 = sand.u32 (!%p703_p10), 1, %s3635_s12   ;;  %v756_v0 = vld [vmem:[%s4597_s0] sm:$0xff] (!%p703_p10)  ;;  %s2885_s4 = sshll.u32 (!%p703_p10), %s3643_s14, 2 }
  0x9a   : > { %706 = sbr.rel (%p703_p10) target bundleno = 646 (0x286), region = 51  ;;  %v760_v1 = vld [vmem:[%s4597_s0 + $0x20] sm:$0xff] (!%p703_p10)  ;;  %s2883_s8 = sshll.u32 (!%p703_p10), %s709_s30, 11 }
  0x9b   : > { %v4248_v2 = vcombine.low (!%p703_p10), %v756_v0, %v760_v1  ;;  %v2887_v3 = vcombine.high (!%p703_p10), %v756_v0, %v760_v1  ;;  %s4250_s9 = scalar_lea.vmem (!%p703_p10), [#allocation2], %s2883_s8  ;;  %p750_p11 = scmp.lt.s32.totalorder (!%p703_p10), %s2885_s4, 7 }
  0x9c   : > { %v3229_v4 = vld [vmem:[%s4250_s9 + $0x4] ss:$16 sps:$4 sm:$0xff] (!%p703_p10)   ;;  %v3231_v5 = vld [vmem:[%s4250_s9 + $0xc] ss:$16 sps:$4 sm:$0xff] (!%p703_p10)   ;;  %v3233_v6 = vld [vmem:[%s4250_s9] ss:$16 sps:$4 sm:$0xff] (!%p703_p10)  }
  0x9d   : > { %2394 = vmatprep.mubr.bf16.mxu0 (!%p703_p10), %v2887_v3  ;;  %2566 = vmatprep.mubr.bf16.mxu1 (!%p703_p10), %v2887_v3  ;;  %v3234_v7 = vld [vmem:[%s4250_s9 + $0x8] ss:$16 sps:$4 sm:$0xff] (!%p703_p10)   ;;  %v3235_v8 = vld [vmem:[%s4250_s9 + $0x24] ss:$16 sps:$4 sm:$0xff] (!%p703_p10)   ;;  %v3237_v9 = vld [vmem:[%s4250_s9 + $0x2c] ss:$16 sps:$4 sm:$0xff] (!%p703_p10)  }
  0x9e   : > { %2362 = vmatprep.subr.bf16.mxu0 (!%p703_p10), %v3229_v4  ;;  %2534 = vmatprep.subr.bf16.mxu1 (!%p703_p10), %v3231_v5  ;;  %v3239_v10 = vld [vmem:[%s4250_s9 + $0x20] ss:$16 sps:$4 sm:$0xff] (!%p703_p10)   ;;  %v3240_v11 = vld [vmem:[%s4250_s9 + $0x28] ss:$16 sps:$4 sm:$0xff] (!%p703_p10)   ;;  %v3241_v12 = vld [vmem:[%s4250_s9 + $0x44] ss:$16 sps:$4 sm:$0xff] (!%p703_p10)  }
  0x9f   : > { %2363 = vmatpush1.bf16.msra.mxu0 (!%p703_p10), %v3233_v6  ;;  %2535 = vmatpush1.bf16.msra.mxu1 (!%p703_p10), %v3234_v7  ;;  %v3243_v13 = vld [vmem:[%s4250_s9 + $0x4c] ss:$16 sps:$4 sm:$0xff] (!%p703_p10)   ;;  %v3245_v14 = vld [vmem:[%s4250_s9 + $0x40] ss:$16 sps:$4 sm:$0xff] (!%p703_p10)   ;;  %v3246_v15 = vld [vmem:[%s4250_s9 + $0x48] ss:$16 sps:$4 sm:$0xff] (!%p703_p10)  }
  0xa0   : > { %2364 = vmatprep.subr.bf16.mxu0 (!%p703_p10), %v3235_v8  ;;  %2536 = vmatprep.subr.bf16.mxu1 (!%p703_p10), %v3237_v9  ;;  %v3247_v16 = vld [vmem:[%s4250_s9 + $0x64] ss:$16 sps:$4 sm:$0xff] (!%p703_p10)   ;;  %v3249_v17 = vld [vmem:[%s4250_s9 + $0x6c] ss:$16 sps:$4 sm:$0xff] (!%p703_p10)   ;;  %v3251_v18 = vld [vmem:[%s4250_s9 + $0x60] ss:$16 sps:$4 sm:$0xff] (!%p703_p10)  }
  0xa1   : > { %v3252_v19 = vld [vmem:[%s4250_s9 + $0x68] ss:$16 sps:$4 sm:$0xff]   ;;  %v3253_v20 = vld [vmem:[%s4250_s9 + $0x84] ss:$16 sps:$4 sm:$0xff]   ;;  %v3255_v21 = vld [vmem:[%s4250_s9 + $0x8c] ss:$16 sps:$4 sm:$0xff]  }
  0xa2   : > { %v3257_v22 = vld [vmem:[%s4250_s9 + $0x80] ss:$16 sps:$4 sm:$0xff]   ;;  %v3258_v23 = vld [vmem:[%s4250_s9 + $0x88] ss:$16 sps:$4 sm:$0xff]   ;;  %v3259_v24 = vld [vmem:[%s4250_s9 + $0xa4] ss:$16 sps:$4 sm:$0xff]  }
  0xa3   : > { %2365 = vmatpush1.bf16.msra.mxu0 %v3239_v10  ;;  %2537 = vmatpush1.bf16.msra.mxu1 %v3240_v11  ;;  %v3261_v25 = vld [vmem:[%s4250_s9 + $0xac] ss:$16 sps:$4 sm:$0xff]   ;;  %v3263_v26 = vld [vmem:[%s4250_s9 + $0xa0] ss:$16 sps:$4 sm:$0xff]   ;;  %v3264_v27 = vld [vmem:[%s4250_s9 + $0xa8] ss:$16 sps:$4 sm:$0xff]  }
  0xa4   : > { %2366 = vmatprep.subr.bf16.mxu0 %v3241_v12  ;;  %2538 = vmatprep.subr.bf16.mxu1 %v3243_v13  ;;  %v3265_v28 = vld [vmem:[%s4250_s9 + $0xc4] ss:$16 sps:$4 sm:$0xff]   ;;  %v3267_v29 = vld [vmem:[%s4250_s9 + $0xcc] ss:$16 sps:$4 sm:$0xff]   ;;  %v3269_v30 = vld [vmem:[%s4250_s9 + $0xc0] ss:$16 sps:$4 sm:$0xff]  }
  0xa5   : > { %v3270_v31 = vld [vmem:[%s4250_s9 + $0xc8] ss:$16 sps:$4 sm:$0xff]   ;;  %v3271_v32 = vld [vmem:[%s4250_s9 + $0xe4] ss:$16 sps:$4 sm:$0xff]   ;;  %v3273_v33 = vld [vmem:[%s4250_s9 + $0xec] ss:$16 sps:$4 sm:$0xff]  }
  0xa6   : > { %v3275_v34 = vld [vmem:[%s4250_s9 + $0xe0] ss:$16 sps:$4 sm:$0xff]   ;;  %v3276_v35 = vld [vmem:[%s4250_s9 + $0xe8] ss:$16 sps:$4 sm:$0xff]   ;;  %v3277_v36 = vld [vmem:[%s4250_s9 + $0x104] ss:$16 sps:$4 sm:$0xff]  }
  0xa7   : > { %2367 = vmatpush1.bf16.msra.mxu0 %v3245_v14  ;;  %2539 = vmatpush1.bf16.msra.mxu1 %v3246_v15  ;;  %v3279_v37 = vld [vmem:[%s4250_s9 + $0x10c] ss:$16 sps:$4 sm:$0xff]   ;;  %v3281_v38 = vld [vmem:[%s4250_s9 + $0x100] ss:$16 sps:$4 sm:$0xff]   ;;  %v3282_v39 = vld [vmem:[%s4250_s9 + $0x108] ss:$16 sps:$4 sm:$0xff]  }
  0xa8   : > { %2368 = vmatprep.subr.bf16.mxu0 %v3247_v16  ;;  %2540 = vmatprep.subr.bf16.mxu1 %v3249_v17  ;;  %v3283_v40 = vld [vmem:[%s4250_s9 + $0x124] ss:$16 sps:$4 sm:$0xff]   ;;  %v3285_v41 = vld [vmem:[%s4250_s9 + $0x12c] ss:$16 sps:$4 sm:$0xff]   ;;  %v3287_v42 = vld [vmem:[%s4250_s9 + $0x120] ss:$16 sps:$4 sm:$0xff]  }
  0xa9   : > { %v3288_v43 = vld [vmem:[%s4250_s9 + $0x128] ss:$16 sps:$4 sm:$0xff]   ;;  %v3289_v44 = vld [vmem:[%s4250_s9 + $0x144] ss:$16 sps:$4 sm:$0xff]   ;;  %v3291_v45 = vld [vmem:[%s4250_s9 + $0x14c] ss:$16 sps:$4 sm:$0xff]  }
  0xaa   : > { %v3293_v46 = vld [vmem:[%s4250_s9 + $0x140] ss:$16 sps:$4 sm:$0xff]   ;;  %v3294_v47 = vld [vmem:[%s4250_s9 + $0x148] ss:$16 sps:$4 sm:$0xff]   ;;  %v3295_v48 = vld [vmem:[%s4250_s9 + $0x164] ss:$16 sps:$4 sm:$0xff]  }
  0xab   : > { %2369 = vmatpush1.bf16.msra.mxu0 %v3251_v18  ;;  %2541 = vmatpush1.bf16.msra.mxu1 %v3252_v19  ;;  %v3297_v49 = vld [vmem:[%s4250_s9 + $0x16c] ss:$16 sps:$4 sm:$0xff]   ;;  %v3299_v50 = vld [vmem:[%s4250_s9 + $0x160] ss:$16 sps:$4 sm:$0xff]   ;;  %v3300_v51 = vld [vmem:[%s4250_s9 + $0x168] ss:$16 sps:$4 sm:$0xff]  }
  0xac   : > { %2370 = vmatprep.subr.bf16.mxu0 %v3253_v20  ;;  %2542 = vmatprep.subr.bf16.mxu1 %v3255_v21  ;;  %v3301_v52 = vld [vmem:[%s4250_s9 + $0x184] ss:$16 sps:$4 sm:$0xff]   ;;  %v3303_v53 = vld [vmem:[%s4250_s9 + $0x18c] ss:$16 sps:$4 sm:$0xff]   ;;  %v3305_v54 = vld [vmem:[%s4250_s9 + $0x180] ss:$16 sps:$4 sm:$0xff]  }
  0xad   : > { %v3306_v55 = vld [vmem:[%s4250_s9 + $0x188] ss:$16 sps:$4 sm:$0xff]   ;;  %v3307_v56 = vld [vmem:[%s4250_s9 + $0x1a4] ss:$16 sps:$4 sm:$0xff]   ;;  %v3309_v57 = vld [vmem:[%s4250_s9 + $0x1ac] ss:$16 sps:$4 sm:$0xff]  }
  0xae   : > { %v3311_v58 = vld [vmem:[%s4250_s9 + $0x1a0] ss:$16 sps:$4 sm:$0xff]   ;;  %v3312_v59 = vld [vmem:[%s4250_s9 + $0x1a8] ss:$16 sps:$4 sm:$0xff]   ;;  %v3313_v60 = vld [vmem:[%s4250_s9 + $0x1c4] ss:$16 sps:$4 sm:$0xff]  }
  0xaf   : > { %2371 = vmatpush1.bf16.msra.mxu0 %v3257_v22  ;;  %2543 = vmatpush1.bf16.msra.mxu1 %v3258_v23  ;;  %v3315_v61 = vld [vmem:[%s4250_s9 + $0x1cc] ss:$16 sps:$4 sm:$0xff]   ;;  %v3317_v62 = vld [vmem:[%s4250_s9 + $0x1c0] ss:$16 sps:$4 sm:$0xff]   ;;  %v3318_v63 = vld [vmem:[%s4250_s9 + $0x1c8] ss:$16 sps:$4 sm:$0xff]  }
  0xb0   : > { %2372 = vmatprep.subr.bf16.mxu0 %v3259_v24  ;;  %2544 = vmatprep.subr.bf16.mxu1 %v3261_v25  ;;  %v3319_v0 = vld [vmem:[%s4250_s9 + $0x1e4] ss:$16 sps:$4 sm:$0xff]   ;;  %v3321_v1 = vld [vmem:[%s4250_s9 + $0x1ec] ss:$16 sps:$4 sm:$0xff]   ;;  %v3323_v3 = vld [vmem:[%s4250_s9 + $0x1e0] ss:$16 sps:$4 sm:$0xff]  }
  0xb1   : > { %v3324_v4 = vld [vmem:[%s4250_s9 + $0x1e8] ss:$16 sps:$4 sm:$0xff]   ;;  %v3327_v5 = vld [vmem:[%s4250_s9 + $0x204] ss:$16 sps:$4 sm:$0xff]   ;;  %v3330_v6 = vld [vmem:[%s4250_s9 + $0x20c] ss:$16 sps:$4 sm:$0xff]  }
  0xb2   : > { %v3325_v7 = vld [vmem:[%s4250_s9 + $0x200] ss:$16 sps:$4 sm:$0xff]   ;;  %v3328_v8 = vld [vmem:[%s4250_s9 + $0x208] ss:$16 sps:$4 sm:$0xff]   ;;  %v3333_v9 = vld [vmem:[%s4250_s9 + $0x224] ss:$16 sps:$4 sm:$0xff]  }
  0xb3   : > { %2373 = vmatpush1.bf16.msra.mxu0 %v3263_v26  ;;  %2545 = vmatpush1.bf16.msra.mxu1 %v3264_v27  ;;  %v3336_v10 = vld [vmem:[%s4250_s9 + $0x22c] ss:$16 sps:$4 sm:$0xff]   ;;  %v3331_v11 = vld [vmem:[%s4250_s9 + $0x220] ss:$16 sps:$4 sm:$0xff]   ;;  %v3334_v12 = vld [vmem:[%s4250_s9 + $0x228] ss:$16 sps:$4 sm:$0xff]  }
  0xb4   : > { %2374 = vmatprep.subr.bf16.mxu0 %v3265_v28  ;;  %2546 = vmatprep.subr.bf16.mxu1 %v3267_v29  ;;  %v3339_v13 = vld [vmem:[%s4250_s9 + $0x244] ss:$16 sps:$4 sm:$0xff]   ;;  %v3342_v14 = vld [vmem:[%s4250_s9 + $0x24c] ss:$16 sps:$4 sm:$0xff]   ;;  %v3337_v15 = vld [vmem:[%s4250_s9 + $0x240] ss:$16 sps:$4 sm:$0xff]  }
  0xb5   : > { %v3340_v16 = vld [vmem:[%s4250_s9 + $0x248] ss:$16 sps:$4 sm:$0xff]   ;;  %v3348_v17 = vld [vmem:[%s4250_s9 + $0x26c] ss:$16 sps:$4 sm:$0xff]   ;;  %v3343_v18 = vld [vmem:[%s4250_s9 + $0x260] ss:$16 sps:$4 sm:$0xff]  }
  0xb6   : > { %v3346_v19 = vld [vmem:[%s4250_s9 + $0x268] ss:$16 sps:$4 sm:$0xff]   ;;  %v3351_v20 = vld [vmem:[%s4250_s9 + $0x284] ss:$16 sps:$4 sm:$0xff]   ;;  %v3354_v21 = vld [vmem:[%s4250_s9 + $0x28c] ss:$16 sps:$4 sm:$0xff]  }
  0xb7   : > { %2375 = vmatpush1.bf16.msra.mxu0 %v3269_v30  ;;  %2547 = vmatpush1.bf16.msra.mxu1 %v3270_v31  ;;  %v3349_v22 = vld [vmem:[%s4250_s9 + $0x280] ss:$16 sps:$4 sm:$0xff]   ;;  %v3352_v23 = vld [vmem:[%s4250_s9 + $0x288] ss:$16 sps:$4 sm:$0xff]   ;;  %v3357_v24 = vld [vmem:[%s4250_s9 + $0x2a4] ss:$16 sps:$4 sm:$0xff]  }
  0xb8   : > { %2376 = vmatprep.subr.bf16.mxu0 %v3271_v32  ;;  %2548 = vmatprep.subr.bf16.mxu1 %v3273_v33  ;;  %v3360_v25 = vld [vmem:[%s4250_s9 + $0x2ac] ss:$16 sps:$4 sm:$0xff]   ;;  %v3355_v26 = vld [vmem:[%s4250_s9 + $0x2a0] ss:$16 sps:$4 sm:$0xff]   ;;  %v3358_v27 = vld [vmem:[%s4250_s9 + $0x2a8] ss:$16 sps:$4 sm:$0xff]  }
  0xb9   : > { %v3363_v28 = vld [vmem:[%s4250_s9 + $0x2c4] ss:$16 sps:$4 sm:$0xff]   ;;  %v3366_v29 = vld [vmem:[%s4250_s9 + $0x2cc] ss:$16 sps:$4 sm:$0xff]   ;;  %v3361_v33 = vld [vmem:[%s4250_s9 + $0x2c0] ss:$16 sps:$4 sm:$0xff]  }
  0xba   : > { %v4347_v30 = vld [vmem:[%s4597_s0 + $0x8] sm:$0xff]  ;;  %s4609_s4 = smov (!%p750_p11, %s2885_s4), 7  ;;  %s2884_s8 = sshll.u32 %s709_s30, 6 }
  0xbb   : > { %2377 = vmatpush1.bf16.msra.mxu0 %v3275_v34  ;;  %2549 = vmatpush1.bf16.msra.mxu1 %v3276_v35  ;;  %v4352_v31 = vld [vmem:[%s4597_s0 + $0x28] sm:$0xff]  ;;  %v3369_v35 = vld [vmem:[%s4250_s9 + $0x2e4] ss:$16 sps:$4 sm:$0xff]   ;;  %s752_s7 = scalar_lea.vmem %s4599_s2, %s4609_s4  ;;  %s4558_s12 = scalar_lea.vmem [#allocation3], %s2884_s8 }
  0xbc   : > { %2378 = vmatprep.subr.bf16.mxu0 %v3277_v36  ;;  %2550 = vmatprep.subr.bf16.mxu1 %v3279_v37  ;;  %v2889_v32 = vcombine.high %v4347_v30, %v4352_v31  ;;  %v3364_v34 = vld [vmem:[%s4250_s9 + $0x2c8] ss:$16 sps:$4 sm:$0xff]   ;;  %v3372_v36 = vld [vmem:[%s4250_s9 + $0x2ec] ss:$16 sps:$4 sm:$0xff]   ;;  %v3367_v37 = vld [vmem:[%s4250_s9 + $0x2e0] ss:$16 sps:$4 sm:$0xff]  }
  0xbd   : > { %s3156_s30 = sshll.u32 (%p3708_p6), %s3643_s14, 5 }
  0xbe   : > { %s2750_s11 = scalar_lea.vmem (%p3708_p6), %s4600_s3, %s3156_s30 }
  0xbf   : > { %2379 = vmatpush1.bf16.msra.mxu0 %v3281_v38  ;;  %2551 = vmatpush1.bf16.msra.mxu1 %v3282_v39  ;;  %v3370_v38 = vld [vmem:[%s4250_s9 + $0x2e8] ss:$16 sps:$4 sm:$0xff]   ;;  %v3375_v39 = vld [vmem:[%s4250_s9 + $0x304] ss:$16 sps:$4 sm:$0xff]  }
  0xc0   : > { %2380 = vmatprep.subr.bf16.mxu0 %v3283_v40  ;;  %2552 = vmatprep.subr.bf16.mxu1 %v3285_v41  ;;  %v3378_v40 = vld [vmem:[%s4250_s9 + $0x30c] ss:$16 sps:$4 sm:$0xff]   ;;  %v3373_v41 = vld [vmem:[%s4250_s9 + $0x300] ss:$16 sps:$4 sm:$0xff]  }
  0xc3   : > { %2381 = vmatpush1.bf16.msra.mxu0 %v3287_v42  ;;  %2553 = vmatpush1.bf16.msra.mxu1 %v3288_v43  ;;  %v3376_v42 = vld [vmem:[%s4250_s9 + $0x308] ss:$16 sps:$4 sm:$0xff]   ;;  %v3381_v43 = vld [vmem:[%s4250_s9 + $0x324] ss:$16 sps:$4 sm:$0xff]  }
  0xc4   : > { %2382 = vmatprep.subr.bf16.mxu0 %v3289_v44  ;;  %2554 = vmatprep.subr.bf16.mxu1 %v3291_v45  ;;  %v3384_v44 = vld [vmem:[%s4250_s9 + $0x32c] ss:$16 sps:$4 sm:$0xff]   ;;  %v3379_v45 = vld [vmem:[%s4250_s9 + $0x320] ss:$16 sps:$4 sm:$0xff]  }
  0xc7   : > { %2383 = vmatpush1.bf16.msra.mxu0 %v3293_v46  ;;  %2555 = vmatpush1.bf16.msra.mxu1 %v3294_v47  ;;  %v3382_v46 = vld [vmem:[%s4250_s9 + $0x328] ss:$16 sps:$4 sm:$0xff]   ;;  %v3387_v47 = vld [vmem:[%s4250_s9 + $0x344] ss:$16 sps:$4 sm:$0xff]  }
  0xc8   : > { %2384 = vmatprep.subr.bf16.mxu0 %v3295_v48  ;;  %2556 = vmatprep.subr.bf16.mxu1 %v3297_v49  ;;  %v3390_v48 = vld [vmem:[%s4250_s9 + $0x34c] ss:$16 sps:$4 sm:$0xff]   ;;  %v3385_v49 = vld [vmem:[%s4250_s9 + $0x340] ss:$16 sps:$4 sm:$0xff]  }
  0xcb   : > { %2385 = vmatpush1.bf16.msra.mxu0 %v3299_v50  ;;  %2557 = vmatpush1.bf16.msra.mxu1 %v3300_v51  ;;  %v3388_v50 = vld [vmem:[%s4250_s9 + $0x348] ss:$16 sps:$4 sm:$0xff]   ;;  %v3393_v51 = vld [vmem:[%s4250_s9 + $0x364] ss:$16 sps:$4 sm:$0xff]  }
  0xcc   : > { %2386 = vmatprep.subr.bf16.mxu0 %v3301_v52  ;;  %2558 = vmatprep.subr.bf16.mxu1 %v3303_v53  ;;  %v3396_v52 = vld [vmem:[%s4250_s9 + $0x36c] ss:$16 sps:$4 sm:$0xff]   ;;  %v3391_v53 = vld [vmem:[%s4250_s9 + $0x360] ss:$16 sps:$4 sm:$0xff]  }
  0xcf   : > { %2387 = vmatpush1.bf16.msra.mxu0 %v3305_v54  ;;  %2559 = vmatpush1.bf16.msra.mxu1 %v3306_v55  ;;  %v3394_v54 = vld [vmem:[%s4250_s9 + $0x368] ss:$16 sps:$4 sm:$0xff]   ;;  %v3399_v55 = vld [vmem:[%s4250_s9 + $0x384] ss:$16 sps:$4 sm:$0xff]  }
  0xd0   : > { %2388 = vmatprep.subr.bf16.mxu0 %v3307_v56  ;;  %2560 = vmatprep.subr.bf16.mxu1 %v3309_v57  ;;  %v3402_v56 = vld [vmem:[%s4250_s9 + $0x38c] ss:$16 sps:$4 sm:$0xff]   ;;  %v3397_v57 = vld [vmem:[%s4250_s9 + $0x380] ss:$16 sps:$4 sm:$0xff]  }
  0xd3   : > { %2389 = vmatpush1.bf16.msra.mxu0 %v3311_v58  ;;  %2561 = vmatpush1.bf16.msra.mxu1 %v3312_v59  ;;  %v3400_v58 = vld [vmem:[%s4250_s9 + $0x388] ss:$16 sps:$4 sm:$0xff]   ;;  %v3405_v59 = vld [vmem:[%s4250_s9 + $0x3a4] ss:$16 sps:$4 sm:$0xff]  }
  0xd4   : > { %2390 = vmatprep.subr.bf16.mxu0 %v3313_v60  ;;  %2562 = vmatprep.subr.bf16.mxu1 %v3315_v61  ;;  %v3408_v60 = vld [vmem:[%s4250_s9 + $0x3ac] ss:$16 sps:$4 sm:$0xff]   ;;  %v3403_v61 = vld [vmem:[%s4250_s9 + $0x3a0] ss:$16 sps:$4 sm:$0xff]  }
  0xd7   : > { %2391 = vmatpush1.bf16.msra.mxu0 %v3317_v62  ;;  %2563 = vmatpush1.bf16.msra.mxu1 %v3318_v63  ;;  %v3406_v62 = vld [vmem:[%s4250_s9 + $0x3a8] ss:$16 sps:$4 sm:$0xff]   ;;  %v3411_v63 = vld [vmem:[%s4250_s9 + $0x3c4] ss:$16 sps:$4 sm:$0xff]  }
  0xd8   : > { %2392 = vmatprep.subr.bf16.mxu0 %v3319_v0  ;;  %2564 = vmatprep.subr.bf16.mxu1 %v3321_v1  ;;  %v3414_v0 = vld [vmem:[%s4250_s9 + $0x3cc] ss:$16 sps:$4 sm:$0xff]   ;;  %v3409_v1 = vld [vmem:[%s4250_s9 + $0x3c0] ss:$16 sps:$4 sm:$0xff]  }
  0xdb   : > { %2393 = vmatpush1.bf16.msra.mxu0 %v3323_v3  ;;  %2565 = vmatpush1.bf16.msra.mxu1 %v3324_v4  ;;  %v3412_v3 = vld [vmem:[%s4250_s9 + $0x3c8] ss:$16 sps:$4 sm:$0xff]   ;;  %v3417_v4 = vld [vmem:[%s4250_s9 + $0x3e4] ss:$16 sps:$4 sm:$0xff]  }
  0xdc   : > { %2405 = vmatprep.subr.bf16.mxu0 %v3327_v5  ;;  %2577 = vmatprep.subr.bf16.mxu1 %v3330_v6  ;;  %v3420_v5 = vld [vmem:[%s4250_s9 + $0x3ec] ss:$16 sps:$4 sm:$0xff]   ;;  %v3415_v6 = vld [vmem:[%s4250_s9 + $0x3e0] ss:$16 sps:$4 sm:$0xff]  }
  0xde   : > { %2395 = vmatmul.mubr.bf16.vlgmr.msra.gmra.mrb[0].mxu0 %v4248_v2  ;;  %2567 = vmatmul.mubr.bf16.vlgmr.msra.gmra.mrb[0].mxu1 %v4248_v2  ;;  %v3345_v2 = vld [vmem:[%s4250_s9 + $0x264] ss:$16 sps:$4 sm:$0xff]  }
  0xdf   : > { %2406 = vmatpush1.bf16.msra.mxu0 %v3325_v7  ;;  %2578 = vmatpush1.bf16.msra.mxu1 %v3328_v8  ;;  %v3418_v7 = vld [vmem:[%s4250_s9 + $0x3e8] ss:$16 sps:$4 sm:$0xff]   ;;  %v3423_v8 = vld [vmem:[%s4250_s9 + $0x404] ss:$16 sps:$4 sm:$0xff]  }
  0xe0   : > { %2407 = vmatprep.subr.bf16.mxu0 %v3333_v9  ;;  %2579 = vmatprep.subr.bf16.mxu1 %v3336_v10  ;;  %v3426_v9 = vld [vmem:[%s4250_s9 + $0x40c] ss:$16 sps:$4 sm:$0xff]   ;;  %v3421_v10 = vld [vmem:[%s4250_s9 + $0x400] ss:$16 sps:$4 sm:$0xff]  }
  0xe1   : > { %2437 = vmatprep.mubr.bf16.mxu0 %v2889_v32  ;;  %2609 = vmatprep.mubr.bf16.mxu1 %v2889_v32  ;;  %v3456_v32 = vld [vmem:[%s4250_s9 + $0x4ac] ss:$16 sps:$4 sm:$0xff]  }
  0xe3   : > { %2408 = vmatpush1.bf16.msra.mxu0 %v3331_v11  ;;  %2580 = vmatpush1.bf16.msra.mxu1 %v3334_v12  ;;  %v2888_v11 = vcombine.low %v4347_v30, %v4352_v31  ;;  %v3424_v12 = vld [vmem:[%s4250_s9 + $0x408] ss:$16 sps:$4 sm:$0xff]   ;;  %v3453_v31 = vld [vmem:[%s4250_s9 + $0x4a4] ss:$16 sps:$4 sm:$0xff]  }
  0xe4   : > { %2409 = vmatprep.subr.bf16.mxu0 %v3339_v13  ;;  %2581 = vmatprep.subr.bf16.mxu1 %v3342_v14  ;;  %v3429_v13 = vld [vmem:[%s4250_s9 + $0x424] ss:$16 sps:$4 sm:$0xff]   ;;  %v3432_v14 = vld [vmem:[%s4250_s9 + $0x42c] ss:$16 sps:$4 sm:$0xff]   ;;  %v3448_v30 = vld [vmem:[%s4250_s9 + $0x488] ss:$16 sps:$4 sm:$0xff]  }
  0xe7   : > { %2410 = vmatpush1.bf16.msra.mxu0 %v3337_v15  ;;  %2582 = vmatpush1.bf16.msra.mxu1 %v3340_v16  ;;  %v4405_v15 = vld [vmem:[%s4597_s0 + $0x10] sm:$0xff] }
  0xe8   : > { %2411 = vmatprep.subr.bf16.mxu0 %v3345_v2  ;;  %2583 = vmatprep.subr.bf16.mxu1 %v3348_v17  ;;  %v4410_v16 = vld [vmem:[%s4597_s0 + $0x30] sm:$0xff] }
  0xe9   : > { %v2891_v2 = vcombine.high %v4405_v15, %v4410_v16  ;;  %v3427_v17 = vld [vmem:[%s4250_s9 + $0x420] ss:$16 sps:$4 sm:$0xff]  }
  0xeb   : > { %2412 = vmatpush1.bf16.msra.mxu0 %v3343_v18  ;;  %2584 = vmatpush1.bf16.msra.mxu1 %v3346_v19  ;;  %v3430_v18 = vld [vmem:[%s4250_s9 + $0x428] ss:$16 sps:$4 sm:$0xff]   ;;  %v3435_v19 = vld [vmem:[%s4250_s9 + $0x444] ss:$16 sps:$4 sm:$0xff]  }
  0xec   : > { %2413 = vmatprep.subr.bf16.mxu0 %v3351_v20  ;;  %2585 = vmatprep.subr.bf16.mxu1 %v3354_v21  ;;  %v3438_v20 = vld [vmem:[%s4250_s9 + $0x44c] ss:$16 sps:$4 sm:$0xff]   ;;  %v3433_v21 = vld [vmem:[%s4250_s9 + $0x440] ss:$16 sps:$4 sm:$0xff]  }
  0xef   : > { %2414 = vmatpush1.bf16.msra.mxu0 %v3349_v22  ;;  %2586 = vmatpush1.bf16.msra.mxu1 %v3352_v23  ;;  %v3436_v22 = vld [vmem:[%s4250_s9 + $0x448] ss:$16 sps:$4 sm:$0xff]   ;;  %v3441_v23 = vld [vmem:[%s4250_s9 + $0x464] ss:$16 sps:$4 sm:$0xff]  }
  0xf0   : > { %2415 = vmatprep.subr.bf16.mxu0 %v3357_v24  ;;  %2587 = vmatprep.subr.bf16.mxu1 %v3360_v25  ;;  %v3444_v24 = vld [vmem:[%s4250_s9 + $0x46c] ss:$16 sps:$4 sm:$0xff]   ;;  %v3439_v25 = vld [vmem:[%s4250_s9 + $0x460] ss:$16 sps:$4 sm:$0xff]  }
  0xf3   : > { %2416 = vmatpush1.bf16.msra.mxu0 %v3355_v26  ;;  %2588 = vmatpush1.bf16.msra.mxu1 %v3358_v27  ;;  %v3442_v26 = vld [vmem:[%s4250_s9 + $0x468] ss:$16 sps:$4 sm:$0xff]   ;;  %v3447_v27 = vld [vmem:[%s4250_s9 + $0x484] ss:$16 sps:$4 sm:$0xff]  }
  0xf4   : > { %2417 = vmatprep.subr.bf16.mxu0 %v3363_v28  ;;  %2589 = vmatprep.subr.bf16.mxu1 %v3366_v29  ;;  %v3450_v28 = vld [vmem:[%s4250_s9 + $0x48c] ss:$16 sps:$4 sm:$0xff]   ;;  %v3445_v29 = vld [vmem:[%s4250_s9 + $0x480] ss:$16 sps:$4 sm:$0xff]  }
  0xf7   : > { %2418 = vmatpush1.bf16.msra.mxu0 %v3361_v33  ;;  %2590 = vmatpush1.bf16.msra.mxu1 %v3364_v34  ;;  %v3451_v33 = vld [vmem:[%s4250_s9 + $0x4a0] ss:$16 sps:$4 sm:$0xff]   ;;  %v3454_v34 = vld [vmem:[%s4250_s9 + $0x4a8] ss:$16 sps:$4 sm:$0xff]  }
  0xf8   : > { %2419 = vmatprep.subr.bf16.mxu0 %v3369_v35  ;;  %2591 = vmatprep.subr.bf16.mxu1 %v3372_v36  ;;  %v3459_v35 = vld [vmem:[%s4250_s9 + $0x4c4] ss:$16 sps:$4 sm:$0xff]   ;;  %v3462_v36 = vld [vmem:[%s4250_s9 + $0x4cc] ss:$16 sps:$4 sm:$0xff]  }
  0xfb   : > { %2420 = vmatpush1.bf16.msra.mxu0 %v3367_v37  ;;  %2592 = vmatpush1.bf16.msra.mxu1 %v3370_v38  ;;  %v3457_v37 = vld [vmem:[%s4250_s9 + $0x4c0] ss:$16 sps:$4 sm:$0xff]   ;;  %v3460_v38 = vld [vmem:[%s4250_s9 + $0x4c8] ss:$16 sps:$4 sm:$0xff]  }
  0xfc   : > { %2421 = vmatprep.subr.bf16.mxu0 %v3375_v39  ;;  %2593 = vmatprep.subr.bf16.mxu1 %v3378_v40  ;;  %v3465_v39 = vld [vmem:[%s4250_s9 + $0x4e4] ss:$16 sps:$4 sm:$0xff]   ;;  %v3468_v40 = vld [vmem:[%s4250_s9 + $0x4ec] ss:$16 sps:$4 sm:$0xff]  }
  0xff   : > { %2422 = vmatpush1.bf16.msra.mxu0 %v3373_v41  ;;  %2594 = vmatpush1.bf16.msra.mxu1 %v3376_v42  ;;  %v3463_v41 = vld [vmem:[%s4250_s9 + $0x4e0] ss:$16 sps:$4 sm:$0xff]   ;;  %v3466_v42 = vld [vmem:[%s4250_s9 + $0x4e8] ss:$16 sps:$4 sm:$0xff]  }
 0x100   : > { %2423 = vmatprep.subr.bf16.mxu0 %v3381_v43  ;;  %2595 = vmatprep.subr.bf16.mxu1 %v3384_v44  ;;  %v3471_v43 = vld [vmem:[%s4250_s9 + $0x504] ss:$16 sps:$4 sm:$0xff]   ;;  %v3474_v44 = vld [vmem:[%s4250_s9 + $0x50c] ss:$16 sps:$4 sm:$0xff]  }
 0x103   : > { %2424 = vmatpush1.bf16.msra.mxu0 %v3379_v45  ;;  %2596 = vmatpush1.bf16.msra.mxu1 %v3382_v46  ;;  %v3469_v45 = vld [vmem:[%s4250_s9 + $0x500] ss:$16 sps:$4 sm:$0xff]   ;;  %v3472_v46 = vld [vmem:[%s4250_s9 + $0x508] ss:$16 sps:$4 sm:$0xff]  }
 0x104   : > { %2425 = vmatprep.subr.bf16.mxu0 %v3387_v47  ;;  %2597 = vmatprep.subr.bf16.mxu1 %v3390_v48  ;;  %v3477_v47 = vld [vmem:[%s4250_s9 + $0x524] ss:$16 sps:$4 sm:$0xff]   ;;  %v3480_v48 = vld [vmem:[%s4250_s9 + $0x52c] ss:$16 sps:$4 sm:$0xff]  }
 0x107   : > { %2426 = vmatpush1.bf16.msra.mxu0 %v3385_v49  ;;  %2598 = vmatpush1.bf16.msra.mxu1 %v3388_v50  ;;  %v3475_v49 = vld [vmem:[%s4250_s9 + $0x520] ss:$16 sps:$4 sm:$0xff]   ;;  %v3478_v50 = vld [vmem:[%s4250_s9 + $0x528] ss:$16 sps:$4 sm:$0xff]  }
 0x108   : > { %2427 = vmatprep.subr.bf16.mxu0 %v3393_v51  ;;  %2599 = vmatprep.subr.bf16.mxu1 %v3396_v52  ;;  %v3483_v51 = vld [vmem:[%s4250_s9 + $0x544] ss:$16 sps:$4 sm:$0xff]   ;;  %v3486_v52 = vld [vmem:[%s4250_s9 + $0x54c] ss:$16 sps:$4 sm:$0xff]  }
 0x10b   : > { %2428 = vmatpush1.bf16.msra.mxu0 %v3391_v53  ;;  %2600 = vmatpush1.bf16.msra.mxu1 %v3394_v54  ;;  %v3481_v53 = vld [vmem:[%s4250_s9 + $0x540] ss:$16 sps:$4 sm:$0xff]   ;;  %v3484_v54 = vld [vmem:[%s4250_s9 + $0x548] ss:$16 sps:$4 sm:$0xff]  }
 0x10c   : > { %2429 = vmatprep.subr.bf16.mxu0 %v3399_v55  ;;  %2601 = vmatprep.subr.bf16.mxu1 %v3402_v56  ;;  %v3489_v55 = vld [vmem:[%s4250_s9 + $0x564] ss:$16 sps:$4 sm:$0xff]   ;;  %v3492_v56 = vld [vmem:[%s4250_s9 + $0x56c] ss:$16 sps:$4 sm:$0xff]  }
 0x10f   : > { %2430 = vmatpush1.bf16.msra.mxu0 %v3397_v57  ;;  %2602 = vmatpush1.bf16.msra.mxu1 %v3400_v58  ;;  %v3487_v57 = vld [vmem:[%s4250_s9 + $0x560] ss:$16 sps:$4 sm:$0xff]   ;;  %v3490_v58 = vld [vmem:[%s4250_s9 + $0x568] ss:$16 sps:$4 sm:$0xff]  }
 0x110   : > { %2431 = vmatprep.subr.bf16.mxu0 %v3405_v59  ;;  %2603 = vmatprep.subr.bf16.mxu1 %v3408_v60  ;;  %v3495_v59 = vld [vmem:[%s4250_s9 + $0x584] ss:$16 sps:$4 sm:$0xff]   ;;  %v3498_v60 = vld [vmem:[%s4250_s9 + $0x58c] ss:$16 sps:$4 sm:$0xff]  }
 0x113   : > { %2432 = vmatpush1.bf16.msra.mxu0 %v3403_v61  ;;  %2604 = vmatpush1.bf16.msra.mxu1 %v3406_v62  ;;  %v3493_v61 = vld [vmem:[%s4250_s9 + $0x580] ss:$16 sps:$4 sm:$0xff]   ;;  %v3496_v62 = vld [vmem:[%s4250_s9 + $0x588] ss:$16 sps:$4 sm:$0xff]  }
 0x114   : > { %2433 = vmatprep.subr.bf16.mxu0 %v3411_v63  ;;  %2605 = vmatprep.subr.bf16.mxu1 %v3414_v0  ;;  %v3501_v63 = vld [vmem:[%s4250_s9 + $0x5a4] ss:$16 sps:$4 sm:$0xff]   ;;  %v3504_v0 = vld [vmem:[%s4250_s9 + $0x5ac] ss:$16 sps:$4 sm:$0xff]  }
 0x117   : > { %2434 = vmatpush1.bf16.msra.mxu0 %v3409_v1  ;;  %2606 = vmatpush1.bf16.msra.mxu1 %v3412_v3  ;;  %v3499_v1 = vld [vmem:[%s4250_s9 + $0x5a0] ss:$16 sps:$4 sm:$0xff]   ;;  %v3502_v3 = vld [vmem:[%s4250_s9 + $0x5a8] ss:$16 sps:$4 sm:$0xff]  }
 0x118   : > { %2435 = vmatprep.subr.bf16.mxu0 %v3417_v4  ;;  %2607 = vmatprep.subr.bf16.mxu1 %v3420_v5  ;;  %v3507_v4 = vld [vmem:[%s4250_s9 + $0x5c4] ss:$16 sps:$4 sm:$0xff]   ;;  %v3510_v5 = vld [vmem:[%s4250_s9 + $0x5cc] ss:$16 sps:$4 sm:$0xff]  }
 0x11b   : > { %2436 = vmatpush1.bf16.msra.mxu0 %v3415_v6  ;;  %2608 = vmatpush1.bf16.msra.mxu1 %v3418_v7  ;;  %v3505_v6 = vld [vmem:[%s4250_s9 + $0x5c0] ss:$16 sps:$4 sm:$0xff]   ;;  %v3508_v7 = vld [vmem:[%s4250_s9 + $0x5c8] ss:$16 sps:$4 sm:$0xff]  }
 0x11c   : > { %2448 = vmatprep.subr.bf16.mxu0 %v3423_v8  ;;  %2620 = vmatprep.subr.bf16.mxu1 %v3426_v9  ;;  %v3513_v8 = vld [vmem:[%s4250_s9 + $0x5e4] ss:$16 sps:$4 sm:$0xff]   ;;  %v3516_v9 = vld [vmem:[%s4250_s9 + $0x5ec] ss:$16 sps:$4 sm:$0xff]  }
 0x11e   : > { %2438 = vmatmul.mubr.bf16.vlgmr.msra.gmra.mrb[0].mxu0 %v2888_v11  ;;  %2610 = vmatmul.mubr.bf16.vlgmr.msra.gmra.mrb[0].mxu1 %v2888_v11  ;;  %v3514_v11 = vld [vmem:[%s4250_s9 + $0x5e8] ss:$16 sps:$4 sm:$0xff]  }
 0x11f   : > { %2449 = vmatpush1.bf16.msra.mxu0 %v3421_v10  ;;  %2621 = vmatpush1.bf16.msra.mxu1 %v3424_v12  ;;  %v3511_v10 = vld [vmem:[%s4250_s9 + $0x5e0] ss:$16 sps:$4 sm:$0xff]   ;;  %v3519_v12 = vld [vmem:[%s4250_s9 + $0x604] ss:$16 sps:$4 sm:$0xff]  }
 0x120   : > { %2450 = vmatprep.subr.bf16.mxu0 %v3429_v13  ;;  %2622 = vmatprep.subr.bf16.mxu1 %v3432_v14  ;;  %v3522_v13 = vld [vmem:[%s4250_s9 + $0x60c] ss:$16 sps:$4 sm:$0xff]   ;;  %v2890_v14 = vcombine.low %v4405_v15, %v4410_v16  ;;  %v3525_v15 = vld [vmem:[%s4250_s9 + $0x624] ss:$16 sps:$4 sm:$0xff]  }
 0x121   : > { %2480 = vmatprep.mubr.bf16.mxu0 %v2891_v2  ;;  %2652 = vmatprep.mubr.bf16.mxu1 %v2891_v2  ;;  %v4479_v2 = vld [vmem:[%s4597_s0 + $0x18] sm:$0xff] }
 0x122   : > { %v3528_v16 = vld [vmem:[%s4250_s9 + $0x62c] ss:$16 sps:$4 sm:$0xff]  }
 0x123   : > { %2451 = vmatpush1.bf16.msra.mxu0 %v3427_v17  ;;  %2623 = vmatpush1.bf16.msra.mxu1 %v3430_v18  ;;  %v4484_v17 = vld [vmem:[%s4597_s0 + $0x38] sm:$0xff]  ;;  %v3517_v18 = vld [vmem:[%s4250_s9 + $0x600] ss:$16 sps:$4 sm:$0xff]  }
 0x124   : > { %2452 = vmatprep.subr.bf16.mxu0 %v3435_v19  ;;  %2624 = vmatprep.subr.bf16.mxu1 %v3438_v20  ;;  %v3520_v19 = vld [vmem:[%s4250_s9 + $0x608] ss:$16 sps:$4 sm:$0xff]   ;;  %v2893_v20 = vcombine.high %v4479_v2, %v4484_v17 }
 0x127   : > { %2453 = vmatpush1.bf16.msra.mxu0 %v3433_v21  ;;  %2625 = vmatpush1.bf16.msra.mxu1 %v3436_v22  ;;  %v3523_v21 = vld [vmem:[%s4250_s9 + $0x620] ss:$16 sps:$4 sm:$0xff]   ;;  %v3526_v22 = vld [vmem:[%s4250_s9 + $0x628] ss:$16 sps:$4 sm:$0xff]  }
 0x128   : > { %2454 = vmatprep.subr.bf16.mxu0 %v3441_v23  ;;  %2626 = vmatprep.subr.bf16.mxu1 %v3444_v24  ;;  %v3531_v23 = vld [vmem:[%s4250_s9 + $0x644] ss:$16 sps:$4 sm:$0xff]   ;;  %v3534_v24 = vld [vmem:[%s4250_s9 + $0x64c] ss:$16 sps:$4 sm:$0xff]  }
 0x12b   : > { %2455 = vmatpush1.bf16.msra.mxu0 %v3439_v25  ;;  %2627 = vmatpush1.bf16.msra.mxu1 %v3442_v26  ;;  %v3529_v25 = vld [vmem:[%s4250_s9 + $0x640] ss:$16 sps:$4 sm:$0xff]   ;;  %v3532_v26 = vld [vmem:[%s4250_s9 + $0x648] ss:$16 sps:$4 sm:$0xff]  }
 0x12c   : > { %2456 = vmatprep.subr.bf16.mxu0 %v3447_v27  ;;  %2628 = vmatprep.subr.bf16.mxu1 %v3450_v28  ;;  %v3537_v27 = vld [vmem:[%s4250_s9 + $0x664] ss:$16 sps:$4 sm:$0xff]   ;;  %v3540_v28 = vld [vmem:[%s4250_s9 + $0x66c] ss:$16 sps:$4 sm:$0xff]  }
 0x12f   : > { %2457 = vmatpush1.bf16.msra.mxu0 %v3445_v29  ;;  %2629 = vmatpush1.bf16.msra.mxu1 %v3448_v30  ;;  %v3535_v29 = vld [vmem:[%s4250_s9 + $0x660] ss:$16 sps:$4 sm:$0xff]   ;;  %v3538_v30 = vld [vmem:[%s4250_s9 + $0x668] ss:$16 sps:$4 sm:$0xff]  }
 0x130   : > { %2458 = vmatprep.subr.bf16.mxu0 %v3453_v31  ;;  %2630 = vmatprep.subr.bf16.mxu1 %v3456_v32  ;;  %v3543_v31 = vld [vmem:[%s4250_s9 + $0x684] ss:$16 sps:$4 sm:$0xff]   ;;  %v3546_v32 = vld [vmem:[%s4250_s9 + $0x68c] ss:$16 sps:$4 sm:$0xff]  }
 0x133   : > { %2459 = vmatpush1.bf16.msra.mxu0 %v3451_v33  ;;  %2631 = vmatpush1.bf16.msra.mxu1 %v3454_v34  ;;  %v3541_v33 = vld [vmem:[%s4250_s9 + $0x680] ss:$16 sps:$4 sm:$0xff]   ;;  %v3544_v34 = vld [vmem:[%s4250_s9 + $0x688] ss:$16 sps:$4 sm:$0xff]  }
 0x134   : > { %2460 = vmatprep.subr.bf16.mxu0 %v3459_v35  ;;  %2632 = vmatprep.subr.bf16.mxu1 %v3462_v36  ;;  %v3549_v35 = vld [vmem:[%s4250_s9 + $0x6a4] ss:$16 sps:$4 sm:$0xff]   ;;  %v3552_v36 = vld [vmem:[%s4250_s9 + $0x6ac] ss:$16 sps:$4 sm:$0xff]  }
 0x137   : > { %2461 = vmatpush1.bf16.msra.mxu0 %v3457_v37  ;;  %2633 = vmatpush1.bf16.msra.mxu1 %v3460_v38  ;;  %v3547_v37 = vld [vmem:[%s4250_s9 + $0x6a0] ss:$16 sps:$4 sm:$0xff]   ;;  %v3550_v38 = vld [vmem:[%s4250_s9 + $0x6a8] ss:$16 sps:$4 sm:$0xff]  }
 0x138   : > { %2462 = vmatprep.subr.bf16.mxu0 %v3465_v39  ;;  %2634 = vmatprep.subr.bf16.mxu1 %v3468_v40  ;;  %v3555_v39 = vld [vmem:[%s4250_s9 + $0x6c4] ss:$16 sps:$4 sm:$0xff]   ;;  %v3558_v40 = vld [vmem:[%s4250_s9 + $0x6cc] ss:$16 sps:$4 sm:$0xff]  }
 0x13b   : > { %2463 = vmatpush1.bf16.msra.mxu0 %v3463_v41  ;;  %2635 = vmatpush1.bf16.msra.mxu1 %v3466_v42  ;;  %v3553_v41 = vld [vmem:[%s4250_s9 + $0x6c0] ss:$16 sps:$4 sm:$0xff]   ;;  %v3556_v42 = vld [vmem:[%s4250_s9 + $0x6c8] ss:$16 sps:$4 sm:$0xff]  }
 0x13c   : > { %2464 = vmatprep.subr.bf16.mxu0 %v3471_v43  ;;  %2636 = vmatprep.subr.bf16.mxu1 %v3474_v44  ;;  %v3561_v43 = vld [vmem:[%s4250_s9 + $0x6e4] ss:$16 sps:$4 sm:$0xff]   ;;  %v3564_v44 = vld [vmem:[%s4250_s9 + $0x6ec] ss:$16 sps:$4 sm:$0xff]  }
 0x13f   : > { %2465 = vmatpush1.bf16.msra.mxu0 %v3469_v45  ;;  %2637 = vmatpush1.bf16.msra.mxu1 %v3472_v46  ;;  %v3559_v45 = vld [vmem:[%s4250_s9 + $0x6e0] ss:$16 sps:$4 sm:$0xff]   ;;  %v3562_v46 = vld [vmem:[%s4250_s9 + $0x6e8] ss:$16 sps:$4 sm:$0xff]  }
 0x140   : > { %2466 = vmatprep.subr.bf16.mxu0 %v3477_v47  ;;  %2638 = vmatprep.subr.bf16.mxu1 %v3480_v48  ;;  %v3567_v47 = vld [vmem:[%s4250_s9 + $0x704] ss:$16 sps:$4 sm:$0xff]   ;;  %v3570_v48 = vld [vmem:[%s4250_s9 + $0x70c] ss:$16 sps:$4 sm:$0xff]  }
 0x143   : > { %2467 = vmatpush1.bf16.msra.mxu0 %v3475_v49  ;;  %2639 = vmatpush1.bf16.msra.mxu1 %v3478_v50  ;;  %v3565_v49 = vld [vmem:[%s4250_s9 + $0x700] ss:$16 sps:$4 sm:$0xff]   ;;  %v3568_v50 = vld [vmem:[%s4250_s9 + $0x708] ss:$16 sps:$4 sm:$0xff]  }
 0x144   : > { %2468 = vmatprep.subr.bf16.mxu0 %v3483_v51  ;;  %2640 = vmatprep.subr.bf16.mxu1 %v3486_v52  ;;  %v3573_v51 = vld [vmem:[%s4250_s9 + $0x724] ss:$16 sps:$4 sm:$0xff]   ;;  %v3576_v52 = vld [vmem:[%s4250_s9 + $0x72c] ss:$16 sps:$4 sm:$0xff]  }
 0x147   : > { %2469 = vmatpush1.bf16.msra.mxu0 %v3481_v53  ;;  %2641 = vmatpush1.bf16.msra.mxu1 %v3484_v54  ;;  %v3571_v53 = vld [vmem:[%s4250_s9 + $0x720] ss:$16 sps:$4 sm:$0xff]   ;;  %v3574_v54 = vld [vmem:[%s4250_s9 + $0x728] ss:$16 sps:$4 sm:$0xff]  }
 0x148   : > { %2470 = vmatprep.subr.bf16.mxu0 %v3489_v55  ;;  %2642 = vmatprep.subr.bf16.mxu1 %v3492_v56  ;;  %v3579_v55 = vld [vmem:[%s4250_s9 + $0x744] ss:$16 sps:$4 sm:$0xff]   ;;  %v3582_v56 = vld [vmem:[%s4250_s9 + $0x74c] ss:$16 sps:$4 sm:$0xff]  }
 0x14b   : > { %2471 = vmatpush1.bf16.msra.mxu0 %v3487_v57  ;;  %2643 = vmatpush1.bf16.msra.mxu1 %v3490_v58  ;;  %v3577_v57 = vld [vmem:[%s4250_s9 + $0x740] ss:$16 sps:$4 sm:$0xff]   ;;  %v3580_v58 = vld [vmem:[%s4250_s9 + $0x748] ss:$16 sps:$4 sm:$0xff]  }
 0x14c   : > { %2472 = vmatprep.subr.bf16.mxu0 %v3495_v59  ;;  %2644 = vmatprep.subr.bf16.mxu1 %v3498_v60  ;;  %v3585_v59 = vld [vmem:[%s4250_s9 + $0x764] ss:$16 sps:$4 sm:$0xff]   ;;  %v3588_v60 = vld [vmem:[%s4250_s9 + $0x76c] ss:$16 sps:$4 sm:$0xff]  }
 0x14f   : > { %2473 = vmatpush1.bf16.msra.mxu0 %v3493_v61  ;;  %2645 = vmatpush1.bf16.msra.mxu1 %v3496_v62  ;;  %v3583_v61 = vld [vmem:[%s4250_s9 + $0x760] ss:$16 sps:$4 sm:$0xff]   ;;  %v3586_v62 = vld [vmem:[%s4250_s9 + $0x768] ss:$16 sps:$4 sm:$0xff]  }
 0x150   : > { %2474 = vmatprep.subr.bf16.mxu0 %v3501_v63  ;;  %2646 = vmatprep.subr.bf16.mxu1 %v3504_v0  ;;  %v3591_v63 = vld [vmem:[%s4250_s9 + $0x784] ss:$16 sps:$4 sm:$0xff]   ;;  %v3594_v0 = vld [vmem:[%s4250_s9 + $0x78c] ss:$16 sps:$4 sm:$0xff]  }
 0x153   : > { %2475 = vmatpush1.bf16.msra.mxu0 %v3499_v1  ;;  %2647 = vmatpush1.bf16.msra.mxu1 %v3502_v3  ;;  %v3589_v1 = vld [vmem:[%s4250_s9 + $0x780] ss:$16 sps:$4 sm:$0xff]   ;;  %v3592_v3 = vld [vmem:[%s4250_s9 + $0x788] ss:$16 sps:$4 sm:$0xff]  }
 0x154   : > { %2476 = vmatprep.subr.bf16.mxu0 %v3507_v4  ;;  %2648 = vmatprep.subr.bf16.mxu1 %v3510_v5  ;;  %v3597_v4 = vld [vmem:[%s4250_s9 + $0x7a4] ss:$16 sps:$4 sm:$0xff]   ;;  %v3600_v5 = vld [vmem:[%s4250_s9 + $0x7ac] ss:$16 sps:$4 sm:$0xff]  }
 0x157   : > { %2477 = vmatpush1.bf16.msra.mxu0 %v3505_v6  ;;  %2649 = vmatpush1.bf16.msra.mxu1 %v3508_v7  ;;  %v3595_v6 = vld [vmem:[%s4250_s9 + $0x7a0] ss:$16 sps:$4 sm:$0xff]   ;;  %v3598_v7 = vld [vmem:[%s4250_s9 + $0x7a8] ss:$16 sps:$4 sm:$0xff]  }
 0x158   : > { %2478 = vmatprep.subr.bf16.mxu0 %v3513_v8  ;;  %2650 = vmatprep.subr.bf16.mxu1 %v3516_v9  ;;  %v3603_v8 = vld [vmem:[%s4250_s9 + $0x7c4] ss:$16 sps:$4 sm:$0xff]   ;;  %v3606_v9 = vld [vmem:[%s4250_s9 + $0x7cc] ss:$16 sps:$4 sm:$0xff]  }
 0x15b   : > { %2479 = vmatpush1.bf16.msra.mxu0 %v3511_v10  ;;  %2651 = vmatpush1.bf16.msra.mxu1 %v3514_v11  ;;  %v3601_v10 = vld [vmem:[%s4250_s9 + $0x7c0] ss:$16 sps:$4 sm:$0xff]   ;;  %v3604_v11 = vld [vmem:[%s4250_s9 + $0x7c8] ss:$16 sps:$4 sm:$0xff]  }
 0x15c   : > { %2491 = vmatprep.subr.bf16.mxu0 %v3519_v12  ;;  %2663 = vmatprep.subr.bf16.mxu1 %v3522_v13  ;;  %v3609_v12 = vld [vmem:[%s4250_s9 + $0x7e4] ss:$16 sps:$4 sm:$0xff]   ;;  %v3612_v13 = vld [vmem:[%s4250_s9 + $0x7ec] ss:$16 sps:$4 sm:$0xff]  }
 0x15e   : > { %2481 = vmatmul.mubr.bf16.vlgmr.msra.gmra.mrb[0].mxu0 %v2890_v14  ;;  %2653 = vmatmul.mubr.bf16.vlgmr.msra.gmra.mrb[0].mxu1 %v2890_v14  ;;  %v3607_v14 = vld [vmem:[%s4250_s9 + $0x7e0] ss:$16 sps:$4 sm:$0xff]  }
 0x15f   : > { %2492 = vmatpush1.bf16.msra.mxu0 %v3517_v18  ;;  %2664 = vmatpush1.bf16.msra.mxu1 %v3520_v19  ;;  %v3610_v18 = vld [vmem:[%s4250_s9 + $0x7e8] ss:$16 sps:$4 sm:$0xff]   ;;  %v2892_v19 = vcombine.low %v4479_v2, %v4484_v17 }
 0x160   : > { %2493 = vmatprep.subr.bf16.mxu0 %v3525_v15  ;;  %2665 = vmatprep.subr.bf16.mxu1 %v3528_v16  ;;  %v1022_v15 = vlaneseq }
 0x161   : > { %2523 = vmatprep.mubr.bf16.mxu0 %v2893_v20  ;;  %2695 = vmatprep.mubr.bf16.mxu1 %v2893_v20 }
 0x162   : > { %v1023_v16 = vshrl.u32 %v1022_v15, 7 }
 0x163   : > { %2494 = vmatpush1.bf16.msra.mxu0 %v3523_v21  ;;  %2666 = vmatpush1.bf16.msra.mxu1 %v3526_v22  ;;  %v1020_v22 = vld [vmem:[%s752_s7] sm:$0xf] }
 0x164   : > { %2495 = vmatprep.subr.bf16.mxu0 %v3531_v23  ;;  %2667 = vmatprep.subr.bf16.mxu1 %v3534_v24  ;;  %v1024_v20 = vsub.s32 0, %v1023_v16  ;;  %v1032_v21 = vsub.s32 2, %v1023_v16  ;;  %v1028_v23 = vsub.s32 1, %v1023_v16  ;;  %v1036_v24 = vsub.s32 3, %v1023_v16 }
 0x166   : > { %v1025_v2 = vrot.slane %v1020_v22, %v1024_v20  ;;  %v1033_v17 = vrot.slane %v1020_v22, %v1032_v21 }
 0x167   : > { %2496 = vmatpush1.bf16.msra.mxu0 %v3529_v25  ;;  %2668 = vmatpush1.bf16.msra.mxu1 %v3532_v26  ;;  %v1029_v25 = vrot.slane %v1020_v22, %v1028_v23  ;;  %v1037_v26 = vrot.slane %v1020_v22, %v1036_v24 }
 0x168   : > { %2497 = vmatprep.subr.bf16.mxu0 %v3537_v27  ;;  %2669 = vmatprep.subr.bf16.mxu1 %v3540_v28 }
 0x16b   : > { %2498 = vmatpush1.bf16.msra.mxu0 %v3535_v29  ;;  %2670 = vmatpush1.bf16.msra.mxu1 %v3538_v30 }
 0x16c   : > { %2499 = vmatprep.subr.bf16.mxu0 %v3543_v31  ;;  %2671 = vmatprep.subr.bf16.mxu1 %v3546_v32 }
 0x16f   : > { %2500 = vmatpush1.bf16.msra.mxu0 %v3541_v33  ;;  %2672 = vmatpush1.bf16.msra.mxu1 %v3544_v34 }
 0x170   : > { %2501 = vmatprep.subr.bf16.mxu0 %v3549_v35  ;;  %2673 = vmatprep.subr.bf16.mxu1 %v3552_v36 }
 0x173   : > { %2502 = vmatpush1.bf16.msra.mxu0 %v3547_v37  ;;  %2674 = vmatpush1.bf16.msra.mxu1 %v3550_v38 }
 0x174   : > { %2503 = vmatprep.subr.bf16.mxu0 %v3555_v39  ;;  %2675 = vmatprep.subr.bf16.mxu1 %v3558_v40 }
 0x177   : > { %2504 = vmatpush1.bf16.msra.mxu0 %v3553_v41  ;;  %2676 = vmatpush1.bf16.msra.mxu1 %v3556_v42 }
 0x178   : > { %2505 = vmatprep.subr.bf16.mxu0 %v3561_v43  ;;  %2677 = vmatprep.subr.bf16.mxu1 %v3564_v44 }
 0x17b   : > { %2506 = vmatpush1.bf16.msra.mxu0 %v3559_v45  ;;  %2678 = vmatpush1.bf16.msra.mxu1 %v3562_v46 }
 0x17c   : > { %2507 = vmatprep.subr.bf16.mxu0 %v3567_v47  ;;  %2679 = vmatprep.subr.bf16.mxu1 %v3570_v48 }
 0x17f   : > { %2508 = vmatpush1.bf16.msra.mxu0 %v3565_v49  ;;  %2680 = vmatpush1.bf16.msra.mxu1 %v3568_v50 }
 0x180   : > { %2509 = vmatprep.subr.bf16.mxu0 %v3573_v51  ;;  %2681 = vmatprep.subr.bf16.mxu1 %v3576_v52 }
 0x183   : > { %2510 = vmatpush1.bf16.msra.mxu0 %v3571_v53  ;;  %2682 = vmatpush1.bf16.msra.mxu1 %v3574_v54 }
 0x184   : > { %2511 = vmatprep.subr.bf16.mxu0 %v3579_v55  ;;  %2683 = vmatprep.subr.bf16.mxu1 %v3582_v56 }
 0x187   : > { %2512 = vmatpush1.bf16.msra.mxu0 %v3577_v57  ;;  %2684 = vmatpush1.bf16.msra.mxu1 %v3580_v58 }
 0x188   : > { %2513 = vmatprep.subr.bf16.mxu0 %v3585_v59  ;;  %2685 = vmatprep.subr.bf16.mxu1 %v3588_v60 }
 0x18b   : > { %2514 = vmatpush1.bf16.msra.mxu0 %v3583_v61  ;;  %2686 = vmatpush1.bf16.msra.mxu1 %v3586_v62 }
 0x18c   : > { %2515 = vmatprep.subr.bf16.mxu0 %v3591_v63  ;;  %2687 = vmatprep.subr.bf16.mxu1 %v3594_v0 }
 0x18f   : > { %2516 = vmatpush1.bf16.msra.mxu0 %v3589_v1  ;;  %2688 = vmatpush1.bf16.msra.mxu1 %v3592_v3 }
 0x190   : > { %2517 = vmatprep.subr.bf16.mxu0 %v3597_v4  ;;  %2689 = vmatprep.subr.bf16.mxu1 %v3600_v5 }
 0x193   : > { %2518 = vmatpush1.bf16.msra.mxu0 %v3595_v6  ;;  %2690 = vmatpush1.bf16.msra.mxu1 %v3598_v7 }
 0x194   : > { %2519 = vmatprep.subr.bf16.mxu0 %v3603_v8  ;;  %2691 = vmatprep.subr.bf16.mxu1 %v3606_v9 }
 0x197   : > { %2520 = vmatpush1.bf16.msra.mxu0 %v3601_v10  ;;  %2692 = vmatpush1.bf16.msra.mxu1 %v3604_v11 }
 0x198   : > { %2521 = vmatprep.subr.bf16.mxu0 %v3609_v12  ;;  %2693 = vmatprep.subr.bf16.mxu1 %v3612_v13 }
 0x19b   : > { %2522 = vmatpush1.bf16.msra.mxu0 %v3607_v14  ;;  %2694 = vmatpush1.bf16.msra.mxu1 %v3610_v18 }
 0x19e   : > { %2524 = vmatmul.mubr.bf16.vlgmr.msra.gmra.mrb[0].mxu0 %v2892_v19  ;;  %2696 = vmatmul.mubr.bf16.vlgmr.msra.gmra.mrb[0].mxu1 %v2892_v19 }
 0x271   : > { %v2525_v27 = vpop.f32.mrb[0].mxu0  ;;  %v2697_v28 = vpop.f32.mrb[0].mxu1 }
 0x272   : > { %v3157_v29 = vadd.f32 %v2525_v27, %v1025_v2  ;;  %v3161_v30 = vadd.f32 %v2697_v28, %v1033_v17  ;;  %v2527_v31 = vpop.f32.mrb[1].mxu0  ;;  %v2699_v32 = vpop.f32.mrb[1].mxu1 }
 0x273   : > { %v3158_v33 = vadd.f32 %v2527_v31, %v1029_v25  ;;  %v3162_v34 = vadd.f32 %v2699_v32, %v1037_v26  ;;  %v2529_v35 = vpop.f32.mrb[2].mxu0  ;;  %v2701_v36 = vpop.f32.mrb[2].mxu1 }
 0x274   : > { %vm2706_vm0 = vcmp.gt.f32.partialorder %v3157_v29, 0.0  ;;  %v2714_v37 = vmul.f32 0.1, %v3157_v29  ;;  %vm2708_vm1 = vcmp.gt.f32.partialorder %v3161_v30, 0.0  ;;  %v2716_v38 = vmul.f32 0.1, %v3161_v30 }
 0x275   : > { %vm2707_vm2 = vcmp.gt.f32.partialorder %v3158_v33, 0.0  ;;  %v2715_v39 = vmul.f32 0.1, %v3158_v33  ;;  %vm2709_vm3 = vcmp.gt.f32.partialorder %v3162_v34, 0.0  ;;  %v2717_v40 = vmul.f32 0.1, %v3162_v34 }
 0x276   : > { %v2722_v41 = vsel %vm2706_vm0, %v3157_v29, %v2714_v37  ;;  %v2724_v42 = vsel %vm2708_vm1, %v3161_v30, %v2716_v38  ;;  %v3159_v43 = vadd.f32 %v2529_v35, %v1025_v2  ;;  %v3163_v44 = vadd.f32 %v2701_v36, %v1033_v17  ;;  %v2531_v45 = vpop.f32.mrb[3].mxu0  ;;  %v2703_v46 = vpop.f32.mrb[3].mxu1 }
 0x277   : > { %2730 = vst [vmem:[%s4558_s12] sm:$0xff] %v2722_v41  ;;  %2732 = vst [vmem:[%s4558_s12 + $0x10] sm:$0xff] %v2724_v42  ;;  %v2723_v47 = vsel %vm2707_vm2, %v3158_v33, %v2715_v39  ;;  %v2725_v48 = vsel %vm2709_vm3, %v3162_v34, %v2717_v40  ;;  %v3160_v49 = vadd.f32 %v2531_v45, %v1029_v25  ;;  %2744 = sbr.rel (!%p3708_p6) target bundleno = 646 (0x286), region = 59 }
 0x278   : > { %v3164_v50 = vadd.f32 %v2703_v46, %v1037_v26  ;;  %2731 = vst [vmem:[%s4558_s12 + $0x8] sm:$0xff] %v2723_v47  ;;  %2733 = vst [vmem:[%s4558_s12 + $0x18] sm:$0xff] %v2725_v48  ;;  %vm2710_vm4 = vcmp.gt.f32.partialorder %v3159_v43, 0.0  ;;  %v2718_v51 = vmul.f32 0.1, %v3159_v43  ;;  %vm2712_vm5 = vcmp.gt.f32.partialorder %v3163_v44, 0.0 }
 0x279   : > { %v2720_v52 = vmul.f32 0.1, %v3163_v44  ;;  %vm2711_vm6 = vcmp.gt.f32.partialorder %v3160_v49, 0.0  ;;  %v2719_v53 = vmul.f32 0.1, %v3160_v49 }
 0x27a   : > { %vm2713_vm7 = vcmp.gt.f32.partialorder %v3164_v50, 0.0  ;;  %v2721_v54 = vmul.f32 0.1, %v3164_v50  ;;  %v2726_v55 = vsel %vm2710_vm4, %v3159_v43, %v2718_v51 }
 0x27b   : > { %v2728_v56 = vsel %vm2712_vm5, %v3163_v44, %v2720_v52  ;;  %2734 = vst [vmem:[%s4558_s12 + $0x20] sm:$0xff] %v2726_v55  ;;  %v2727_v57 = vsel %vm2711_vm6, %v3160_v49, %v2719_v53 }
 0x27c   : > { %2736 = vst [vmem:[%s4558_s12 + $0x30] sm:$0xff] %v2728_v56  ;;  %v2729_v58 = vsel %vm2713_vm7, %v3164_v50, %v2721_v54  ;;  %2735 = vst [vmem:[%s4558_s12 + $0x28] sm:$0xff] %v2727_v57 }
 0x27d   : > { %2737 = vst [vmem:[%s4558_s12 + $0x38] sm:$0xff] %v2729_v58 }
 0x27e   : > { %v2763_v59 = vld [vmem:[%s4558_s12] sm:$0xff]  ;;  %v2767_v61 = vld [vmem:[%s4558_s12 + $0x10] sm:$0xff] }
 0x27f   : > { %v2765_v60 = vld [vmem:[%s4558_s12 + $0x8] sm:$0xff]  ;;  %v2769_v62 = vld [vmem:[%s4558_s12 + $0x18] sm:$0xff]  ;;  %2764 = vst [vmem:[%s2750_s11] sm:$0xff] %v2763_v59  ;;  %2768 = vst [vmem:[%s2750_s11 + $0x10] sm:$0xff] %v2767_v61 }
 0x280   : > { %2766 = vst [vmem:[%s2750_s11 + $0x8] sm:$0xff] %v2765_v60  ;;  %2770 = vst [vmem:[%s2750_s11 + $0x18] sm:$0xff] %v2769_v62 }
 0x282   : > { %v2771_v63 = vld [vmem:[%s4558_s12 + $0x20] sm:$0xff] }
 0x283   : > { %v2773_v0 = vld [vmem:[%s4558_s12 + $0x28] sm:$0xff]  ;;  %2772 = vst [vmem:[%s2750_s11 + $0x40] sm:$0xff] %v2771_v63  ;;  %v2775_v1 = vld [vmem:[%s4558_s12 + $0x30] sm:$0xff] }
 0x284   : > { %2774 = vst [vmem:[%s2750_s11 + $0x48] sm:$0xff] %v2773_v0  ;;  %v2777_v3 = vld [vmem:[%s4558_s12 + $0x38] sm:$0xff]  ;;  %2776 = vst [vmem:[%s2750_s11 + $0x50] sm:$0xff] %v2775_v1 }
 0x285   : > { %2778 = vst [vmem:[%s2750_s11 + $0x58] sm:$0xff] %v2777_v3 }
 0x286 PF: > { %s13_s16 = sadd.s32 1, %s3651_s16   ;;  %s4602_s12 = smov %s3639_s13 }
 0x287   : > { %p10_p12 = scmp.ge.s32.totalorder %s13_s16, 4   ;;  %s4603_s13 = smov %s3713_s22 }
 0x288   : > { %s4604_s14 = smov %s3647_s15  ;;  %s4605_s15 = smov %s4607_s17 }
 0x289   :  { %12 = sbr.rel (!%p10_p12) target bundleno = 3 (0x3), region = 119 }

</bundles_post_ra>
